<compile_context>
chip_gen: v5e
topology: v5e:2x2
jax: 0.10.0
libtpu: 0.0.40
codegen_flags: <defaults>
</compile_context>

<pallas_src>
import functools

import jax
import jax.numpy as jnp
from jax import lax
from jax.experimental import pallas as pl
from jax.experimental.pallas import tpu as pltpu


def _rope_kernel(cos_ref, sin_ref, q_ref, k_ref, qo_ref, ko_ref):
    """Rotate interleaved (even, odd) pairs of one (rows, lanes) tile."""
    cos_t = cos_ref[...]          # (1, W) f32, cos repeated for each pair
    sin_t = sin_ref[...]          # (1, W) f32, [-sin, +sin, -sin, +sin, ...]
    w = q_ref.shape[-1]
    # Lane parity: even lanes hold the "real" half, odd lanes the "imag" half.
    parity = lax.broadcasted_iota(jnp.int32, q_ref.shape, 1) % 2

    def rotate(x_ref, o_ref):
        x = x_ref[...].astype(jnp.float32)
        fwd = pltpu.roll(x, w - 1, 1)          # y[i] = x[i + 1]  (pair partner of even lane)
        bwd = pltpu.roll(x, 1, 1)              # y[i] = x[i - 1]  (pair partner of odd lane)
        partner = jnp.where(parity == 0, fwd, bwd)
        o_ref[...] = (x * cos_t + partner * sin_t).astype(o_ref.dtype)

    rotate(q_ref, qo_ref)
    rotate(k_ref, ko_ref)


def _row_tile(desired, rows):
    """Sublane tile: multiple of 8, or the full extent."""
    if desired >= rows or rows <= 8:
        return rows
    return max(8, (desired // 8) * 8)


def _lane_tile(desired, lanes):
    """Lane tile: multiple of 128, or the full extent."""
    if desired >= lanes or lanes <= 128:
        return lanes
    return max(128, (desired // 128) * 128)


def _choose_block(rows, lanes, itemsize, target_bytes=1 << 20):
    """Pick a (rows, lanes) tile of roughly `target_bytes` per tensor."""
    target_elems = max(256, target_bytes // itemsize)
    if rows * lanes <= target_elems:
        return rows, lanes                         # whole problem in one block
    if 8 * lanes >= target_elems or rows <= 8:
        g = rows if rows <= 8 else 8               # minimal row tile, split lanes
        return g, _lane_tile(max(128, target_elems // g), lanes)
    return _row_tile(target_elems // lanes, rows), lanes


@functools.partial(jax.jit, static_argnames=("theta",))
def rope_pallas(query, key, theta=10000.0):
    b, h, t, c = query.shape
    assert key.shape == query.shape
    assert c % 2 == 0, "head dim must be even for RoPE"
    c2 = c // 2
    bh, L = b * h, t * c

    # --- tiny (T, C) rotation tables, built once in the wrapper --------------
    inv_freq = 1.0 / theta ** (jnp.arange(0, c, 2, dtype=jnp.float32)[:c2] / c)
    angle = jnp.outer(jnp.arange(t, dtype=jnp.float32), inv_freq)     # (t, c2)
    cos_full = jnp.repeat(jnp.cos(angle), 2, axis=-1)                 # (t, c)
    sign = jnp.tile(jnp.array([-1.0, 1.0], jnp.float32), c2)          # (c,)
    sin_signed = jnp.repeat(jnp.sin(angle), 2, axis=-1) * sign        # (t, c)
    cos_flat = cos_full.reshape(1, L)
    sin_flat = sin_signed.reshape(1, L)

    # --- lane-dense flattened views (pure reshapes, no HBM shuffle) ----------
    q2 = query.reshape(bh, L)
    k2 = key.reshape(bh, L)

    G, W = _choose_block(bh, L, query.dtype.itemsize)
    grid = (pl.cdiv(bh, G), pl.cdiv(L, W))

    data_spec = pl.BlockSpec((G, W), lambda i, j: (i, j))
    table_spec = pl.BlockSpec((1, W), lambda i, j: (0, j))   # constant over rows

    q_rot, k_rot = pl.pallas_call(
        _rope_kernel,
        grid=grid,
        in_specs=[table_spec, table_spec, data_spec, data_spec],
        out_specs=(data_spec, data_spec),
        out_shape=(jax.ShapeDtypeStruct((bh, L), query.dtype),
                   jax.ShapeDtypeStruct((bh, L), key.dtype)),
        compiler_params=pltpu.CompilerParams(
            dimension_semantics=("parallel", "parallel")),
    )(cos_flat, sin_flat, q2, k2)

    return q_rot.reshape(b, h, t, c), k_rot.reshape(b, h, t, c)


def rope_reference(query, key, theta=10000.0):
    """Pure-JAX reference matching the PyTorch module exactly."""
    b, h, t, c = query.shape
    c2 = c // 2
    inv_freq = 1.0 / theta ** (jnp.arange(0, c, 2, dtype=jnp.float32)[:c2] / c)
    angle = jnp.outer(jnp.arange(t, dtype=jnp.float32), inv_freq)  # (t, c2)
    cos_t, sin_t = jnp.cos(angle), jnp.sin(angle)

    def rot(x):
        xf = x.astype(jnp.float32).reshape(b, h, t, c2, 2)
        e, o = xf[..., 0], xf[..., 1]
        e_r = e * cos_t - o * sin_t
        o_r = e * sin_t + o * cos_t
        return jnp.stack([e_r, o_r], axis=-1).reshape(b, h, t, c).astype(x.dtype)

    return rot(query), rot(key)


if __name__ == "__main__":
    # RoPE has no learned parameters; emb_dim = head dim C, theta = 10000.0.
    B, H, T, C = 2, 4, 128, 64
    key0 = jax.random.PRNGKey(0)
    kq, kk = jax.random.split(key0)
    query = jax.random.normal(kq, (B, H, T, C), dtype=jnp.float32)
    key_t = jax.random.normal(kk, (B, H, T, C), dtype=jnp.float32)

    q_rot, k_rot = rope_pallas(query, key_t)
    jax.block_until_ready((q_rot, k_rot))

    q_ref, k_ref = rope_reference(query, key_t)
    assert jnp.allclose(q_rot, q_ref, atol=1e-5, rtol=1e-5)
    assert jnp.allclose(k_rot, k_ref, atol=1e-5, rtol=1e-5)

    print("KERNEL_OK")
</pallas_src>

<mosaic_0001>
module attributes {stable_mosaic.version = 11 : i64} {
  func.func @_rope_kernel(%arg0: i32, %arg1: i32, %arg2: memref<1x8192xf32, #tpu.memory_space<vmem>>, %arg3: memref<1x8192xf32, #tpu.memory_space<vmem>>, %arg4: memref<8x8192xf32, #tpu.memory_space<vmem>>, %arg5: memref<8x8192xf32, #tpu.memory_space<vmem>>, %arg6: memref<8x8192xf32, #tpu.memory_space<vmem>>, %arg7: memref<8x8192xf32, #tpu.memory_space<vmem>>) attributes {dimension_semantics = [#tpu.dimension_semantics<parallel>, #tpu.dimension_semantics<parallel>], iteration_bounds = array<i64: 1, 1>, scalar_prefetch = 0 : i64, scratch_operands = 0 : i64, tpu.core_type = #tpu.core_type<tc>, window_params = [{transform_indices = @transform_0, window_bounds = array<i64: 1, 8192>}, {transform_indices = @transform_1, window_bounds = array<i64: 1, 8192>}, {transform_indices = @transform_2, window_bounds = array<i64: 8, 8192>}, {transform_indices = @transform_3, window_bounds = array<i64: 8, 8192>}, {transform_indices = @transform_4, window_bounds = array<i64: 8, 8192>}, {transform_indices = @transform_5, window_bounds = array<i64: 8, 8192>}]} {
    %c0 = arith.constant 0 : index
    %c0_0 = arith.constant 0 : index
    %0 = vector.load %arg2[%c0, %c0_0] : memref<1x8192xf32, #tpu.memory_space<vmem>>, vector<1x8192xf32>
    %c0_1 = arith.constant 0 : index
    %c0_2 = arith.constant 0 : index
    %1 = vector.load %arg3[%c0_1, %c0_2] : memref<1x8192xf32, #tpu.memory_space<vmem>>, vector<1x8192xf32>
    %2 = tpu.iota {dimensions = array<i32: 1>} : vector<8x8192xi32>
    %c2_i32 = arith.constant 2 : i32
    %c0_i32 = arith.constant 0 : i32
    %3 = arith.cmpi eq, %c2_i32, %c0_i32 : i32
    %c1_i32 = arith.constant 1 : i32
    %4 = arith.select %3, %c1_i32, %c2_i32 : i32
    %5 = vector.broadcast %4 : i32 to vector<8x8192xi32>
    %6 = arith.remsi %2, %5 : vector<8x8192xi32>
    %c0_i32_3 = arith.constant 0 : i32
    %7 = vector.broadcast %c0_i32_3 : i32 to vector<8x8192xi32>
    %8 = arith.cmpi ne, %6, %7 : vector<8x8192xi32>
    %c0_i32_4 = arith.constant 0 : i32
    %9 = vector.broadcast %c0_i32_4 : i32 to vector<8x8192xi32>
    %10 = arith.cmpi slt, %6, %9 : vector<8x8192xi32>
    %c0_i32_5 = arith.constant 0 : i32
    %11 = arith.cmpi slt, %4, %c0_i32_5 : i32
    %12 = vector.broadcast %11 : i1 to vector<8x8192xi1>
    %13 = vector.broadcast %12 : vector<8x8192xi1> to vector<8x8192xi1>
    %14 = arith.xori %10, %13 : vector<8x8192xi1>
    %15 = arith.andi %14, %8 : vector<8x8192xi1>
    %16 = vector.broadcast %4 : i32 to vector<8x8192xi32>
    %17 = arith.addi %6, %16 : vector<8x8192xi32>
    %18 = arith.select %15, %17, %6 : vector<8x8192xi1>, vector<8x8192xi32>
    %c0_6 = arith.constant 0 : index
    %c0_7 = arith.constant 0 : index
    %19 = vector.load %arg4[%c0_6, %c0_7] : memref<8x8192xf32, #tpu.memory_space<vmem>>, vector<8x8192xf32>
    %c8191_i32 = arith.constant 8191 : i32
    %20 = tpu.dynamic_rotate %19 by %c8191_i32 dim 1 : vector<8x8192xf32>, i32 -> vector<8x8192xf32>
    %c1_i32_8 = arith.constant 1 : i32
    %21 = tpu.dynamic_rotate %19 by %c1_i32_8 dim 1 : vector<8x8192xf32>, i32 -> vector<8x8192xf32>
    %c0_i32_9 = arith.constant 0 : i32
    %22 = vector.broadcast %c0_i32_9 : i32 to vector<8x8192xi32>
    %23 = arith.cmpi eq, %18, %22 : vector<8x8192xi32>
    %24 = arith.select %23, %20, %21 : vector<8x8192xi1>, vector<8x8192xf32>
    %25 = vector.broadcast %0 : vector<1x8192xf32> to vector<8x8192xf32>
    %26 = arith.mulf %19, %25 : vector<8x8192xf32>
    %27 = vector.broadcast %1 : vector<1x8192xf32> to vector<8x8192xf32>
    %28 = arith.mulf %24, %27 : vector<8x8192xf32>
    %29 = arith.addf %26, %28 : vector<8x8192xf32>
    %c0_10 = arith.constant 0 : index
    %c0_11 = arith.constant 0 : index
    %30 = vector.load %arg6[%c0_10, %c0_11] : memref<8x8192xf32, #tpu.memory_space<vmem>>, vector<8x8192xf32>
    tpu.vector_store %arg6[%c0_10, %c0_11], %29 {strides = array<i32>} : memref<8x8192xf32, #tpu.memory_space<vmem>>, vector<8x8192xf32>,
    %c0_12 = arith.constant 0 : index
    %c0_13 = arith.constant 0 : index
    %31 = vector.load %arg5[%c0_12, %c0_13] : memref<8x8192xf32, #tpu.memory_space<vmem>>, vector<8x8192xf32>
    %c8191_i32_14 = arith.constant 8191 : i32
    %32 = tpu.dynamic_rotate %31 by %c8191_i32_14 dim 1 : vector<8x8192xf32>, i32 -> vector<8x8192xf32>
    %c1_i32_15 = arith.constant 1 : i32
    %33 = tpu.dynamic_rotate %31 by %c1_i32_15 dim 1 : vector<8x8192xf32>, i32 -> vector<8x8192xf32>
    %c0_i32_16 = arith.constant 0 : i32
    %34 = vector.broadcast %c0_i32_16 : i32 to vector<8x8192xi32>
    %35 = arith.cmpi eq, %18, %34 : vector<8x8192xi32>
    %36 = arith.select %35, %32, %33 : vector<8x8192xi1>, vector<8x8192xf32>
    %37 = vector.broadcast %0 : vector<1x8192xf32> to vector<8x8192xf32>
    %38 = arith.mulf %31, %37 : vector<8x8192xf32>
    %39 = vector.broadcast %1 : vector<1x8192xf32> to vector<8x8192xf32>
    %40 = arith.mulf %36, %39 : vector<8x8192xf32>
    %41 = arith.addf %38, %40 : vector<8x8192xf32>
    %c0_17 = arith.constant 0 : index
    %c0_18 = arith.constant 0 : index
    %42 = vector.load %arg7[%c0_17, %c0_18] : memref<8x8192xf32, #tpu.memory_space<vmem>>, vector<8x8192xf32>
    tpu.vector_store %arg7[%c0_17, %c0_18], %41 {strides = array<i32>} : memref<8x8192xf32, #tpu.memory_space<vmem>>, vector<8x8192xf32>,
    return
  }
  func.func @transform_0(%arg0: i32, %arg1: i32) -> (i32, i32) {
    %c0_i32 = arith.constant 0 : i32
    %c0_i32_0 = arith.constant 0 : i32
    return %c0_i32, %arg1 : i32, i32
  }
  func.func @transform_1(%arg0: i32, %arg1: i32) -> (i32, i32) {
    %c0_i32 = arith.constant 0 : i32
    %c0_i32_0 = arith.constant 0 : i32
    return %c0_i32, %arg1 : i32, i32
  }
  func.func @transform_2(%arg0: i32, %arg1: i32) -> (i32, i32) {
    %c0_i32 = arith.constant 0 : i32
    return %arg0, %arg1 : i32, i32
  }
  func.func @transform_3(%arg0: i32, %arg1: i32) -> (i32, i32) {
    %c0_i32 = arith.constant 0 : i32
    return %arg0, %arg1 : i32, i32
  }
  func.func @transform_4(%arg0: i32, %arg1: i32) -> (i32, i32) {
    %c0_i32 = arith.constant 0 : i32
    return %arg0, %arg1 : i32, i32
  }
  func.func @transform_5(%arg0: i32, %arg1: i32) -> (i32, i32) {
    %c0_i32 = arith.constant 0 : i32
    return %arg0, %arg1 : i32, i32
  }
}

</mosaic_0001>

<bundles_post_ra>
// kernel: tile.6
= control target key start
LH: loop header
LB: loop body
LE: loop exit
PB: predicated region body
PF: predicated region fallthrough
CT: control target
= control target key end

     0   :  { %s40_s0 = inlined_call_operand.vmem [shape: f32[2], index: 0, kind: input, shape index: {}]   ;;  %s41_s1 = inlined_call_operand.vmem [shape: f32[32,2], index: 1, kind: output, shape index: {}]  }
   0x1   :  { %v4_v0 = vld [vmem:[%s40_s0] ss:$0 sm:$0xff] }
   0x2   :  { %5 = vst [vmem:[%s41_s1] sm:$0xff] %v4_v0 }
   0x3   :  { %12 = vst [vmem:[%s41_s1 + $0x8] sm:$0xff] %v4_v0 }
   0x4   :  { %13 = vst [vmem:[%s41_s1 + $0x10] sm:$0xff] %v4_v0 }
   0x5   :  { %14 = vst [vmem:[%s41_s1 + $0x18] sm:$0xff] %v4_v0 }

// kernel: mul.23
= control target key start
LH: loop header
LB: loop body
LE: loop exit
PB: predicated region body
PF: predicated region fallthrough
CT: control target
= control target key end

     0   :  { %s259_s10 = smov 62   ;;  %s260_s11 = smov 58   ;;  %vm3_vm0 = vcmask 15360   ;;  %vm9_vm1 = vcmask 523760   ;;  %vm15_vm2 = vcmask 507360   ;;  %vm21_vm3 = vcmask 490960   ;;  %s399_s0 = inlined_call_operand.vmem [shape: f32[32,2], index: 0, kind: input, shape index: {}]   ;;  %s400_s1 = inlined_call_operand.vmem [shape: f32[64], index: 1, kind: output, shape index: {}]  }
   0x1   :  { %v197_v0 = vld [vmem:[%s399_s0 + $0x1f] sm:$0x1]   ;;  %v199_v1 = vld [vmem:[%s399_s0 + $0x1d] sm:$0x1]   ;;  %v201_v2 = vld [vmem:[%s399_s0 + $0x1b] sm:$0x1]  }
   0x2   :  { %7 = vrot.lane.b32.xlu0 %v197_v0, %s259_s10  ;;  %19 = vrot.lane.b32.xlu1 %v199_v1, %s260_s11  ;;  %s261_s14 = smov 54   ;;  %v198_v3 = vld [vmem:[%s399_s0 + $0x1e] sm:$0x1]   ;;  %v200_v4 = vld [vmem:[%s399_s0 + $0x1c] sm:$0x1]   ;;  %s262_s19 = smov 60  }
   0x3   :  { %31 = vrot.lane.b32.xlu2 %v201_v2, %s261_s14  ;;  %s263_s20 = smov 56   ;;  %v202_v5 = vld [vmem:[%s399_s0 + $0x1a] sm:$0x1]   ;;  %s264_s23 = smov 52   ;;  %v203_v6 = vld [vmem:[%s399_s0 + $0x19] sm:$0x1]  }
   0x4   :  { %v204_v7 = vld [vmem:[%s399_s0 + $0x18] sm:$0x1]   ;;  %s265_s28 = smov 50   ;;  %s266_s29 = smov 48   ;;  %v205_v8 = vld [vmem:[%s399_s0 + $0x17] sm:$0x1]  }
   0x5   :  { %s267_s3 = smov 46   ;;  %v206_v9 = vld [vmem:[%s399_s0 + $0x16] sm:$0x1]   ;;  %v207_v10 = vld [vmem:[%s399_s0 + $0x15] sm:$0x1]   ;;  %s268_s8 = smov 44  }
   0x6   :  { %s269_s9 = smov 42   ;;  %v208_v11 = vld [vmem:[%s399_s0 + $0x14] sm:$0x1]   ;;  %s270_s12 = smov 40   ;;  %v209_v12 = vld [vmem:[%s399_s0 + $0x13] sm:$0x1]  }
   0x7   :  { %v210_v13 = vld [vmem:[%s399_s0 + $0x12] sm:$0x1]   ;;  %s271_s17 = smov 38   ;;  %s272_s18 = smov 36   ;;  %v211_v14 = vld [vmem:[%s399_s0 + $0x11] sm:$0x1]  }
   0x8   :  { %s273_s21 = smov 34   ;;  %v212_v15 = vld [vmem:[%s399_s0 + $0x10] sm:$0x1]   ;;  %v213_v16 = vld [vmem:[%s399_s0 + $0xf] sm:$0x1]   ;;  %s274_s26 = smov 32  }
   0x9   :  { %s275_s27 = smov 30   ;;  %v214_v17 = vld [vmem:[%s399_s0 + $0xe] sm:$0x1]   ;;  %s276_s30 = smov 28   ;;  %v215_v18 = vld [vmem:[%s399_s0 + $0xd] sm:$0x1]  }
   0xa   :  { %13 = vrot.lane.b32.xlu0 %v198_v3, %s262_s19  ;;  %25 = vrot.lane.b32.xlu1 %v200_v4, %s263_s20  ;;  %v216_v19 = vld [vmem:[%s399_s0 + $0xc] sm:$0x1]   ;;  %s277_s6 = smov 26   ;;  %s278_s7 = smov 24   ;;  %v217_v20 = vld [vmem:[%s399_s0 + $0xb] sm:$0x1]  }
   0xb   :  { %37 = vrot.lane.b32.xlu2 %v202_v5, %s264_s23  ;;  %s279_s10 = smov 22   ;;  %v218_v21 = vld [vmem:[%s399_s0 + $0xa] sm:$0x1]   ;;  %v219_v22 = vld [vmem:[%s399_s0 + $0x9] sm:$0x1]   ;;  %s280_s15 = smov 20  }
   0xc   :  { %s281_s16 = smov 18   ;;  %v220_v23 = vld [vmem:[%s399_s0 + $0x8] sm:$0x1]   ;;  %s282_s19 = smov 16   ;;  %v221_v24 = vld [vmem:[%s399_s0 + $0x7] sm:$0x1]  }
   0xd   :  { %v222_v25 = vld [vmem:[%s399_s0 + $0x6] sm:$0x1]   ;;  %s283_s24 = smov 14   ;;  %s284_s25 = smov 12   ;;  %v223_v26 = vld [vmem:[%s399_s0 + $0x5] sm:$0x1]  }
   0xe   :  { %v224_v27 = vld [vmem:[%s399_s0 + $0x4] sm:$0x1]   ;;  %v225_v28 = vld [vmem:[%s399_s0 + $0x3] sm:$0x1]   ;;  %s286_s4 = smov 8   ;;  %s287_s5 = smov 6  }
   0xf   :  { %v226_v29 = vld [vmem:[%s399_s0 + $0x2] sm:$0x1]   ;;  %v227_v30 = vld [vmem:[%s399_s0 + $0x1] sm:$0x1]   ;;  %s289_s11 = smov 2   ;;  %vm27_vm4 = vcmask 474560  }
  0x10   :  { %v2_v31 = vld [vmem:[%s399_s0] sm:$0x1]   ;;  %vm33_vm5 = vcmask 458160   ;;  %vm39_vm6 = vcmask 441760   ;;  %vm45_vm7 = vcmask 425360   ;;  %vm51_vm8 = vcmask 408960  }
  0x11   :  { %4 = vst.msk [vmem:[#allocation0] sm:$0x1] %vm3_vm0, %v2_v31   ;;  %vm57_vm9 = vcmask 392560   ;;  %vm63_vm10 = vcmask 376160   ;;  %vm69_vm11 = vcmask 359760   ;;  %vm75_vm12 = vcmask 343360  }
  0x12   :  { %43 = vrot.lane.b32.xlu0 %v203_v6, %s265_s28  ;;  %49 = vrot.lane.b32.xlu1 %v204_v7, %s266_s29  ;;  %s285_s28 = smov 10   ;;  %vm81_vm13 = vcmask 326960   ;;  %vm87_vm14 = vcmask 310560   ;;  %vm93_vm15 = vcmask 294160   ;;  %vm99_vm0 = vcmask 277760  }
  0x13   :  { %55 = vrot.lane.b32.xlu2 %v205_v8, %s267_s3 }
  0x1a   :  { %61 = vrot.lane.b32.xlu0 %v206_v9, %s268_s8  ;;  %67 = vrot.lane.b32.xlu1 %v207_v10, %s269_s9  ;;  %s288_s8 = smov 4  }
  0x1b   :  { %73 = vrot.lane.b32.xlu2 %v208_v11, %s270_s12 }
  0x22   :  { %79 = vrot.lane.b32.xlu0 %v209_v12, %s271_s17  ;;  %85 = vrot.lane.b32.xlu1 %v210_v13, %s272_s18 }
  0x23   :  { %91 = vrot.lane.b32.xlu2 %v211_v14, %s273_s21 }
  0x2a   :  { %97 = vrot.lane.b32.xlu0 %v212_v15, %s274_s26  ;;  %103 = vrot.lane.b32.xlu1 %v213_v16, %s275_s27 }
  0x2b   :  { %109 = vrot.lane.b32.xlu2 %v214_v17, %s276_s30 }
  0x32   :  { %115 = vrot.lane.b32.xlu0 %v215_v18, %s277_s6  ;;  %121 = vrot.lane.b32.xlu1 %v216_v19, %s278_s7 }
  0x33   :  { %127 = vrot.lane.b32.xlu2 %v217_v20, %s279_s10 }
  0x3a   :  { %133 = vrot.lane.b32.xlu0 %v218_v21, %s280_s15  ;;  %139 = vrot.lane.b32.xlu1 %v219_v22, %s281_s16 }
  0x3b   :  { %145 = vrot.lane.b32.xlu2 %v220_v23, %s282_s19 }
  0x42   :  { %151 = vrot.lane.b32.xlu0 %v221_v24, %s283_s24  ;;  %157 = vrot.lane.b32.xlu1 %v222_v25, %s284_s25 }
  0x43   :  { %163 = vrot.lane.b32.xlu2 %v223_v26, %s285_s28 }
  0x4a   :  { %169 = vrot.lane.b32.xlu0 %v224_v27, %s286_s4  ;;  %175 = vrot.lane.b32.xlu1 %v225_v28, %s287_s5 }
  0x4b   :  { %181 = vrot.lane.b32.xlu2 %v226_v29, %s288_s8 }
  0x52   :  { %187 = vrot.lane.b32.xlu0 %v227_v30, %s289_s11 }
  0x5d   :  { %v32_v32 = vpop.permute.xlu2 %31  }
  0x65   :  { %v38_v33 = vpop.permute.xlu2 %37  }
  0x6d   :  { %v56_v34 = vpop.permute.xlu2 %55  }
  0x74   :  { %v8_v35 = vpop.permute.xlu0 %7   ;;  %v20_v36 = vpop.permute.xlu1 %19  }
  0x75   :  { %10 = vst.msk [vmem:[#allocation0] sm:$0x1] %vm9_vm1, %v8_v35   ;;  %v74_v37 = vpop.permute.xlu2 %73   ;;  %vm105_vm1 = vcmask 261360  }
  0x7c   :  { %v14_v38 = vpop.permute.xlu0 %13   ;;  %v26_v39 = vpop.permute.xlu1 %25  }
  0x7d   :  { %16 = vst.msk [vmem:[#allocation0] sm:$0x1] %vm15_vm2, %v14_v38   ;;  %v92_v40 = vpop.permute.xlu2 %91   ;;  %vm111_vm2 = vcmask 244960  }
  0x7e   :  { %22 = vst.msk [vmem:[#allocation0] sm:$0x1] %vm21_vm3, %v20_v36   ;;  %vm117_vm3 = vcmask 228560  }
  0x7f   :  { %28 = vst.msk [vmem:[#allocation0] sm:$0x1] %vm27_vm4, %v26_v39   ;;  %vm123_vm4 = vcmask 212160  }
  0x80   :  { %34 = vst.msk [vmem:[#allocation0] sm:$0x1] %vm33_vm5, %v32_v32   ;;  %vm129_vm5 = vcmask 195760  }
  0x81   :  { %40 = vst.msk [vmem:[#allocation0] sm:$0x1] %vm39_vm6, %v38_v33   ;;  %vm135_vm6 = vcmask 179360  }
  0x84   :  { %v44_v41 = vpop.permute.xlu0 %43   ;;  %v50_v42 = vpop.permute.xlu1 %49  }
  0x85   :  { %46 = vst.msk [vmem:[#allocation0] sm:$0x1] %vm45_vm7, %v44_v41   ;;  %v110_v43 = vpop.permute.xlu2 %109   ;;  %vm141_vm7 = vcmask 162960  }
  0x86   :  { %52 = vst.msk [vmem:[#allocation0] sm:$0x1] %vm51_vm8, %v50_v42   ;;  %vm147_vm8 = vcmask 146560  }
  0x87   :  { %58 = vst.msk [vmem:[#allocation0] sm:$0x1] %vm57_vm9, %v56_v34   ;;  %vm153_vm9 = vcmask 130160  }
  0x8c   :  { %v62_v44 = vpop.permute.xlu0 %61   ;;  %v68_v45 = vpop.permute.xlu1 %67  }
  0x8d   :  { %64 = vst.msk [vmem:[#allocation0] sm:$0x1] %vm63_vm10, %v62_v44   ;;  %v128_v46 = vpop.permute.xlu2 %127   ;;  %vm159_vm10 = vcmask 113760  }
  0x8e   :  { %70 = vst.msk [vmem:[#allocation0] sm:$0x1] %vm69_vm11, %v68_v45   ;;  %vm165_vm11 = vcmask 97360  }
  0x8f   :  { %76 = vst.msk [vmem:[#allocation0] sm:$0x1] %vm75_vm12, %v74_v37   ;;  %vm171_vm12 = vcmask 80960  }
  0x94   :  { %v80_v47 = vpop.permute.xlu0 %79   ;;  %v86_v48 = vpop.permute.xlu1 %85  }
  0x95   :  { %82 = vst.msk [vmem:[#allocation0] sm:$0x1] %vm81_vm13, %v80_v47   ;;  %v146_v49 = vpop.permute.xlu2 %145   ;;  %vm177_vm13 = vcmask 64560  }
  0x96   :  { %88 = vst.msk [vmem:[#allocation0] sm:$0x1] %vm87_vm14, %v86_v48   ;;  %vm183_vm14 = vcmask 48160  }
  0x97   :  { %94 = vst.msk [vmem:[#allocation0] sm:$0x1] %vm93_vm15, %v92_v40   ;;  %vm189_vm15 = vcmask 31760  }
  0x9c   :  { %v98_v50 = vpop.permute.xlu0 %97   ;;  %v104_v51 = vpop.permute.xlu1 %103  }
  0x9d   :  { %100 = vst.msk [vmem:[#allocation0] sm:$0x1] %vm99_vm0, %v98_v50   ;;  %v164_v52 = vpop.permute.xlu2 %163  }
  0x9e   :  { %106 = vst.msk [vmem:[#allocation0] sm:$0x1] %vm105_vm1, %v104_v51  }
  0x9f   :  { %112 = vst.msk [vmem:[#allocation0] sm:$0x1] %vm111_vm2, %v110_v43  }
  0xa4   :  { %v116_v53 = vpop.permute.xlu0 %115   ;;  %v122_v54 = vpop.permute.xlu1 %121  }
  0xa5   :  { %118 = vst.msk [vmem:[#allocation0] sm:$0x1] %vm117_vm3, %v116_v53   ;;  %v182_v55 = vpop.permute.xlu2 %181  }
  0xa6   :  { %124 = vst.msk [vmem:[#allocation0] sm:$0x1] %vm123_vm4, %v122_v54  }
  0xa7   :  { %130 = vst.msk [vmem:[#allocation0] sm:$0x1] %vm129_vm5, %v128_v46  }
  0xac   :  { %v134_v56 = vpop.permute.xlu0 %133   ;;  %v140_v57 = vpop.permute.xlu1 %139  }
  0xad   :  { %136 = vst.msk [vmem:[#allocation0] sm:$0x1] %vm135_vm6, %v134_v56  }
  0xae   :  { %142 = vst.msk [vmem:[#allocation0] sm:$0x1] %vm141_vm7, %v140_v57  }
  0xaf   :  { %148 = vst.msk [vmem:[#allocation0] sm:$0x1] %vm147_vm8, %v146_v49  }
  0xb4   :  { %v152_v58 = vpop.permute.xlu0 %151   ;;  %v158_v59 = vpop.permute.xlu1 %157  }
  0xb5   :  { %154 = vst.msk [vmem:[#allocation0] sm:$0x1] %vm153_vm9, %v152_v58  }
  0xb6   :  { %160 = vst.msk [vmem:[#allocation0] sm:$0x1] %vm159_vm10, %v158_v59  }
  0xb7   :  { %166 = vst.msk [vmem:[#allocation0] sm:$0x1] %vm165_vm11, %v164_v52  }
  0xbc   :  { %v170_v60 = vpop.permute.xlu0 %169   ;;  %v176_v61 = vpop.permute.xlu1 %175  }
  0xbd   :  { %172 = vst.msk [vmem:[#allocation0] sm:$0x1] %vm171_vm12, %v170_v60  }
  0xbe   :  { %178 = vst.msk [vmem:[#allocation0] sm:$0x1] %vm177_vm13, %v176_v61  }
  0xbf   :  { %184 = vst.msk [vmem:[#allocation0] sm:$0x1] %vm183_vm14, %v182_v55  }
  0xc4   :  { %v188_v62 = vpop.permute.xlu0 %187  }
  0xc5   :  { %190 = vst.msk [vmem:[#allocation0] sm:$0x1] %vm189_vm15, %v188_v62  }
  0xcc   :  { %v193_v63 = vld [vmem:[#allocation0] sm:$0x1] }
  0xcd   :  { %196 = vst [vmem:[%s400_s1] sm:$0x1] %v193_v63 }

// kernel: mul.1
= control target key start
LH: loop header
LB: loop body
LE: loop exit
PB: predicated region body
PF: predicated region fallthrough
CT: control target
= control target key end

     0   :  { %s1420_s0 = inlined_call_operand.vmem [shape: f32[1,8192], index: 0, kind: input, shape index: {}]   ;;  %s1421_s1 = inlined_call_operand.vmem [shape: f32[1,8192], index: 1, kind: input, shape index: {}]   ;;  %s1422_s2 = inlined_call_operand.vmem [shape: f32[1,8192], index: 2, kind: output, shape index: {}]  }
   0x1   :  { %v3_v0 = vld [vmem:[%s1420_s0] sm:$0x1]  ;;  %v640_v2 = vld [vmem:[%s1420_s0 + $0x1] sm:$0x1]  ;;  %v643_v5 = vld [vmem:[%s1420_s0 + $0x2] sm:$0x1] }
   0x2   :  { %v4_v1 = vld [vmem:[%s1421_s1] sm:$0x1]  ;;  %v641_v4 = vld [vmem:[%s1421_s1 + $0x1] sm:$0x1]  ;;  %v644_v6 = vld [vmem:[%s1421_s1 + $0x2] sm:$0x1] }
   0x3   :  { %v7_v3 = vmul.f32 %v4_v1, %v3_v0  ;;  %v16_v7 = vmul.f32 %v641_v4, %v640_v2  ;;  %v26_v8 = vmul.f32 %v644_v6, %v643_v5  ;;  %v646_v9 = vld [vmem:[%s1420_s0 + $0x3] sm:$0x1]  ;;  %v649_v11 = vld [vmem:[%s1420_s0 + $0x4] sm:$0x1]  ;;  %v652_v14 = vld [vmem:[%s1420_s0 + $0x5] sm:$0x1] }
   0x4   :  { %v647_v10 = vld [vmem:[%s1421_s1 + $0x3] sm:$0x1]  ;;  %v650_v13 = vld [vmem:[%s1421_s1 + $0x4] sm:$0x1]  ;;  %v653_v16 = vld [vmem:[%s1421_s1 + $0x5] sm:$0x1] }
   0x5   :  { %9 = vst [vmem:[%s1422_s2] sm:$0x1] %v7_v3  ;;  %v36_v12 = vmul.f32 %v647_v10, %v646_v9  ;;  %v46_v15 = vmul.f32 %v650_v13, %v649_v11  ;;  %v655_v17 = vld [vmem:[%s1420_s0 + $0x6] sm:$0x1]  ;;  %v56_v18 = vmul.f32 %v653_v16, %v652_v14  ;;  %v658_v20 = vld [vmem:[%s1420_s0 + $0x7] sm:$0x1] }
   0x6   :  { %642 = vst [vmem:[%s1422_s2 + $0x1] sm:$0x1] %v16_v7  ;;  %v656_v19 = vld [vmem:[%s1421_s1 + $0x6] sm:$0x1]  ;;  %v659_v22 = vld [vmem:[%s1421_s1 + $0x7] sm:$0x1] }
   0x7   :  { %645 = vst [vmem:[%s1422_s2 + $0x2] sm:$0x1] %v26_v8  ;;  %v66_v21 = vmul.f32 %v656_v19, %v655_v17  ;;  %v661_v23 = vld [vmem:[%s1420_s0 + $0x8] sm:$0x1]  ;;  %v76_v24 = vmul.f32 %v659_v22, %v658_v20  ;;  %v664_v26 = vld [vmem:[%s1420_s0 + $0x9] sm:$0x1] }
   0x8   :  { %648 = vst [vmem:[%s1422_s2 + $0x3] sm:$0x1] %v36_v12  ;;  %v662_v25 = vld [vmem:[%s1421_s1 + $0x8] sm:$0x1]  ;;  %v665_v28 = vld [vmem:[%s1421_s1 + $0x9] sm:$0x1] }
   0x9   :  { %651 = vst [vmem:[%s1422_s2 + $0x4] sm:$0x1] %v46_v15  ;;  %v86_v27 = vmul.f32 %v662_v25, %v661_v23  ;;  %v667_v29 = vld [vmem:[%s1420_s0 + $0xa] sm:$0x1]  ;;  %v96_v30 = vmul.f32 %v665_v28, %v664_v26  ;;  %v670_v32 = vld [vmem:[%s1420_s0 + $0xb] sm:$0x1] }
   0xa   :  { %654 = vst [vmem:[%s1422_s2 + $0x5] sm:$0x1] %v56_v18  ;;  %v668_v31 = vld [vmem:[%s1421_s1 + $0xa] sm:$0x1]  ;;  %v671_v34 = vld [vmem:[%s1421_s1 + $0xb] sm:$0x1] }
   0xb   :  { %657 = vst [vmem:[%s1422_s2 + $0x6] sm:$0x1] %v66_v21  ;;  %v106_v33 = vmul.f32 %v668_v31, %v667_v29  ;;  %v673_v35 = vld [vmem:[%s1420_s0 + $0xc] sm:$0x1]  ;;  %v116_v36 = vmul.f32 %v671_v34, %v670_v32  ;;  %v676_v38 = vld [vmem:[%s1420_s0 + $0xd] sm:$0x1] }
   0xc   :  { %660 = vst [vmem:[%s1422_s2 + $0x7] sm:$0x1] %v76_v24  ;;  %v674_v37 = vld [vmem:[%s1421_s1 + $0xc] sm:$0x1]  ;;  %v677_v40 = vld [vmem:[%s1421_s1 + $0xd] sm:$0x1] }
   0xd   :  { %663 = vst [vmem:[%s1422_s2 + $0x8] sm:$0x1] %v86_v27  ;;  %v126_v39 = vmul.f32 %v674_v37, %v673_v35  ;;  %v679_v41 = vld [vmem:[%s1420_s0 + $0xe] sm:$0x1]  ;;  %v136_v42 = vmul.f32 %v677_v40, %v676_v38  ;;  %v682_v44 = vld [vmem:[%s1420_s0 + $0xf] sm:$0x1] }
   0xe   :  { %666 = vst [vmem:[%s1422_s2 + $0x9] sm:$0x1] %v96_v30  ;;  %v680_v43 = vld [vmem:[%s1421_s1 + $0xe] sm:$0x1]  ;;  %v683_v46 = vld [vmem:[%s1421_s1 + $0xf] sm:$0x1] }
   0xf   :  { %669 = vst [vmem:[%s1422_s2 + $0xa] sm:$0x1] %v106_v33  ;;  %v146_v45 = vmul.f32 %v680_v43, %v679_v41  ;;  %v685_v47 = vld [vmem:[%s1420_s0 + $0x10] sm:$0x1]  ;;  %v156_v48 = vmul.f32 %v683_v46, %v682_v44  ;;  %v688_v50 = vld [vmem:[%s1420_s0 + $0x11] sm:$0x1] }
  0x10   :  { %672 = vst [vmem:[%s1422_s2 + $0xb] sm:$0x1] %v116_v36  ;;  %v686_v49 = vld [vmem:[%s1421_s1 + $0x10] sm:$0x1]  ;;  %v689_v52 = vld [vmem:[%s1421_s1 + $0x11] sm:$0x1] }
  0x11   :  { %675 = vst [vmem:[%s1422_s2 + $0xc] sm:$0x1] %v126_v39  ;;  %v166_v51 = vmul.f32 %v686_v49, %v685_v47  ;;  %v691_v53 = vld [vmem:[%s1420_s0 + $0x12] sm:$0x1]  ;;  %v176_v54 = vmul.f32 %v689_v52, %v688_v50  ;;  %v694_v56 = vld [vmem:[%s1420_s0 + $0x13] sm:$0x1] }
  0x12   :  { %678 = vst [vmem:[%s1422_s2 + $0xd] sm:$0x1] %v136_v42  ;;  %v692_v55 = vld [vmem:[%s1421_s1 + $0x12] sm:$0x1]  ;;  %v695_v58 = vld [vmem:[%s1421_s1 + $0x13] sm:$0x1] }
  0x13   :  { %681 = vst [vmem:[%s1422_s2 + $0xe] sm:$0x1] %v146_v45  ;;  %v186_v57 = vmul.f32 %v692_v55, %v691_v53  ;;  %v697_v59 = vld [vmem:[%s1420_s0 + $0x14] sm:$0x1]  ;;  %v196_v60 = vmul.f32 %v695_v58, %v694_v56  ;;  %v700_v62 = vld [vmem:[%s1420_s0 + $0x15] sm:$0x1] }
  0x14   :  { %684 = vst [vmem:[%s1422_s2 + $0xf] sm:$0x1] %v156_v48  ;;  %v698_v61 = vld [vmem:[%s1421_s1 + $0x14] sm:$0x1]  ;;  %v701_v0 = vld [vmem:[%s1421_s1 + $0x15] sm:$0x1] }
  0x15   :  { %687 = vst [vmem:[%s1422_s2 + $0x10] sm:$0x1] %v166_v51  ;;  %v206_v63 = vmul.f32 %v698_v61, %v697_v59  ;;  %v703_v1 = vld [vmem:[%s1420_s0 + $0x16] sm:$0x1]  ;;  %v216_v2 = vmul.f32 %v701_v0, %v700_v62  ;;  %v706_v4 = vld [vmem:[%s1420_s0 + $0x17] sm:$0x1] }
  0x16   :  { %690 = vst [vmem:[%s1422_s2 + $0x11] sm:$0x1] %v176_v54  ;;  %v704_v3 = vld [vmem:[%s1421_s1 + $0x16] sm:$0x1]  ;;  %v707_v6 = vld [vmem:[%s1421_s1 + $0x17] sm:$0x1] }
  0x17   :  { %693 = vst [vmem:[%s1422_s2 + $0x12] sm:$0x1] %v186_v57  ;;  %v226_v5 = vmul.f32 %v704_v3, %v703_v1  ;;  %v709_v7 = vld [vmem:[%s1420_s0 + $0x18] sm:$0x1]  ;;  %v236_v8 = vmul.f32 %v707_v6, %v706_v4  ;;  %v712_v10 = vld [vmem:[%s1420_s0 + $0x19] sm:$0x1] }
  0x18   :  { %696 = vst [vmem:[%s1422_s2 + $0x13] sm:$0x1] %v196_v60  ;;  %v710_v9 = vld [vmem:[%s1421_s1 + $0x18] sm:$0x1]  ;;  %v713_v12 = vld [vmem:[%s1421_s1 + $0x19] sm:$0x1] }
  0x19   :  { %699 = vst [vmem:[%s1422_s2 + $0x14] sm:$0x1] %v206_v63  ;;  %v246_v11 = vmul.f32 %v710_v9, %v709_v7  ;;  %v715_v13 = vld [vmem:[%s1420_s0 + $0x1a] sm:$0x1]  ;;  %v256_v14 = vmul.f32 %v713_v12, %v712_v10  ;;  %v718_v16 = vld [vmem:[%s1420_s0 + $0x1b] sm:$0x1] }
  0x1a   :  { %702 = vst [vmem:[%s1422_s2 + $0x15] sm:$0x1] %v216_v2  ;;  %v716_v15 = vld [vmem:[%s1421_s1 + $0x1a] sm:$0x1]  ;;  %v719_v18 = vld [vmem:[%s1421_s1 + $0x1b] sm:$0x1] }
  0x1b   :  { %705 = vst [vmem:[%s1422_s2 + $0x16] sm:$0x1] %v226_v5  ;;  %v266_v17 = vmul.f32 %v716_v15, %v715_v13  ;;  %v721_v19 = vld [vmem:[%s1420_s0 + $0x1c] sm:$0x1]  ;;  %v276_v20 = vmul.f32 %v719_v18, %v718_v16  ;;  %v724_v22 = vld [vmem:[%s1420_s0 + $0x1d] sm:$0x1] }
  0x1c   :  { %708 = vst [vmem:[%s1422_s2 + $0x17] sm:$0x1] %v236_v8  ;;  %v722_v21 = vld [vmem:[%s1421_s1 + $0x1c] sm:$0x1]  ;;  %v725_v24 = vld [vmem:[%s1421_s1 + $0x1d] sm:$0x1] }
  0x1d   :  { %711 = vst [vmem:[%s1422_s2 + $0x18] sm:$0x1] %v246_v11  ;;  %v286_v23 = vmul.f32 %v722_v21, %v721_v19  ;;  %v727_v25 = vld [vmem:[%s1420_s0 + $0x1e] sm:$0x1]  ;;  %v296_v26 = vmul.f32 %v725_v24, %v724_v22  ;;  %v730_v28 = vld [vmem:[%s1420_s0 + $0x1f] sm:$0x1] }
  0x1e   :  { %714 = vst [vmem:[%s1422_s2 + $0x19] sm:$0x1] %v256_v14  ;;  %v728_v27 = vld [vmem:[%s1421_s1 + $0x1e] sm:$0x1]  ;;  %v731_v30 = vld [vmem:[%s1421_s1 + $0x1f] sm:$0x1] }
  0x1f   :  { %717 = vst [vmem:[%s1422_s2 + $0x1a] sm:$0x1] %v266_v17  ;;  %v306_v29 = vmul.f32 %v728_v27, %v727_v25  ;;  %v733_v31 = vld [vmem:[%s1420_s0 + $0x20] sm:$0x1]  ;;  %v316_v32 = vmul.f32 %v731_v30, %v730_v28  ;;  %v736_v34 = vld [vmem:[%s1420_s0 + $0x21] sm:$0x1] }
  0x20   :  { %720 = vst [vmem:[%s1422_s2 + $0x1b] sm:$0x1] %v276_v20  ;;  %v734_v33 = vld [vmem:[%s1421_s1 + $0x20] sm:$0x1]  ;;  %v737_v36 = vld [vmem:[%s1421_s1 + $0x21] sm:$0x1] }
  0x21   :  { %723 = vst [vmem:[%s1422_s2 + $0x1c] sm:$0x1] %v286_v23  ;;  %v326_v35 = vmul.f32 %v734_v33, %v733_v31  ;;  %v739_v37 = vld [vmem:[%s1420_s0 + $0x22] sm:$0x1]  ;;  %v336_v38 = vmul.f32 %v737_v36, %v736_v34  ;;  %v742_v40 = vld [vmem:[%s1420_s0 + $0x23] sm:$0x1] }
  0x22   :  { %726 = vst [vmem:[%s1422_s2 + $0x1d] sm:$0x1] %v296_v26  ;;  %v740_v39 = vld [vmem:[%s1421_s1 + $0x22] sm:$0x1]  ;;  %v743_v42 = vld [vmem:[%s1421_s1 + $0x23] sm:$0x1] }
  0x23   :  { %729 = vst [vmem:[%s1422_s2 + $0x1e] sm:$0x1] %v306_v29  ;;  %v346_v41 = vmul.f32 %v740_v39, %v739_v37  ;;  %v745_v43 = vld [vmem:[%s1420_s0 + $0x24] sm:$0x1]  ;;  %v356_v44 = vmul.f32 %v743_v42, %v742_v40  ;;  %v748_v46 = vld [vmem:[%s1420_s0 + $0x25] sm:$0x1] }
  0x24   :  { %732 = vst [vmem:[%s1422_s2 + $0x1f] sm:$0x1] %v316_v32  ;;  %v746_v45 = vld [vmem:[%s1421_s1 + $0x24] sm:$0x1]  ;;  %v749_v48 = vld [vmem:[%s1421_s1 + $0x25] sm:$0x1] }
  0x25   :  { %735 = vst [vmem:[%s1422_s2 + $0x20] sm:$0x1] %v326_v35  ;;  %v366_v47 = vmul.f32 %v746_v45, %v745_v43  ;;  %v751_v49 = vld [vmem:[%s1420_s0 + $0x26] sm:$0x1]  ;;  %v376_v50 = vmul.f32 %v749_v48, %v748_v46  ;;  %v754_v52 = vld [vmem:[%s1420_s0 + $0x27] sm:$0x1] }
  0x26   :  { %738 = vst [vmem:[%s1422_s2 + $0x21] sm:$0x1] %v336_v38  ;;  %v752_v51 = vld [vmem:[%s1421_s1 + $0x26] sm:$0x1]  ;;  %v755_v54 = vld [vmem:[%s1421_s1 + $0x27] sm:$0x1] }
  0x27   :  { %741 = vst [vmem:[%s1422_s2 + $0x22] sm:$0x1] %v346_v41  ;;  %v386_v53 = vmul.f32 %v752_v51, %v751_v49  ;;  %v757_v55 = vld [vmem:[%s1420_s0 + $0x28] sm:$0x1]  ;;  %v396_v56 = vmul.f32 %v755_v54, %v754_v52  ;;  %v760_v58 = vld [vmem:[%s1420_s0 + $0x29] sm:$0x1] }
  0x28   :  { %744 = vst [vmem:[%s1422_s2 + $0x23] sm:$0x1] %v356_v44  ;;  %v758_v57 = vld [vmem:[%s1421_s1 + $0x28] sm:$0x1]  ;;  %v761_v60 = vld [vmem:[%s1421_s1 + $0x29] sm:$0x1] }
  0x29   :  { %747 = vst [vmem:[%s1422_s2 + $0x24] sm:$0x1] %v366_v47  ;;  %v406_v59 = vmul.f32 %v758_v57, %v757_v55  ;;  %v763_v61 = vld [vmem:[%s1420_s0 + $0x2a] sm:$0x1]  ;;  %v416_v62 = vmul.f32 %v761_v60, %v760_v58  ;;  %v766_v0 = vld [vmem:[%s1420_s0 + $0x2b] sm:$0x1] }
  0x2a   :  { %750 = vst [vmem:[%s1422_s2 + $0x25] sm:$0x1] %v376_v50  ;;  %v764_v63 = vld [vmem:[%s1421_s1 + $0x2a] sm:$0x1]  ;;  %v767_v2 = vld [vmem:[%s1421_s1 + $0x2b] sm:$0x1] }
  0x2b   :  { %753 = vst [vmem:[%s1422_s2 + $0x26] sm:$0x1] %v386_v53  ;;  %v426_v1 = vmul.f32 %v764_v63, %v763_v61  ;;  %v769_v3 = vld [vmem:[%s1420_s0 + $0x2c] sm:$0x1]  ;;  %v436_v4 = vmul.f32 %v767_v2, %v766_v0  ;;  %v772_v6 = vld [vmem:[%s1420_s0 + $0x2d] sm:$0x1] }
  0x2c   :  { %756 = vst [vmem:[%s1422_s2 + $0x27] sm:$0x1] %v396_v56  ;;  %v770_v5 = vld [vmem:[%s1421_s1 + $0x2c] sm:$0x1]  ;;  %v773_v8 = vld [vmem:[%s1421_s1 + $0x2d] sm:$0x1] }
  0x2d   :  { %759 = vst [vmem:[%s1422_s2 + $0x28] sm:$0x1] %v406_v59  ;;  %v446_v7 = vmul.f32 %v770_v5, %v769_v3  ;;  %v775_v9 = vld [vmem:[%s1420_s0 + $0x2e] sm:$0x1]  ;;  %v456_v10 = vmul.f32 %v773_v8, %v772_v6  ;;  %v778_v12 = vld [vmem:[%s1420_s0 + $0x2f] sm:$0x1] }
  0x2e   :  { %762 = vst [vmem:[%s1422_s2 + $0x29] sm:$0x1] %v416_v62  ;;  %v776_v11 = vld [vmem:[%s1421_s1 + $0x2e] sm:$0x1]  ;;  %v779_v14 = vld [vmem:[%s1421_s1 + $0x2f] sm:$0x1] }
  0x2f   :  { %765 = vst [vmem:[%s1422_s2 + $0x2a] sm:$0x1] %v426_v1  ;;  %v466_v13 = vmul.f32 %v776_v11, %v775_v9  ;;  %v781_v15 = vld [vmem:[%s1420_s0 + $0x30] sm:$0x1]  ;;  %v476_v16 = vmul.f32 %v779_v14, %v778_v12  ;;  %v784_v18 = vld [vmem:[%s1420_s0 + $0x31] sm:$0x1] }
  0x30   :  { %768 = vst [vmem:[%s1422_s2 + $0x2b] sm:$0x1] %v436_v4  ;;  %v782_v17 = vld [vmem:[%s1421_s1 + $0x30] sm:$0x1]  ;;  %v785_v20 = vld [vmem:[%s1421_s1 + $0x31] sm:$0x1] }
  0x31   :  { %771 = vst [vmem:[%s1422_s2 + $0x2c] sm:$0x1] %v446_v7  ;;  %v486_v19 = vmul.f32 %v782_v17, %v781_v15  ;;  %v787_v21 = vld [vmem:[%s1420_s0 + $0x32] sm:$0x1]  ;;  %v496_v22 = vmul.f32 %v785_v20, %v784_v18  ;;  %v790_v24 = vld [vmem:[%s1420_s0 + $0x33] sm:$0x1] }
  0x32   :  { %774 = vst [vmem:[%s1422_s2 + $0x2d] sm:$0x1] %v456_v10  ;;  %v788_v23 = vld [vmem:[%s1421_s1 + $0x32] sm:$0x1]  ;;  %v791_v26 = vld [vmem:[%s1421_s1 + $0x33] sm:$0x1] }
  0x33   :  { %777 = vst [vmem:[%s1422_s2 + $0x2e] sm:$0x1] %v466_v13  ;;  %v506_v25 = vmul.f32 %v788_v23, %v787_v21  ;;  %v793_v27 = vld [vmem:[%s1420_s0 + $0x34] sm:$0x1]  ;;  %v516_v28 = vmul.f32 %v791_v26, %v790_v24  ;;  %v796_v30 = vld [vmem:[%s1420_s0 + $0x35] sm:$0x1] }
  0x34   :  { %780 = vst [vmem:[%s1422_s2 + $0x2f] sm:$0x1] %v476_v16  ;;  %v794_v29 = vld [vmem:[%s1421_s1 + $0x34] sm:$0x1]  ;;  %v797_v32 = vld [vmem:[%s1421_s1 + $0x35] sm:$0x1] }
  0x35   :  { %783 = vst [vmem:[%s1422_s2 + $0x30] sm:$0x1] %v486_v19  ;;  %v526_v31 = vmul.f32 %v794_v29, %v793_v27  ;;  %v799_v33 = vld [vmem:[%s1420_s0 + $0x36] sm:$0x1]  ;;  %v536_v34 = vmul.f32 %v797_v32, %v796_v30  ;;  %v802_v36 = vld [vmem:[%s1420_s0 + $0x37] sm:$0x1] }
  0x36   :  { %786 = vst [vmem:[%s1422_s2 + $0x31] sm:$0x1] %v496_v22  ;;  %v800_v35 = vld [vmem:[%s1421_s1 + $0x36] sm:$0x1]  ;;  %v803_v38 = vld [vmem:[%s1421_s1 + $0x37] sm:$0x1] }
  0x37   :  { %789 = vst [vmem:[%s1422_s2 + $0x32] sm:$0x1] %v506_v25  ;;  %v546_v37 = vmul.f32 %v800_v35, %v799_v33  ;;  %v805_v39 = vld [vmem:[%s1420_s0 + $0x38] sm:$0x1]  ;;  %v556_v40 = vmul.f32 %v803_v38, %v802_v36  ;;  %v808_v42 = vld [vmem:[%s1420_s0 + $0x39] sm:$0x1] }
  0x38   :  { %792 = vst [vmem:[%s1422_s2 + $0x33] sm:$0x1] %v516_v28  ;;  %v806_v41 = vld [vmem:[%s1421_s1 + $0x38] sm:$0x1]  ;;  %v809_v44 = vld [vmem:[%s1421_s1 + $0x39] sm:$0x1] }
  0x39   :  { %795 = vst [vmem:[%s1422_s2 + $0x34] sm:$0x1] %v526_v31  ;;  %v566_v43 = vmul.f32 %v806_v41, %v805_v39  ;;  %v811_v45 = vld [vmem:[%s1420_s0 + $0x3a] sm:$0x1]  ;;  %v576_v46 = vmul.f32 %v809_v44, %v808_v42  ;;  %v814_v48 = vld [vmem:[%s1420_s0 + $0x3b] sm:$0x1] }
  0x3a   :  { %798 = vst [vmem:[%s1422_s2 + $0x35] sm:$0x1] %v536_v34  ;;  %v812_v47 = vld [vmem:[%s1421_s1 + $0x3a] sm:$0x1]  ;;  %v815_v50 = vld [vmem:[%s1421_s1 + $0x3b] sm:$0x1] }
  0x3b   :  { %801 = vst [vmem:[%s1422_s2 + $0x36] sm:$0x1] %v546_v37  ;;  %v586_v49 = vmul.f32 %v812_v47, %v811_v45  ;;  %v817_v51 = vld [vmem:[%s1420_s0 + $0x3c] sm:$0x1]  ;;  %v596_v52 = vmul.f32 %v815_v50, %v814_v48  ;;  %v820_v54 = vld [vmem:[%s1420_s0 + $0x3d] sm:$0x1] }
  0x3c   :  { %804 = vst [vmem:[%s1422_s2 + $0x37] sm:$0x1] %v556_v40  ;;  %v818_v53 = vld [vmem:[%s1421_s1 + $0x3c] sm:$0x1]  ;;  %v821_v56 = vld [vmem:[%s1421_s1 + $0x3d] sm:$0x1] }
  0x3d   :  { %807 = vst [vmem:[%s1422_s2 + $0x38] sm:$0x1] %v566_v43  ;;  %v606_v55 = vmul.f32 %v818_v53, %v817_v51  ;;  %v823_v57 = vld [vmem:[%s1420_s0 + $0x3e] sm:$0x1]  ;;  %v616_v58 = vmul.f32 %v821_v56, %v820_v54  ;;  %v826_v60 = vld [vmem:[%s1420_s0 + $0x3f] sm:$0x1] }
  0x3e   :  { %810 = vst [vmem:[%s1422_s2 + $0x39] sm:$0x1] %v576_v46  ;;  %v824_v59 = vld [vmem:[%s1421_s1 + $0x3e] sm:$0x1]  ;;  %v827_v62 = vld [vmem:[%s1421_s1 + $0x3f] sm:$0x1] }
  0x3f   :  { %813 = vst [vmem:[%s1422_s2 + $0x3a] sm:$0x1] %v586_v49  ;;  %v626_v61 = vmul.f32 %v824_v59, %v823_v57  ;;  %v636_v63 = vmul.f32 %v827_v62, %v826_v60 }
  0x40   :  { %816 = vst [vmem:[%s1422_s2 + $0x3b] sm:$0x1] %v596_v52 }
  0x41   :  { %819 = vst [vmem:[%s1422_s2 + $0x3c] sm:$0x1] %v606_v55 }
  0x42   :  { %822 = vst [vmem:[%s1422_s2 + $0x3d] sm:$0x1] %v616_v58 }
  0x43   :  { %825 = vst [vmem:[%s1422_s2 + $0x3e] sm:$0x1] %v626_v61 }
  0x44   :  { %828 = vst [vmem:[%s1422_s2 + $0x3f] sm:$0x1] %v636_v63 }

// kernel: rope_pallas.1
= control target key start
LH: loop header
LB: loop body
LE: loop exit
PB: predicated region body
PF: predicated region fallthrough
CT: control target
= control target key end

     0   :  { %s2855_s22 = smov 127   ;;  %s2856_s27 = smov 1   ;;  %s7326_s2 = inlined_call_operand.vmem [shape: f32[8,8192], index: 2, kind: input, shape index: {}]   ;;  %s7327_s0 = inlined_call_operand.vmem [shape: f32[1,8192], index: 0, kind: input, shape index: {}]   ;;  %s7328_s1 = inlined_call_operand.vmem [shape: f32[1,8192], index: 1, kind: input, shape index: {}]   ;;  %s7329_s4 = inlined_call_operand.vmem [shape: f32[8,8192], index: 4, kind: output, shape index: {0}]   ;;  %s7330_s3 = inlined_call_operand.vmem [shape: f32[8,8192], index: 3, kind: input, shape index: {}]   ;;  %s7331_s5 = inlined_call_operand.vmem [shape: f32[8,8192], index: 5, kind: output, shape index: {1}]  }
   0x1   :  { %v2890_v0 = vld [vmem:[%s7326_s2 + $0x20] sm:$0xff]  ;;  %v2895_v1 = vld [vmem:[%s7326_s2 + $0x10] sm:$0xff]  ;;  %v2911_v3 = vld [vmem:[%s7326_s2 + $0x28] sm:$0xff] }
   0x2   :  { %940 = vrot.lane.b32.xlu2 %v2890_v0, %s2855_s22  ;;  %936 = vrot.lane.b32.xlu1 %v2895_v1, %s2855_s22  ;;  %v2904_v2 = vld [vmem:[%s7326_s2] sm:$0xff]  ;;  %v2916_v4 = vld [vmem:[%s7326_s2 + $0x18] sm:$0xff] }
   0x3   :  { %932 = vrot.lane.b32.xlu0 %v2904_v2, %s2855_s22  ;;  %v2921_v5 = vld [vmem:[%s7326_s2 + $0x8] sm:$0xff]  ;;  %v2932_v6 = vld [vmem:[%s7326_s2 + $0x40] sm:$0xff]  ;;  %v2937_v7 = vld [vmem:[%s7326_s2 + $0x38] sm:$0xff] }
   0x4   :  { %v2942_v8 = vld [vmem:[%s7326_s2 + $0x30] sm:$0xff]  ;;  %v2953_v9 = vld [vmem:[%s7326_s2 + $0x58] sm:$0xff]  ;;  %v2963_v11 = vld [vmem:[%s7326_s2 + $0x48] sm:$0xff] }
   0x5   :  { %v2958_v10 = vld [vmem:[%s7326_s2 + $0x50] sm:$0xff]  ;;  %v2979_v13 = vld [vmem:[%s7326_s2 + $0x68] sm:$0xff]  ;;  %v2984_v14 = vld [vmem:[%s7326_s2 + $0x60] sm:$0xff] }
   0x6   :  { %v2974_v12 = vld [vmem:[%s7326_s2 + $0x70] sm:$0xff]  ;;  %v2995_v15 = vld [vmem:[%s7326_s2 + $0x88] sm:$0xff]  ;;  %v3000_v16 = vld [vmem:[%s7326_s2 + $0x80] sm:$0xff] }
   0x7   :  { %v3005_v17 = vld [vmem:[%s7326_s2 + $0x78] sm:$0xff]  ;;  %v3016_v18 = vld [vmem:[%s7326_s2 + $0xa0] sm:$0xff]  ;;  %v3026_v20 = vld [vmem:[%s7326_s2 + $0x90] sm:$0xff] }
   0x8   :  { %v3021_v19 = vld [vmem:[%s7326_s2 + $0x98] sm:$0xff]  ;;  %v3042_v22 = vld [vmem:[%s7326_s2 + $0xb0] sm:$0xff]  ;;  %v3047_v23 = vld [vmem:[%s7326_s2 + $0xa8] sm:$0xff] }
   0x9   :  { %v3037_v21 = vld [vmem:[%s7326_s2 + $0xb8] sm:$0xff]  ;;  %v3058_v24 = vld [vmem:[%s7326_s2 + $0xd0] sm:$0xff]  ;;  %v3063_v25 = vld [vmem:[%s7326_s2 + $0xc8] sm:$0xff] }
   0xa   :  { %942 = vrot.lane.b32.xlu2 %v2911_v3, %s2855_s22  ;;  %938 = vrot.lane.b32.xlu1 %v2916_v4, %s2855_s22  ;;  %v3068_v26 = vld [vmem:[%s7326_s2 + $0xc0] sm:$0xff]  ;;  %v3079_v27 = vld [vmem:[%s7326_s2 + $0xe8] sm:$0xff] }
   0xb   :  { %934 = vrot.lane.b32.xlu0 %v2921_v5, %s2855_s22  ;;  %7616 = vst [vmem:[#allocation2_spill] sm:$0xff] %v3068_v26  ;;  %v3084_v28 = vld [vmem:[%s7326_s2 + $0xe0] sm:$0xff]  ;;  %v3089_v29 = vld [vmem:[%s7326_s2 + $0xd8] sm:$0xff]  ;;  %v3110_v32 = vld [vmem:[%s7326_s2 + $0xf0] sm:$0xff] }
   0xc   :  { %7617 = vst [vmem:[#allocation3_spill] sm:$0xff] %v3079_v27  ;;  %v3100_v30 = vld [vmem:[%s7326_s2 + $0x100] sm:$0xff]  ;;  %v3105_v31 = vld [vmem:[%s7326_s2 + $0xf8] sm:$0xff]  ;;  %v3126_v34 = vld [vmem:[%s7326_s2 + $0x110] sm:$0xff] }
   0xd   :  { %7618 = vst [vmem:[#allocation4_spill] sm:$0xff] %v3084_v28  ;;  %v3121_v33 = vld [vmem:[%s7326_s2 + $0x118] sm:$0xff]  ;;  %v3131_v35 = vld [vmem:[%s7326_s2 + $0x108] sm:$0xff]  ;;  %v3144_v37 = vld [vmem:[%s7326_s2 + $0x130] sm:$0xff] }
   0xe   :  { %v3149_v38 = vld [vmem:[%s7326_s2 + $0x128] sm:$0xff]  ;;  %v3154_v39 = vld [vmem:[%s7326_s2 + $0x120] sm:$0xff]  ;;  %v3177_v43 = vld [vmem:[%s7326_s2 + $0x138] sm:$0xff] }
   0xf   :  { %v3167_v41 = vld [vmem:[%s7326_s2 + $0x148] sm:$0xff]  ;;  %v3172_v42 = vld [vmem:[%s7326_s2 + $0x140] sm:$0xff]  ;;  %v3195_v46 = vld [vmem:[%s7326_s2 + $0x158] sm:$0xff] }
  0x10   :  { %v3190_v45 = vld [vmem:[%s7326_s2 + $0x160] sm:$0xff]  ;;  %v3200_v47 = vld [vmem:[%s7326_s2 + $0x150] sm:$0xff]  ;;  %v3217_v51 = vld [vmem:[%s7326_s2 + $0x178] sm:$0xff] }
  0x11   :  { %v3222_v52 = vld [vmem:[%s7326_s2 + $0x170] sm:$0xff]  ;;  %v3227_v53 = vld [vmem:[%s7326_s2 + $0x168] sm:$0xff]  ;;  %v3254_v59 = vld [vmem:[%s7326_s2 + $0x180] sm:$0xff] }
  0x12   :  { %948 = vrot.lane.b32.xlu2 %v2932_v6, %s2855_s22  ;;  %946 = vrot.lane.b32.xlu1 %v2937_v7, %s2855_s22  ;;  %v3244_v57 = vld [vmem:[%s7326_s2 + $0x190] sm:$0xff]  ;;  %v3249_v58 = vld [vmem:[%s7326_s2 + $0x188] sm:$0xff] }
  0x13   :  { %944 = vrot.lane.b32.xlu0 %v2942_v8, %s2855_s22  ;;  %7623 = vst [vmem:[#allocation9_spill] sm:$0xff] %v3244_v57  ;;  %v3271_v63 = vld [vmem:[%s7326_s2 + $0x1a8] sm:$0xff] }
  0x14   :  { %7626 = vst [vmem:[#allocation12_spill] sm:$0xff] %v3271_v63 }
  0x1a   :  { %954 = vrot.lane.b32.xlu2 %v2953_v9, %s2855_s22  ;;  %952 = vrot.lane.b32.xlu1 %v2958_v10, %s2855_s22 }
  0x1b   :  { %950 = vrot.lane.b32.xlu0 %v2963_v11, %s2855_s22 }
  0x22   :  { %960 = vrot.lane.b32.xlu2 %v2974_v12, %s2855_s22  ;;  %958 = vrot.lane.b32.xlu1 %v2979_v13, %s2855_s22 }
  0x23   :  { %956 = vrot.lane.b32.xlu0 %v2984_v14, %s2855_s22 }
  0x2a   :  { %966 = vrot.lane.b32.xlu2 %v2995_v15, %s2855_s22  ;;  %964 = vrot.lane.b32.xlu1 %v3000_v16, %s2855_s22 }
  0x2b   :  { %962 = vrot.lane.b32.xlu0 %v3005_v17, %s2855_s22 }
  0x32   :  { %972 = vrot.lane.b32.xlu2 %v3016_v18, %s2855_s22  ;;  %970 = vrot.lane.b32.xlu1 %v3021_v19, %s2855_s22 }
  0x33   :  { %968 = vrot.lane.b32.xlu0 %v3026_v20, %s2855_s22 }
  0x3a   :  { %978 = vrot.lane.b32.xlu2 %v3037_v21, %s2855_s22  ;;  %976 = vrot.lane.b32.xlu1 %v3042_v22, %s2855_s22 }
  0x3b   :  { %974 = vrot.lane.b32.xlu0 %v3047_v23, %s2855_s22 }
  0x42   :  { %984 = vrot.lane.b32.xlu2 %v3058_v24, %s2855_s22  ;;  %982 = vrot.lane.b32.xlu1 %v3063_v25, %s2855_s22 }
  0x43   :  { %980 = vrot.lane.b32.xlu0 %v3068_v26, %s2855_s22 }
  0x4a   :  { %990 = vrot.lane.b32.xlu2 %v3079_v27, %s2855_s22  ;;  %988 = vrot.lane.b32.xlu1 %v3084_v28, %s2855_s22 }
  0x4b   :  { %986 = vrot.lane.b32.xlu0 %v3089_v29, %s2855_s22 }
  0x52   :  { %996 = vrot.lane.b32.xlu2 %v3100_v30, %s2855_s22  ;;  %994 = vrot.lane.b32.xlu1 %v3105_v31, %s2855_s22 }
  0x53   :  { %992 = vrot.lane.b32.xlu0 %v3110_v32, %s2855_s22 }
  0x5a   :  { %1002 = vrot.lane.b32.xlu2 %v3121_v33, %s2855_s22  ;;  %1000 = vrot.lane.b32.xlu1 %v3126_v34, %s2855_s22 }
  0x5b   :  { %998 = vrot.lane.b32.xlu0 %v3131_v35, %s2855_s22 }
  0x5c   :  { %v3139_v36 = vpop.permute.xlu2 %940 }
  0x62   :  { %1008 = vrot.lane.b32.xlu2 %v3144_v37, %s2855_s22  ;;  %1006 = vrot.lane.b32.xlu1 %v3149_v38, %s2855_s22 }
  0x63   :  { %1004 = vrot.lane.b32.xlu0 %v3154_v39, %s2855_s22 }
  0x64   :  { %v3162_v40 = vpop.permute.xlu2 %942 }
  0x6a   :  { %1014 = vrot.lane.b32.xlu2 %v3167_v41, %s2855_s22  ;;  %1012 = vrot.lane.b32.xlu1 %v3172_v42, %s2855_s22 }
  0x6b   :  { %1010 = vrot.lane.b32.xlu0 %v3177_v43, %s2855_s22 }
  0x6c   :  { %v3185_v44 = vpop.permute.xlu2 %948 }
  0x72   :  { %1020 = vrot.lane.b32.xlu2 %v3190_v45, %s2855_s22  ;;  %1018 = vrot.lane.b32.xlu1 %v3195_v46, %s2855_s22 }
  0x73   :  { %1016 = vrot.lane.b32.xlu0 %v3200_v47, %s2855_s22 }
  0x74   :  { %v3208_v48 = vpop.permute.xlu2 %954  ;;  %v3210_v49 = vpop.permute.xlu1 %936 }
  0x75   :  { %7619 = vst [vmem:[#allocation5_spill] sm:$0xff] %v3208_v48  ;;  %v3212_v50 = vpop.permute.xlu0 %932 }
  0x76   :  { %7620 = vst [vmem:[#allocation6_spill] sm:$0xff] %v3212_v50  ;;  %v3276_v50 = vld [vmem:[%s7326_s2 + $0x1a0] sm:$0xff] }
  0x77   :  { %7627 = vst [vmem:[#allocation13_spill] sm:$0xff] %v3276_v50 }
  0x7a   :  { %1026 = vrot.lane.b32.xlu2 %v3217_v51, %s2855_s22  ;;  %1024 = vrot.lane.b32.xlu1 %v3222_v52, %s2855_s22 }
  0x7b   :  { %1022 = vrot.lane.b32.xlu0 %v3227_v53, %s2855_s22 }
  0x7c   :  { %v3235_v54 = vpop.permute.xlu2 %960  ;;  %v3237_v55 = vpop.permute.xlu1 %938 }
  0x7d   :  { %7621 = vst [vmem:[#allocation7_spill] sm:$0xff] %v3235_v54  ;;  %v3239_v56 = vpop.permute.xlu0 %934  ;;  %v3281_v54 = vld [vmem:[%s7326_s2 + $0x198] sm:$0xff] }
  0x7e   :  { %7622 = vst [vmem:[#allocation8_spill] sm:$0xff] %v3239_v56 }
  0x7f   :  { %7628 = vst [vmem:[#allocation14_spill] sm:$0xff] %v3281_v54 }
  0x82   :  { %1032 = vrot.lane.b32.xlu2 %v3244_v57, %s2855_s22  ;;  %1030 = vrot.lane.b32.xlu1 %v3249_v58, %s2855_s22 }
  0x83   :  { %1028 = vrot.lane.b32.xlu0 %v3254_v59, %s2855_s22 }
  0x84   :  { %v3262_v60 = vpop.permute.xlu2 %966  ;;  %v3264_v61 = vpop.permute.xlu1 %946 }
  0x85   :  { %7624 = vst [vmem:[#allocation10_spill] sm:$0xff] %v3262_v60  ;;  %v3266_v62 = vpop.permute.xlu0 %944 }
  0x86   :  { %7625 = vst [vmem:[#allocation11_spill] sm:$0xff] %v3266_v62  ;;  %v3298_v62 = vld [vmem:[%s7326_s2 + $0x1c0] sm:$0xff] }
  0x87   :  { %7632 = vst [vmem:[#allocation18_spill] sm:$0xff] %v3298_v62 }
  0x8a   :  { %1038 = vrot.lane.b32.xlu2 %v3271_v63, %s2855_s22  ;;  %1036 = vrot.lane.b32.xlu1 %v3276_v50, %s2855_s22  ;;  %v3303_v63 = vld [vmem:[%s7326_s2 + $0x1b8] sm:$0xff] }
  0x8b   :  { %1034 = vrot.lane.b32.xlu0 %v3281_v54, %s2855_s22  ;;  %7633 = vst [vmem:[#allocation19_spill] sm:$0xff] %v3303_v63  ;;  %v3308_v54 = vld [vmem:[%s7326_s2 + $0x1b0] sm:$0xff]  ;;  %v3325_v50 = vld [vmem:[%s7326_s2 + $0x1d8] sm:$0xff] }
  0x8c   :  { %v3289_v60 = vpop.permute.xlu2 %972  ;;  %v3291_v48 = vpop.permute.xlu1 %952  ;;  %7634 = vst [vmem:[#allocation20_spill] sm:$0xff] %v3308_v54 }
  0x8d   :  { %7629 = vst [vmem:[#allocation15_spill] sm:$0xff] %v3289_v60  ;;  %v3293_v57 = vpop.permute.xlu0 %950 }
  0x8e   :  { %7630 = vst [vmem:[#allocation16_spill] sm:$0xff] %v3291_v48 }
  0x8f   :  { %7631 = vst [vmem:[#allocation17_spill] sm:$0xff] %v3293_v57 }
  0x90   :  { %7638 = vst [vmem:[#allocation24_spill] sm:$0xff] %v3325_v50 }
  0x92   :  { %1044 = vrot.lane.b32.xlu2 %v3298_v62, %s2855_s22  ;;  %1042 = vrot.lane.b32.xlu1 %v3303_v63, %s2855_s22  ;;  %v3330_v62 = vld [vmem:[%s7326_s2 + $0x1d0] sm:$0xff] }
  0x93   :  { %1040 = vrot.lane.b32.xlu0 %v3308_v54, %s2855_s22  ;;  %7639 = vst [vmem:[#allocation25_spill] sm:$0xff] %v3330_v62  ;;  %v3335_v54 = vld [vmem:[%s7326_s2 + $0x1c8] sm:$0xff]  ;;  %v3352_v63 = vld [vmem:[%s7326_s2 + $0x1f0] sm:$0xff] }
  0x94   :  { %v3316_v60 = vpop.permute.xlu2 %978  ;;  %v3318_v57 = vpop.permute.xlu1 %958  ;;  %7640 = vst [vmem:[#allocation26_spill] sm:$0xff] %v3335_v54 }
  0x95   :  { %7635 = vst [vmem:[#allocation21_spill] sm:$0xff] %v3316_v60  ;;  %v3320_v48 = vpop.permute.xlu0 %956 }
  0x96   :  { %7636 = vst [vmem:[#allocation22_spill] sm:$0xff] %v3318_v57 }
  0x97   :  { %7637 = vst [vmem:[#allocation23_spill] sm:$0xff] %v3320_v48 }
  0x98   :  { %7644 = vst [vmem:[#allocation30_spill] sm:$0xff] %v3352_v63 }
  0x9a   :  { %1050 = vrot.lane.b32.xlu2 %v3325_v50, %s2855_s22  ;;  %1048 = vrot.lane.b32.xlu1 %v3330_v62, %s2855_s22  ;;  %v3357_v50 = vld [vmem:[%s7326_s2 + $0x1e8] sm:$0xff]  ;;  %v3379_v62 = vld [vmem:[%s7326_s2 + $0x1f8] sm:$0xff] }
  0x9b   :  { %1046 = vrot.lane.b32.xlu0 %v3335_v54, %s2855_s22  ;;  %v3362_v54 = vld [vmem:[%s7326_s2 + $0x1e0] sm:$0xff]  ;;  %7648 = vst [vmem:[#allocation34_spill] sm:$0xff] %v3379_v62 }
  0x9c   :  { %v3343_v60 = vpop.permute.xlu2 %984  ;;  %v3345_v48 = vpop.permute.xlu1 %964 }
  0x9d   :  { %7641 = vst [vmem:[#allocation27_spill] sm:$0xff] %v3343_v60  ;;  %v3347_v57 = vpop.permute.xlu0 %962 }
  0x9e   :  { %7642 = vst [vmem:[#allocation28_spill] sm:$0xff] %v3345_v48 }
  0x9f   :  { %7643 = vst [vmem:[#allocation29_spill] sm:$0xff] %v3347_v57 }
  0xa2   :  { %1056 = vrot.lane.b32.xlu2 %v3352_v63, %s2855_s22  ;;  %1054 = vrot.lane.b32.xlu1 %v3357_v50, %s2855_s22 }
  0xa3   :  { %1052 = vrot.lane.b32.xlu0 %v3362_v54, %s2855_s22 }
  0xa4   :  { %v3370_v60 = vpop.permute.xlu2 %990  ;;  %v3372_v57 = vpop.permute.xlu1 %970 }
  0xa5   :  { %7645 = vst [vmem:[#allocation31_spill] sm:$0xff] %v3370_v60  ;;  %v3374_v48 = vpop.permute.xlu0 %968 }
  0xa6   :  { %7646 = vst [vmem:[#allocation32_spill] sm:$0xff] %v3372_v57 }
  0xa7   :  { %7647 = vst [vmem:[#allocation33_spill] sm:$0xff] %v3374_v48 }
  0xaa   :  { %1127 = vrot.lane.b32.xlu2 %v2921_v5, %s2856_s27  ;;  %1125 = vrot.lane.b32.xlu1 %v2904_v2, %s2856_s27 }
  0xab   :  { %1058 = vrot.lane.b32.xlu0 %v3379_v62, %s2855_s22 }
  0xac   :  { %v3387_v60 = vpop.permute.xlu2 %996  ;;  %v3389_v63 = vpop.permute.xlu1 %976 }
  0xad   :  { %7649 = vst [vmem:[#allocation35_spill] sm:$0xff] %v3387_v60  ;;  %v3391_v48 = vpop.permute.xlu0 %974 }
  0xae   :  { %7650 = vst [vmem:[#allocation36_spill] sm:$0xff] %v3389_v63 }
  0xaf   :  { %7651 = vst [vmem:[#allocation37_spill] sm:$0xff] %v3391_v48 }
  0xb2   :  { %1133 = vrot.lane.b32.xlu2 %v2890_v0, %s2856_s27  ;;  %1131 = vrot.lane.b32.xlu1 %v2916_v4, %s2856_s27 }
  0xb3   :  { %1129 = vrot.lane.b32.xlu0 %v2895_v1, %s2856_s27 }
  0xb4   :  { %v3399_v57 = vpop.permute.xlu2 %1002  ;;  %v3401_v2 = vpop.permute.xlu1 %982 }
  0xb5   :  { %7652 = vst [vmem:[#allocation38_spill] sm:$0xff] %v3399_v57  ;;  %v3403_v62 = vpop.permute.xlu0 %980 }
  0xb6   :  { %7653 = vst [vmem:[#allocation39_spill] sm:$0xff] %v3401_v2 }
  0xb7   :  { %7654 = vst [vmem:[#allocation40_spill] sm:$0xff] %v3403_v62 }
  0xba   :  { %1139 = vrot.lane.b32.xlu2 %v2937_v7, %s2856_s27  ;;  %1137 = vrot.lane.b32.xlu1 %v2942_v8, %s2856_s27 }
  0xbb   :  { %1135 = vrot.lane.b32.xlu0 %v2911_v3, %s2856_s27 }
  0xbc   :  { %v3411_v60 = vpop.permute.xlu2 %1008  ;;  %v3413_v48 = vpop.permute.xlu1 %988 }
  0xbd   :  { %7655 = vst [vmem:[#allocation41_spill] sm:$0xff] %v3411_v60  ;;  %v3415_v63 = vpop.permute.xlu0 %986 }
  0xbe   :  { %7656 = vst [vmem:[#allocation42_spill] sm:$0xff] %v3413_v48 }
  0xbf   :  { %7657 = vst [vmem:[#allocation43_spill] sm:$0xff] %v3415_v63 }
  0xc2   :  { %1145 = vrot.lane.b32.xlu2 %v2958_v10, %s2856_s27  ;;  %1143 = vrot.lane.b32.xlu1 %v2963_v11, %s2856_s27 }
  0xc3   :  { %1141 = vrot.lane.b32.xlu0 %v2932_v6, %s2856_s27 }
  0xc4   :  { %v3423_v57 = vpop.permute.xlu2 %1014  ;;  %v3425_v62 = vpop.permute.xlu1 %994 }
  0xc5   :  { %7658 = vst [vmem:[#allocation44_spill] sm:$0xff] %v3423_v57  ;;  %v3427_v2 = vpop.permute.xlu0 %992 }
  0xc6   :  { %7659 = vst [vmem:[#allocation45_spill] sm:$0xff] %v3425_v62 }
  0xc7   :  { %7660 = vst [vmem:[#allocation46_spill] sm:$0xff] %v3427_v2 }
  0xca   :  { %1151 = vrot.lane.b32.xlu2 %v2979_v13, %s2856_s27  ;;  %1149 = vrot.lane.b32.xlu1 %v2984_v14, %s2856_s27 }
  0xcb   :  { %1147 = vrot.lane.b32.xlu0 %v2953_v9, %s2856_s27 }
  0xcc   :  { %v3435_v60 = vpop.permute.xlu2 %1020  ;;  %v3437_v63 = vpop.permute.xlu1 %1000 }
  0xcd   :  { %7661 = vst [vmem:[#allocation47_spill] sm:$0xff] %v3435_v60  ;;  %v3439_v48 = vpop.permute.xlu0 %998 }
  0xce   :  { %7662 = vst [vmem:[#allocation48_spill] sm:$0xff] %v3437_v63 }
  0xcf   :  { %7663 = vst [vmem:[#allocation49_spill] sm:$0xff] %v3439_v48 }
  0xd2   :  { %1157 = vrot.lane.b32.xlu2 %v3000_v16, %s2856_s27  ;;  %1155 = vrot.lane.b32.xlu1 %v3005_v17, %s2856_s27 }
  0xd3   :  { %1153 = vrot.lane.b32.xlu0 %v2974_v12, %s2856_s27 }
  0xd4   :  { %v3447_v57 = vpop.permute.xlu2 %1026  ;;  %v3449_v2 = vpop.permute.xlu1 %1006 }
  0xd5   :  { %7664 = vst [vmem:[#allocation50_spill] sm:$0xff] %v3447_v57  ;;  %v3451_v62 = vpop.permute.xlu0 %1004 }
  0xd6   :  { %7665 = vst [vmem:[#allocation51_spill] sm:$0xff] %v3449_v2 }
  0xd7   :  { %7666 = vst [vmem:[#allocation52_spill] sm:$0xff] %v3451_v62 }
  0xda   :  { %1163 = vrot.lane.b32.xlu2 %v3021_v19, %s2856_s27  ;;  %1161 = vrot.lane.b32.xlu1 %v3026_v20, %s2856_s27 }
  0xdb   :  { %1159 = vrot.lane.b32.xlu0 %v2995_v15, %s2856_s27 }
  0xdc   :  { %v3459_v60 = vpop.permute.xlu2 %1032  ;;  %v3461_v48 = vpop.permute.xlu1 %1012 }
  0xdd   :  { %7667 = vst [vmem:[#allocation53_spill] sm:$0xff] %v3459_v60  ;;  %v3463_v63 = vpop.permute.xlu0 %1010 }
  0xde   :  { %7668 = vst [vmem:[#allocation54_spill] sm:$0xff] %v3461_v48 }
  0xdf   :  { %7669 = vst [vmem:[#allocation55_spill] sm:$0xff] %v3463_v63 }
  0xe2   :  { %1169 = vrot.lane.b32.xlu2 %v3042_v22, %s2856_s27  ;;  %1167 = vrot.lane.b32.xlu1 %v3047_v23, %s2856_s27 }
  0xe3   :  { %1165 = vrot.lane.b32.xlu0 %v3016_v18, %s2856_s27 }
  0xe4   :  { %v3471_v57 = vpop.permute.xlu2 %1038  ;;  %v3473_v62 = vpop.permute.xlu1 %1018 }
  0xe5   :  { %7670 = vst [vmem:[#allocation56_spill] sm:$0xff] %v3471_v57  ;;  %v3475_v2 = vpop.permute.xlu0 %1016 }
  0xe6   :  { %7671 = vst [vmem:[#allocation57_spill] sm:$0xff] %v3473_v62 }
  0xe7   :  { %7672 = vst [vmem:[#allocation58_spill] sm:$0xff] %v3475_v2 }
  0xea   :  { %1175 = vrot.lane.b32.xlu2 %v3063_v25, %s2856_s27  ;;  %1173 = vrot.lane.b32.xlu1 %v3068_v26, %s2856_s27 }
  0xeb   :  { %1171 = vrot.lane.b32.xlu0 %v3037_v21, %s2856_s27 }
  0xec   :  { %v3483_v60 = vpop.permute.xlu2 %1044  ;;  %v3485_v63 = vpop.permute.xlu1 %1024 }
  0xed   :  { %7673 = vst [vmem:[#allocation59_spill] sm:$0xff] %v3483_v60  ;;  %v3487_v48 = vpop.permute.xlu0 %1022 }
  0xee   :  { %7674 = vst [vmem:[#allocation60_spill] sm:$0xff] %v3485_v63 }
  0xef   :  { %7675 = vst [vmem:[#allocation61_spill] sm:$0xff] %v3487_v48 }
  0xf2   :  { %1181 = vrot.lane.b32.xlu2 %v3084_v28, %s2856_s27  ;;  %1179 = vrot.lane.b32.xlu1 %v3089_v29, %s2856_s27 }
  0xf3   :  { %1177 = vrot.lane.b32.xlu0 %v3058_v24, %s2856_s27 }
  0xf4   :  { %v3495_v57 = vpop.permute.xlu2 %1050  ;;  %v3497_v2 = vpop.permute.xlu1 %1030 }
  0xf5   :  { %7676 = vst [vmem:[#allocation62_spill] sm:$0xff] %v3495_v57  ;;  %v3499_v62 = vpop.permute.xlu0 %1028 }
  0xf6   :  { %7677 = vst [vmem:[#allocation63_spill] sm:$0xff] %v3497_v2 }
  0xf7   :  { %7678 = vst [vmem:[#allocation64_spill] sm:$0xff] %v3499_v62 }
  0xfa   :  { %1187 = vrot.lane.b32.xlu2 %v3105_v31, %s2856_s27  ;;  %1185 = vrot.lane.b32.xlu1 %v3110_v32, %s2856_s27 }
  0xfb   :  { %1183 = vrot.lane.b32.xlu0 %v3079_v27, %s2856_s27 }
  0xfc   :  { %v3507_v60 = vpop.permute.xlu2 %1056  ;;  %v3509_v29 = vpop.permute.xlu1 %1036 }
  0xfd   :  { %7679 = vst [vmem:[#allocation65_spill] sm:$0xff] %v3507_v60  ;;  %v3511_v48 = vpop.permute.xlu0 %1034 }
  0xfe   :  { %7680 = vst [vmem:[#allocation66_spill] sm:$0xff] %v3509_v29 }
  0xff   :  { %7681 = vst [vmem:[#allocation67_spill] sm:$0xff] %v3511_v48  ;;  %v3564_v48 = vld [vmem:[%s7328_s1] sm:$0xff] }
 0x102   :  { %1193 = vrot.lane.b32.xlu2 %v3126_v34, %s2856_s27  ;;  %1191 = vrot.lane.b32.xlu1 %v3131_v35, %s2856_s27 }
 0x103   :  { %1189 = vrot.lane.b32.xlu0 %v3100_v30, %s2856_s27  ;;  %v35_v30 = vlaneseq }
 0x104   :  { %v3519_v31 = vpop.permute.xlu1 %1042  ;;  %v3521_v32 = vpop.permute.xlu2 %1127 }
 0x105   :  { %7682 = vst [vmem:[#allocation68_spill] sm:$0xff] %v3519_v31  ;;  %v3523_v57 = vpop.permute.xlu0 %1040  ;;  %v3537_v31 = vand.u32 127, %v35_v30 }
 0x106   :  { %7683 = vst [vmem:[#allocation69_spill] sm:$0xff] %v3523_v57 }
 0x107   :  { %vm7420_vm0 = vcmp.lt.s32.totalorder %v3537_v31, 127  ;;  %vm7419_vm1 = vcmp.lt.s32.totalorder %v3537_v31, 1 }
 0x108   :  { %v1122_v2 = vsel %vm7420_vm0, %v3239_v56, %v3210_v49 }
 0x10a   :  { %1199 = vrot.lane.b32.xlu2 %v3149_v38, %s2856_s27  ;;  %1197 = vrot.lane.b32.xlu1 %v3154_v39, %s2856_s27  ;;  %v3549_v38 = vld [vmem:[%s7327_s0] sm:$0xff] }
 0x10b   :  { %1195 = vrot.lane.b32.xlu0 %v3121_v33, %s2856_s27  ;;  %v37_v33 = vadd.s32 128, %v3537_v31  ;;  %v7688_v57 = vperm.slane %v3549_v38, 2  ;;  %v7696_v56 = vperm.slane %v3549_v38, 7 }
 0x10c   :  { %v3531_v34 = vpop.permute.xlu1 %1048  ;;  %v3533_v35 = vpop.permute.xlu2 %1133 }
 0x10d   :  { %7684 = vst [vmem:[#allocation70_spill] sm:$0xff] %v3531_v34  ;;  %v3535_v60 = vpop.permute.xlu0 %1046  ;;  %v3581_v34 = vmul.f32 %v7688_v57, %v2895_v1  ;;  %v38_v57 = vadd.s32 256, %v3537_v31  ;;  %v3635_v28 = vmul.f32 %v7696_v56, %v2937_v7 }
 0x10e   :  { %7685 = vst [vmem:[#allocation71_spill] sm:$0xff] %v3535_v60  ;;  %v7398_v60 = vperm.slane %v3549_v38, 4 }
 0x10f   :  { %v118_v26 = vand.u32 1, %v38_v57  ;;  %v3664_v57 = vld [vmem:[%s7327_s0 + $0x10] sm:$0xff] }
 0x110   :  { %7702 = vst [vmem:[#allocation76_spill] sm:$0xff] %v3664_v57 }
 0x111   :  { %vm3692_vm4 = vcmp.eq.s32.totalorder %v118_v26, 0  ;;  %v1119_v26 = vsel %vm7420_vm0, %v3139_v36, %v3162_v40 }
 0x112   :  { %1205 = vrot.lane.b32.xlu2 %v3172_v42, %s2856_s27  ;;  %1203 = vrot.lane.b32.xlu1 %v3177_v43, %s2856_s27  ;;  %v3575_v43 = vld [vmem:[%s7327_s0 + $0x8] sm:$0xff] }
 0x113   :  { %1201 = vrot.lane.b32.xlu0 %v3144_v37, %s2856_s27  ;;  %v111_v37 = vand.u32 1, %v37_v33  ;;  %v7700_v56 = vperm.slane %v3575_v43, 3 }
 0x114   :  { %v3551_v39 = vpop.permute.xlu1 %1054  ;;  %v3553_v30 = vpop.permute.xlu2 %1139 }
 0x115   :  { %7686 = vst [vmem:[#allocation72_spill] sm:$0xff] %v3551_v39  ;;  %v3556_v42 = vpop.permute.xlu0 %1052  ;;  %v3569_v39 = vmul.f32 %v7398_v60, %v2890_v0  ;;  %vm3596_vm2 = vcmp.eq.s32.totalorder %v111_v37, 0  ;;  %v39_v37 = vadd.s32 384, %v3537_v31  ;;  %v7695_v60 = vperm.slane %v3549_v38, 3 }
 0x116   :  { %7687 = vst [vmem:[#allocation73_spill] sm:$0xff] %v3556_v42  ;;  %v7689_v42 = vperm.slane %v3549_v38, 5 }
 0x118   :  { %v3586_v62 = vmul.f32 %v7689_v42, %v2911_v3  ;;  %v40_v3 = vadd.s32 512, %v3537_v31 }
 0x11a   :  { %1211 = vrot.lane.b32.xlu2 %v3195_v46, %s2856_s27  ;;  %1209 = vrot.lane.b32.xlu1 %v3200_v47, %s2856_s27  ;;  %v7692_v46 = vperm.slane %v3549_v38, 1  ;;  %v1585_v47 = vmul.f32 %v7695_v60, %v2916_v4  ;;  %v7698_v4 = vperm.slane %v3575_v43, 0 }
 0x11b   :  { %1207 = vrot.lane.b32.xlu0 %v3167_v41, %s2856_s27 }
 0x11c   :  { %v1583_v42 = vmul.f32 %v7692_v46, %v2921_v5  ;;  %v3608_v33 = vpop.permute.xlu2 %1145  ;;  %v3610_v41 = vpop.permute.xlu1 %1125  ;;  %v3642_v60 = vmul.f32 %v7698_v4, %v2932_v6 }
 0x11d   :  { %7693 = vst [vmem:[#allocation74_spill] sm:$0xff] %v3610_v41  ;;  %v1316_v5 = vsel %vm7419_vm1, %v3610_v41, %v3521_v32  ;;  %v3623_v46 = vpop.permute.xlu0 %1058  ;;  %v7697_v41 = vperm.slane %v3564_v48, 1 }
 0x11e   :  { %7694 = vst [vmem:[#allocation75_spill] sm:$0xff] %v3623_v46  ;;  %v1383_v63 = vsel %vm3596_vm2, %v1122_v2, %v1316_v5  ;;  %v132_v46 = vand.u32 1, %v40_v3  ;;  %v125_v2 = vand.u32 1, %v39_v37  ;;  %v7699_v5 = vperm.slane %v3549_v38, 6 }
 0x11f   :  { %v1783_v27 = vmul.f32 %v7697_v41, %v1383_v63  ;;  %v3654_v63 = vmul.f32 %v7700_v56, %v2953_v9  ;;  %v7701_v3 = vperm.slane %v3575_v43, 2  ;;  %v7704_v9 = vperm.slane %v3575_v43, 6 }
 0x120   :  { %v3649_v7 = vmul.f32 %v7699_v5, %v2942_v8  ;;  %v7703_v8 = vperm.slane %v3575_v43, 1  ;;  %vm3687_vm3 = vcmp.eq.s32.totalorder %v132_v46, 0  ;;  %vm3699_vm5 = vcmp.eq.s32.totalorder %v125_v2, 0 }
 0x121   :  { %v3659_v6 = vmul.f32 %v7701_v3, %v2958_v10  ;;  %v1847_v41 = vadd.f32 %v1783_v27, %v1583_v42  ;;  %v3674_v4 = vmul.f32 %v7704_v9, %v2974_v12  ;;  %v43_v10 = vadd.s32 896, %v3537_v31 }
 0x122   :  { %v3669_v37 = vmul.f32 %v7703_v8, %v2963_v11  ;;  %1217 = vrot.lane.b32.xlu2 %v3222_v52, %s2856_s27  ;;  %1215 = vrot.lane.b32.xlu1 %v3227_v53, %s2856_s27  ;;  %v7705_v11 = vmov 0  ;;  %v7412_v12 = vperm.slane %v3564_v48, 4  ;;  %v41_v52 = vadd.s32 640, %v3537_v31 }
 0x123   :  { %1911 = vst [vmem:[%s7329_s4 + $0x8] sm:$0xff] %v1847_v41  ;;  %1213 = vrot.lane.b32.xlu0 %v3190_v45, %s2856_s27  ;;  %v7706_v11 = vsel %vm3687_vm3, 4294967295, %v7705_v11  ;;  %v42_v3 = vadd.s32 768, %v3537_v31  ;;  %v1120_v41 = vsel %vm7420_vm0, %v3237_v55, %v3139_v36  ;;  %v1121_v2 = vsel %vm7420_vm0, %v3210_v49, %v3237_v55 }
 0x124   :  { %7707 = vst [vmem:[#allocation77_spill] sm:$0xff] %v7706_v11  ;;  %v3697_v53 = vpop.permute.xlu2 %1151  ;;  %v1132_v42 = vpop.permute.xlu1 %1131  ;;  %v153_v46 = vand.u32 1, %v43_v10  ;;  %v139_v29 = vand.u32 1, %v41_v52  ;;  %v7409_v52 = vperm.slane %v3575_v43, 7 }
 0x125   :  { %v1313_v8 = vsel %vm7419_vm1, %v1132_v42, %v3533_v35  ;;  %v1130_v9 = vpop.permute.xlu0 %1129 }
 0x126   :  { %v1386_v5 = vsel %vm3687_vm3, %v1119_v26, %v1313_v8  ;;  %v1314_v1 = vsel %vm7419_vm1, %v1130_v9, %v1132_v42  ;;  %v1315_v36 = vsel %vm7419_vm1, %v3521_v32, %v1130_v9  ;;  %v7712_v26 = vperm.slane %v3575_v43, 5 }
 0x127   :  { %v1786_v45 = vmul.f32 %v7412_v12, %v1386_v5  ;;  %v1384_v49 = vsel %vm3692_vm4, %v1121_v2, %v1315_v36  ;;  %v1385_v55 = vsel %vm3699_vm5, %v1120_v41, %v1314_v1  ;;  %v7713_v42 = vperm.slane %v3564_v48, 2 }
 0x128   :  { %v3737_v8 = vmul.f32 %v7712_v26, %v2979_v13  ;;  %v7714_v32 = vperm.slane %v3564_v48, 3  ;;  %v146_v9 = vand.u32 1, %v42_v3  ;;  %v7715_v5 = vperm.slane %v3575_v43, 4  ;;  %v7725_v3 = vld [vmem:[#allocation11_spill] sm:$0xff] }
 0x129   :  { %v1784_v11 = vmul.f32 %v7713_v42, %v1384_v49  ;;  %v7408_v1 = vperm.slane %v3664_v57, 0  ;;  %v1850_v41 = vadd.f32 %v1786_v45, %v3569_v39  ;;  %v7716_v13 = vperm.slane %v3664_v57, 1 }
 0x12a   :  { %v1785_v10 = vmul.f32 %v7714_v32, %v1385_v55  ;;  %v3746_v2 = vmul.f32 %v7715_v5, %v2984_v14  ;;  %1223 = vrot.lane.b32.xlu2 %v3249_v58, %s2856_s27  ;;  %1221 = vrot.lane.b32.xlu1 %v3254_v59, %s2856_s27  ;;  %v46_v14 = vadd.s32 1280, %v3537_v31  ;;  %vm3767_vm6 = vcmp.eq.s32.totalorder %v153_v46, 0 }
 0x12b   :  { %v3754_v36 = vmul.f32 %v7716_v13, %v2995_v15  ;;  %v1848_v49 = vadd.f32 %v1784_v11, %v3581_v34  ;;  %1914 = vst [vmem:[%s7329_s4 + $0x20] sm:$0xff] %v1850_v41  ;;  %1219 = vrot.lane.b32.xlu0 %v3217_v51, %s2856_s27  ;;  %v7717_v15 = vmov 0  ;;  %v7410_v34 = vperm.slane %v3564_v48, 7 }
 0x12c   :  { %v1849_v55 = vadd.f32 %v1785_v10, %v1585_v47  ;;  %v7718_v15 = vsel %vm3767_vm6, 4294967295, %v7717_v15  ;;  %vm3772_vm7 = vcmp.eq.s32.totalorder %v139_v29, 0  ;;  %v44_v59 = vadd.s32 1024, %v3537_v31  ;;  %v3780_v39 = vpop.permute.xlu2 %1157  ;;  %v1138_v47 = vpop.permute.xlu1 %1137 }
 0x12d   :  { %7719 = vst [vmem:[#allocation78_spill] sm:$0xff] %v7718_v15  ;;  %vm3782_vm8 = vcmp.eq.s32.totalorder %v146_v9, 0  ;;  %v7722_v51 = vmov 0  ;;  %v7413_v11 = vperm.slane %v3564_v48, 5  ;;  %v7411_v29 = vperm.slane %v3564_v48, 6  ;;  %v1136_v10 = vpop.permute.xlu0 %1135 }
 0x12e   :  { %1912 = vst [vmem:[%s7329_s4 + $0x10] sm:$0xff] %v1848_v49  ;;  %v7723_v51 = vsel %vm3782_vm8, 4294967295, %v7722_v51  ;;  %v45_v45 = vadd.s32 1152, %v3537_v31  ;;  %v1116_v46 = vsel %vm7420_vm0, %v3264_v61, %v3185_v44  ;;  %v1117_v26 = vsel %vm7420_vm0, %v7725_v3, %v3264_v61 }
 0x12f   :  { %7724 = vst [vmem:[#allocation79_spill] sm:$0xff] %v7723_v51  ;;  %v1118_v42 = vsel %vm7420_vm0, %v3162_v40, %v7725_v3  ;;  %v1310_v32 = vsel %vm7419_vm1, %v1138_v47, %v3553_v30  ;;  %v1311_v61 = vsel %vm7419_vm1, %v1136_v10, %v1138_v47  ;;  %v1312_v5 = vsel %vm7419_vm1, %v3533_v35, %v1136_v10 }
 0x130   :  { %1913 = vst [vmem:[%s7329_s4 + $0x18] sm:$0xff] %v1849_v55  ;;  %v1389_v9 = vsel %vm3767_vm6, %v1116_v46, %v1310_v32  ;;  %v174_v40 = vand.u32 1, %v46_v14  ;;  %v1387_v13 = vsel %vm3772_vm7, %v1118_v42, %v1312_v5  ;;  %v1388_v49 = vsel %vm3782_vm8, %v1117_v26, %v1311_v61  ;;  %v3832_v14 = vld [vmem:[%s7328_s1 + $0x8] sm:$0xff]  ;;  %v7727_v61 = vld [vmem:[#allocation13_spill] sm:$0xff] }
 0x131   :  { %v1789_v41 = vmul.f32 %v7410_v34, %v1389_v9  ;;  %v160_v55 = vand.u32 1, %v44_v59  ;;  %v3823_v46 = vmul.f32 %v7408_v1, %v3000_v16  ;;  %v1787_v47 = vmul.f32 %v7413_v11, %v1387_v13  ;;  %7726 = vst [vmem:[#allocation11_spill] sm:$0xff] %v3832_v14 }
 0x132   :  { %v1788_v35 = vmul.f32 %v7411_v29, %v1388_v49  ;;  %v167_v3 = vand.u32 1, %v45_v45  ;;  %v3837_v59 = vmul.f32 %v7409_v52, %v3005_v17  ;;  %v7415_v16 = vperm.slane %v3664_v57, 4  ;;  %1229 = vrot.lane.b32.xlu2 %v7727_v61, %s2856_s27  ;;  %v7728_v45 = vld [vmem:[#allocation14_spill] sm:$0xff]  ;;  %v7740_v61 = vld [vmem:[#allocation16_spill] sm:$0xff] }
 0x133   :  { %v7414_v26 = vperm.slane %v3664_v57, 3  ;;  %v1853_v42 = vadd.f32 %v1789_v41, %v3635_v28  ;;  %v7427_v32 = vperm.slane %v3664_v57, 2  ;;  %v1851_v10 = vadd.f32 %v1787_v47, %v3586_v62  ;;  %1227 = vrot.lane.b32.xlu1 %v7728_v45, %s2856_s27  ;;  %v7729_v28 = vld [vmem:[#allocation9_spill] sm:$0xff] }
 0x134   :  { %v1852_v9 = vadd.f32 %v1788_v35, %v3649_v7  ;;  %v49_v17 = vadd.s32 1664, %v3537_v31  ;;  %1225 = vrot.lane.b32.xlu0 %v7729_v28, %s2856_s27  ;;  %vm3855_vm9 = vcmp.eq.s32.totalorder %v174_v40, 0  ;;  %v7730_v5 = vmov 0  ;;  %v3868_v13 = vpop.permute.xlu2 %1163  ;;  %v1144_v49 = vpop.permute.xlu1 %1143 }
 0x135   :  { %1917 = vst [vmem:[%s7329_s4 + $0x38] sm:$0xff] %v1853_v42  ;;  %v7731_v5 = vsel %vm3855_vm9, 4294967295, %v7730_v5  ;;  %v7416_v62 = vperm.slane %v3832_v14, 2  ;;  %vm3860_vm10 = vcmp.eq.s32.totalorder %v160_v55, 0  ;;  %v7733_v7 = vmov 0  ;;  %v7739_v42 = vld [vmem:[#allocation5_spill] sm:$0xff]  ;;  %v1142_v52 = vpop.permute.xlu0 %1141 }
 0x136   :  { %7732 = vst [vmem:[#allocation13_spill] sm:$0xff] %v7731_v5  ;;  %v7734_v7 = vsel %vm3860_vm10, 4294967295, %v7733_v7  ;;  %v47_v41 = vadd.s32 1408, %v3537_v31  ;;  %vm3870_vm11 = vcmp.eq.s32.totalorder %v167_v3, 0  ;;  %v7736_v40 = vmov 0 }
 0x137   :  { %7735 = vst [vmem:[#allocation14_spill] sm:$0xff] %v7734_v7  ;;  %v7737_v40 = vsel %vm3870_vm11, 4294967295, %v7736_v40  ;;  %v7418_v47 = vperm.slane %v3832_v14, 0  ;;  %v7417_v55 = vperm.slane %v3832_v14, 1  ;;  %v48_v35 = vadd.s32 1536, %v3537_v31 }
 0x138   :  { %1915 = vst [vmem:[%s7329_s4 + $0x28] sm:$0xff] %v1851_v10  ;;  %v1113_v45 = vsel %vm7420_vm0, %v7740_v61, %v7739_v42  ;;  %v7741_v10 = vld [vmem:[#allocation17_spill] sm:$0xff]  ;;  %v1307_v1 = vsel %vm7419_vm1, %v1144_v49, %v3608_v33  ;;  %v1309_v29 = vsel %vm7419_vm1, %v3553_v30, %v1142_v52  ;;  %v181_v11 = vand.u32 1, %v47_v41 }
 0x139   :  { %7738 = vst [vmem:[#allocation9_spill] sm:$0xff] %v7737_v40  ;;  %v1114_v28 = vsel %vm7420_vm0, %v7741_v10, %v7740_v61  ;;  %v1115_v3 = vsel %vm7420_vm0, %v3185_v44, %v7741_v10  ;;  %v1392_v34 = vsel %vm3855_vm9, %v1113_v45, %v1307_v1  ;;  %v1308_v61 = vsel %vm7419_vm1, %v1142_v52, %v1144_v49 }
 0x13a   :  { %1916 = vst [vmem:[%s7329_s4 + $0x30] sm:$0xff] %v1852_v9  ;;  %v195_v44 = vand.u32 1, %v49_v17  ;;  %v1792_v10 = vmul.f32 %v7416_v62, %v1392_v34  ;;  %v1390_v9 = vsel %vm3860_vm10, %v1115_v3, %v1309_v29  ;;  %v1391_v12 = vsel %vm3870_vm11, %v1114_v28, %v1308_v61 }
 0x13b   :  { %v3911_v1 = vmul.f32 %v7415_v16, %v3016_v18  ;;  %v1790_v49 = vmul.f32 %v7418_v47, %v1390_v9  ;;  %v1791_v30 = vmul.f32 %v7417_v55, %v1391_v12  ;;  %v188_v52 = vand.u32 1, %v48_v35  ;;  %v7742_v12 = vld [vmem:[#allocation19_spill] sm:$0xff]  ;;  %v7743_v35 = vld [vmem:[#allocation20_spill] sm:$0xff] }
 0x13c   :  { %v3920_v34 = vmul.f32 %v7414_v26, %v3021_v19  ;;  %v7426_v29 = vperm.slane %v3664_v57, 7  ;;  %v7425_v17 = vperm.slane %v3664_v57, 6  ;;  %v1856_v41 = vadd.f32 %v1792_v10, %v3659_v6  ;;  %1235 = vrot.lane.b32.xlu2 %v7742_v12, %s2856_s27  ;;  %1233 = vrot.lane.b32.xlu1 %v7743_v35, %s2856_s27  ;;  %v7744_v6 = vld [vmem:[#allocation12_spill] sm:$0xff]  ;;  %v3951_v10 = vpop.permute.xlu2 %1169  ;;  %v1150_v9 = vpop.permute.xlu1 %1149  ;;  %v7755_v12 = vld [vmem:[#allocation22_spill] sm:$0xff] }
 0x13d   :  { %v1854_v45 = vadd.f32 %v1790_v49, %v3642_v60  ;;  %v1855_v28 = vadd.f32 %v1791_v30, %v3669_v37  ;;  %v52_v19 = vadd.s32 2048, %v3537_v31  ;;  %1231 = vrot.lane.b32.xlu0 %v7744_v6, %s2856_s27  ;;  %vm3938_vm12 = vcmp.eq.s32.totalorder %v195_v44, 0  ;;  %v1148_v16 = vpop.permute.xlu0 %1147 }
 0x13e   :  { %1920 = vst [vmem:[%s7329_s4 + $0x50] sm:$0xff] %v1856_v41  ;;  %v7745_v3 = vmov 0  ;;  %v7428_v60 = vperm.slane %v3832_v14, 5  ;;  %vm3943_vm13 = vcmp.eq.s32.totalorder %v181_v11, 0  ;;  %v7748_v37 = vmov 0  ;;  %v7754_v41 = vld [vmem:[#allocation7_spill] sm:$0xff] }
 0x13f   :  { %v7746_v3 = vsel %vm3938_vm12, 4294967295, %v7745_v3  ;;  %v7749_v37 = vsel %vm3943_vm13, 4294967295, %v7748_v37  ;;  %v50_v61 = vadd.s32 1792, %v3537_v31  ;;  %1918 = vst [vmem:[%s7329_s4 + $0x40] sm:$0xff] %v1854_v45  ;;  %vm3953_vm14 = vcmp.eq.s32.totalorder %v188_v52, 0  ;;  %v7756_v45 = vld [vmem:[#allocation23_spill] sm:$0xff] }
 0x140   :  { %7747 = vst [vmem:[#allocation5_spill] sm:$0xff] %v7746_v3  ;;  %v7751_v44 = vmov 0  ;;  %v7430_v49 = vperm.slane %v3832_v14, 3  ;;  %v7429_v11 = vperm.slane %v3832_v14, 4  ;;  %v51_v30 = vadd.s32 1920, %v3537_v31 }
 0x141   :  { %7750 = vst [vmem:[#allocation16_spill] sm:$0xff] %v7749_v37  ;;  %v7752_v44 = vsel %vm3953_vm14, 4294967295, %v7751_v44  ;;  %v1110_v35 = vsel %vm7420_vm0, %v7755_v12, %v7754_v41  ;;  %v1111_v6 = vsel %vm7420_vm0, %v7756_v45, %v7755_v12  ;;  %v1112_v52 = vsel %vm7420_vm0, %v7739_v42, %v7756_v45 }
 0x142   :  { %7753 = vst [vmem:[#allocation17_spill] sm:$0xff] %v7752_v44  ;;  %v1304_v26 = vsel %vm7419_vm1, %v1150_v9, %v3697_v53  ;;  %v1305_v12 = vsel %vm7419_vm1, %v1148_v16, %v1150_v9  ;;  %v1306_v55 = vsel %vm7419_vm1, %v3608_v33, %v1148_v16  ;;  %v216_v42 = vand.u32 1, %v52_v19  ;;  %v4003_v16 = vld [vmem:[%s7328_s1 + $0x10] sm:$0xff] }
 0x143   :  { %1919 = vst [vmem:[%s7329_s4 + $0x48] sm:$0xff] %v1855_v28  ;;  %v1395_v62 = vsel %vm3938_vm12, %v1110_v35, %v1304_v26  ;;  %v1393_v28 = vsel %vm3943_vm13, %v1112_v52, %v1306_v55  ;;  %v1394_v47 = vsel %vm3953_vm14, %v1111_v6, %v1305_v12  ;;  %v202_v18 = vand.u32 1, %v50_v61  ;;  %v4023_v61 = vld [vmem:[%s7327_s0 + $0x18] sm:$0xff]  ;;  %v7761_v52 = vld [vmem:[#allocation26_spill] sm:$0xff] }
 0x144   :  { %v1795_v45 = vmul.f32 %v7428_v60, %v1395_v62  ;;  %v3994_v26 = vmul.f32 %v7427_v32, %v3026_v20  ;;  %v1793_v9 = vmul.f32 %v7430_v49, %v1393_v28  ;;  %v1794_v33 = vmul.f32 %v7429_v11, %v1394_v47  ;;  %7757 = vst [vmem:[#allocation19_spill] sm:$0xff] %v4003_v16  ;;  %v4052_v28 = vpop.permute.xlu2 %1175 }
 0x145   :  { %v209_v62 = vand.u32 1, %v51_v30  ;;  %v4008_v55 = vmul.f32 %v7426_v29, %v3037_v21  ;;  %v4013_v20 = vmul.f32 %v7425_v17, %v3042_v22  ;;  %v7758_v19 = vperm.slane %v3664_v57, 5  ;;  %7759 = vst [vmem:[#allocation20_spill] sm:$0xff] %v4023_v61  ;;  %v7760_v22 = vld [vmem:[#allocation25_spill] sm:$0xff]  ;;  %1239 = vrot.lane.b32.xlu1 %v7761_v52, %s2856_s27  ;;  %v1154_v29 = vpop.permute.xlu0 %1153 }
 0x146   :  { %v1859_v30 = vadd.f32 %v1795_v45, %v3737_v8  ;;  %v7434_v21 = vperm.slane %v4023_v61, 2  ;;  %v1857_v35 = vadd.f32 %v1793_v9, %v3654_v63  ;;  %v1858_v6 = vadd.f32 %v1794_v33, %v3746_v2  ;;  %1241 = vrot.lane.b32.xlu2 %v7760_v22, %s2856_s27  ;;  %v7762_v8 = vld [vmem:[#allocation18_spill] sm:$0xff]  ;;  %v1156_v9 = vpop.permute.xlu1 %1155  ;;  %v7773_v22 = vld [vmem:[#allocation28_spill] sm:$0xff] }
 0x147   :  { %v4018_v47 = vmul.f32 %v7758_v19, %v3047_v23  ;;  %v55_v23 = vadd.s32 2432, %v3537_v31  ;;  %1237 = vrot.lane.b32.xlu0 %v7762_v8, %s2856_s27  ;;  %vm4039_vm15 = vcmp.eq.s32.totalorder %v216_v42, 0  ;;  %v7763_v12 = vmov 0 }
 0x148   :  { %1923 = vst [vmem:[%s7329_s4 + $0x68] sm:$0xff] %v1859_v30  ;;  %v7764_v12 = vsel %vm4039_vm15, 4294967295, %v7763_v12  ;;  %v7435_v63 = vperm.slane %v4003_v16, 0  ;;  %vm4044_vm1 = vcmp.eq.s32.totalorder %v202_v18, 0  ;;  %v7766_v2 = vmov 0  ;;  %v7772_v30 = vld [vmem:[#allocation10_spill] sm:$0xff] }
 0x149   :  { %7765 = vst [vmem:[#allocation12_spill] sm:$0xff] %v7764_v12  ;;  %v7767_v2 = vsel %vm4044_vm1, 4294967295, %v7766_v2  ;;  %v53_v45 = vadd.s32 2176, %v3537_v31  ;;  %vm4054_vm0 = vcmp.eq.s32.totalorder %v209_v62, 0  ;;  %v7769_v42 = vmov 0 }
 0x14a   :  { %7768 = vst [vmem:[#allocation7_spill] sm:$0xff] %v7767_v2  ;;  %v7770_v42 = vsel %vm4054_vm0, 4294967295, %v7769_v42  ;;  %v7437_v33 = vperm.slane %v3832_v14, 6  ;;  %v7436_v18 = vperm.slane %v3832_v14, 7  ;;  %v54_v19 = vadd.s32 2304, %v3537_v31 }
 0x14b   :  { %1921 = vst [vmem:[%s7329_s4 + $0x58] sm:$0xff] %v1857_v35  ;;  %vm7774_vm12 = vcmp.lt.s32.totalorder %v3537_v31, 127  ;;  %v7775_v35 = vld [vmem:[#allocation29_spill] sm:$0xff]  ;;  %vm7778_vm11 = vcmp.lt.s32.totalorder %v3537_v31, 1  ;;  %v223_v49 = vand.u32 1, %v53_v45  ;;  %v7438_v45 = vperm.slane %v4023_v61, 4 }
 0x14c   :  { %7771 = vst [vmem:[#allocation22_spill] sm:$0xff] %v7770_v42  ;;  %v1107_v52 = vsel %vm7774_vm12, %v7773_v22, %v7772_v30  ;;  %vm7776_vm14 = vmmov %vm7774_vm12  ;;  %v1301_v17 = vsel %vm7778_vm11, %v1156_v9, %v3780_v39  ;;  %v8274_v58 = vperm.slane %v3564_v48, 3 }
 0x14d   :  { %v1108_v8 = vsel %vm7776_vm14, %v7775_v35, %v7773_v22  ;;  %vm7777_vm9 = vmmov %vm7774_vm12  ;;  %1922 = vst [vmem:[%s7329_s4 + $0x60] sm:$0xff] %v1858_v6  ;;  %v1398_v32 = vsel %vm4039_vm15, %v1107_v52, %v1301_v17  ;;  %v7442_v17 = vperm.slane %v4023_v61, 1  ;;  %1245 = vrot.lane.b32.xlu1 %v3362_v54, %s2856_s27  ;;  %v56_v54 = vadd.s32 2560, %v3537_v31 }
 0x14e   :  { %v1109_v62 = vsel %vm7777_vm9, %v7754_v41, %v7775_v35  ;;  %vm7779_vm12 = vmmov %vm7778_vm11  ;;  %v237_v41 = vand.u32 1, %v55_v23  ;;  %v1798_v35 = vmul.f32 %v7435_v63, %v1398_v32  ;;  %v4100_v32 = vmul.f32 %v7434_v21, %v3058_v24  ;;  %1247 = vrot.lane.b32.xlu2 %v3357_v50, %s2856_s27  ;;  %v1160_v21 = vpop.permute.xlu0 %1159 }
 0x14f   :  { %v1302_v22 = vsel %vm7779_vm12, %v1154_v29, %v1156_v9  ;;  %vm7780_vm14 = vmmov %vm7778_vm11  ;;  %v58_v24 = vadd.s32 2816, %v3537_v31  ;;  %vm4123_vm11 = vcmp.eq.s32.totalorder %v223_v49, 0  ;;  %v7785_v50 = vmov 0 }
 0x150   :  { %v1303_v60 = vsel %vm7780_vm14, %v3697_v53, %v1154_v29  ;;  %v1397_v11 = vsel %vm4054_vm0, %v1108_v8, %v1302_v22  ;;  %v230_v53 = vand.u32 1, %v54_v19  ;;  %v7443_v29 = vperm.slane %v4023_v61, 0  ;;  %v1162_v19 = vpop.permute.xlu1 %1161 }
 0x151   :  { %v1396_v6 = vsel %vm4044_vm1, %v1109_v62, %v1303_v60  ;;  %v1797_v52 = vmul.f32 %v7436_v18, %v1397_v11  ;;  %v7439_v60 = vperm.slane %v4023_v61, 5  ;;  %v1862_v23 = vadd.f32 %v1798_v35, %v3823_v46  ;;  %v7781_v46 = vld [vmem:[#allocation24_spill] sm:$0xff] }
 0x152   :  { %v1796_v9 = vmul.f32 %v7437_v33, %v1396_v6  ;;  %1243 = vrot.lane.b32.xlu0 %v7781_v46, %s2856_s27  ;;  %vm4118_vm9 = vcmp.eq.s32.totalorder %v237_v41, 0  ;;  %v7782_v11 = vmov 0  ;;  %v7786_v50 = vsel %vm4123_vm11, 4294967295, %v7785_v50  ;;  %v7791_v6 = vld [vmem:[#allocation15_spill] sm:$0xff] }
 0x153   :  { %v1861_v62 = vadd.f32 %v1797_v52, %v3837_v59  ;;  %1926 = vst [vmem:[%s7329_s4 + $0x80] sm:$0xff] %v1862_v23  ;;  %v7783_v11 = vsel %vm4118_vm9, 4294967295, %v7782_v11  ;;  %v4131_v59 = vpop.permute.xlu2 %1181  ;;  %vm4133_vm12 = vcmp.eq.s32.totalorder %v230_v53, 0  ;;  %v7788_v22 = vmov 0  ;;  %v7794_v23 = vld [vmem:[#allocation33_spill] sm:$0xff] }
 0x154   :  { %v1860_v8 = vadd.f32 %v1796_v9, %v3674_v4  ;;  %7784 = vst [vmem:[#allocation23_spill] sm:$0xff] %v7783_v11  ;;  %v7444_v4 = vperm.slane %v4003_v16, 3  ;;  %v7789_v22 = vsel %vm4133_vm12, 4294967295, %v7788_v22  ;;  %v7446_v41 = vperm.slane %v4003_v16, 1  ;;  %v7792_v9 = vld [vmem:[#allocation32_spill] sm:$0xff] }
 0x155   :  { %7787 = vst [vmem:[#allocation25_spill] sm:$0xff] %v7786_v50  ;;  %v7445_v49 = vperm.slane %v4003_v16, 2  ;;  %v57_v35 = vadd.s32 2688, %v3537_v31  ;;  %vm7793_vm14 = vcmp.lt.s32.totalorder %v3537_v31, 127  ;;  %vm7797_vm1 = vcmp.lt.s32.totalorder %v3537_v31, 1 }
 0x156   :  { %1924 = vst [vmem:[%s7329_s4 + $0x70] sm:$0xff] %v1860_v8  ;;  %v1104_v52 = vsel %vm7793_vm14, %v7792_v9, %v7791_v6  ;;  %vm7795_vm15 = vmmov %vm7793_vm14  ;;  %v1298_v46 = vsel %vm7797_vm1, %v1162_v19, %v3868_v13 }
 0x157   :  { %7790 = vst [vmem:[#allocation26_spill] sm:$0xff] %v7789_v22  ;;  %v1105_v8 = vsel %vm7795_vm15, %v7794_v23, %v7792_v9  ;;  %vm7796_vm0 = vmmov %vm7793_vm14  ;;  %v1401_v63 = vsel %vm4118_vm9, %v1104_v52, %v1298_v46  ;;  %v1974_v52 = vld [vmem:[%s7330_s3] sm:$0xff]  ;;  %v244_v46 = vand.u32 1, %v56_v54 }
 0x158   :  { %v1106_v53 = vsel %vm7796_vm0, %v7772_v30, %v7794_v23  ;;  %1925 = vst [vmem:[%s7329_s4 + $0x78] sm:$0xff] %v1861_v62  ;;  %vm7798_vm14 = vmmov %vm7797_vm1  ;;  %v258_v30 = vand.u32 1, %v58_v24  ;;  %v1801_v23 = vmul.f32 %v7444_v4, %v1401_v63  ;;  %v251_v63 = vand.u32 1, %v57_v35  ;;  %2038 = vrot.lane.b32.xlu2 %v1974_v52, %s2855_s22  ;;  %v4251_v4 = vld [vmem:[%s7327_s0 + $0x20] sm:$0xff] }
 0x159   :  { %v1299_v9 = vsel %vm7798_vm14, %v1160_v21, %v1162_v19  ;;  %vm7799_vm15 = vmmov %vm7797_vm1  ;;  %v4177_v19 = vmul.f32 %v7442_v17, %v3063_v25  ;;  %vm4215_vm1 = vcmp.eq.s32.totalorder %v244_v46, 0  ;;  %v61_v52 = vadd.s32 3200, %v3537_v31  ;;  %7820 = vst [vmem:[#allocation29_spill] sm:$0xff] %v4251_v4 }
 0x15a   :  { %v1300_v18 = vsel %vm7799_vm15, %v3780_v39, %v1160_v21  ;;  %v1400_v33 = vsel %vm4133_vm12, %v1105_v8, %v1299_v9  ;;  %v7801_v8 = vld [vmem:[#allocation3_spill] sm:$0xff]  ;;  %v7802_v9 = vld [vmem:[#allocation4_spill] sm:$0xff]  ;;  %vm4211_vm0 = vcmp.eq.s32.totalorder %v258_v30, 0  ;;  %vm4226_vm14 = vcmp.eq.s32.totalorder %v251_v63, 0 }
 0x15b   :  { %v1399_v62 = vsel %vm4123_vm11, %v1106_v53, %v1300_v18  ;;  %v1800_v21 = vmul.f32 %v7445_v49, %v1400_v33  ;;  %v7800_v18 = vld [vmem:[#allocation2_spill] sm:$0xff]  ;;  %v4191_v54 = vmul.f32 %v7439_v60, %v7801_v8  ;;  %v1865_v53 = vadd.f32 %v1801_v23, %v3920_v34  ;;  %v7817_v60 = vld [vmem:[#allocation37_spill] sm:$0xff] }
 0x15c   :  { %v1799_v39 = vmul.f32 %v7446_v41, %v1399_v62  ;;  %v4186_v24 = vmul.f32 %v7443_v29, %v7800_v18  ;;  %v4198_v62 = vmul.f32 %v7438_v45, %v7802_v9  ;;  %v7803_v18 = vld [vmem:[#allocation34_spill] sm:$0xff]  ;;  %v7447_v8 = vperm.slane %v4003_v16, 6  ;;  %v7815_v45 = vld [vmem:[#allocation36_spill] sm:$0xff]  ;;  %v1166_v29 = vpop.permute.xlu0 %1165 }
 0x15d   :  { %v1864_v35 = vadd.f32 %v1800_v21, %v3994_v26  ;;  %1251 = vrot.lane.b32.xlu1 %v7803_v18, %s2856_s27  ;;  %1929 = vst [vmem:[%s7329_s4 + $0x98] sm:$0xff] %v1865_v53  ;;  %v7804_v34 = vld [vmem:[#allocation30_spill] sm:$0xff]  ;;  %v7805_v23 = vmov 0  ;;  %v7448_v26 = vperm.slane %v4003_v16, 4  ;;  %v1168_v21 = vpop.permute.xlu1 %1167  ;;  %v7811_v30 = vmov 0 }
 0x15e   :  { %v1863_v33 = vadd.f32 %v1799_v39, %v3754_v36  ;;  %1249 = vrot.lane.b32.xlu0 %v7804_v34, %s2856_s27  ;;  %v7806_v23 = vsel %vm4211_vm0, 4294967295, %v7805_v23  ;;  %v7808_v36 = vmov 0  ;;  %v4224_v39 = vpop.permute.xlu2 %1187  ;;  %v7812_v30 = vsel %vm4226_vm14, 4294967295, %v7811_v30  ;;  %v7814_v34 = vld [vmem:[#allocation21_spill] sm:$0xff] }
 0x15f   :  { %7807 = vst [vmem:[#allocation18_spill] sm:$0xff] %v7806_v23  ;;  %v7809_v36 = vsel %vm4215_vm1, 4294967295, %v7808_v36  ;;  %v59_v53 = vadd.s32 2944, %v3537_v31  ;;  %v60_v9 = vadd.s32 3072, %v3537_v31  ;;  %vm7816_vm15 = vcmp.lt.s32.totalorder %v3537_v31, 127 }
 0x160   :  { %7810 = vst [vmem:[#allocation10_spill] sm:$0xff] %v7809_v36  ;;  %vm7818_vm9 = vmmov %vm7816_vm15  ;;  %vm7819_vm12 = vcmp.lt.s32.totalorder %v3537_v31, 1 }
 0x161   :  { %1927 = vst [vmem:[%s7329_s4 + $0x88] sm:$0xff] %v1863_v33  ;;  %v1101_v33 = vsel %vm7816_vm15, %v7815_v45, %v7814_v34  ;;  %v1102_v63 = vsel %vm7818_vm9, %v7817_v60, %v7815_v45  ;;  %v1295_v17 = vsel %vm7819_vm12, %v1168_v21, %v3951_v10  ;;  %vm7821_vm15 = vmmov %vm7818_vm9 }
 0x162   :  { %7813 = vst [vmem:[#allocation28_spill] sm:$0xff] %v7812_v30  ;;  %v1103_v49 = vsel %vm7821_vm15, %v7791_v6, %v7817_v60  ;;  %v1404_v45 = vsel %vm4211_vm0, %v1101_v33, %v1295_v17  ;;  %vm7822_vm9 = vmmov %vm7819_vm12  ;;  %v1977_v17 = vld [vmem:[%s7330_s3 + $0x18] sm:$0xff]  ;;  %v1976_v60 = vld [vmem:[%s7330_s3 + $0x10] sm:$0xff]  ;;  %v279_v6 = vand.u32 1, %v61_v52  ;;  %v265_v33 = vand.u32 1, %v59_v53 }
 0x163   :  { %1928 = vst [vmem:[%s7329_s4 + $0x90] sm:$0xff] %v1864_v35  ;;  %v1296_v35 = vsel %vm7822_vm9, %v1166_v29, %v1168_v21  ;;  %vm7823_vm12 = vmmov %vm7822_vm9  ;;  %v1804_v18 = vmul.f32 %v7447_v8, %v1404_v45  ;;  %v1975_v21 = vld [vmem:[%s7330_s3 + $0x8] sm:$0xff]  ;;  %v2752_v52 = vld [vmem:[%s7326_s2 + $0xd8] sm:$0xff]  ;;  %v7826_v45 = vperm.slane %v4023_v61, 3  ;;  %v7454_v8 = vperm.slane %v4251_v4, 0  ;;  %2044 = vrot.lane.b32.xlu2 %v1977_v17, %s2855_s22 }
 0x164   :  { %v1297_v41 = vsel %vm7823_vm12, %v3868_v13, %v1166_v29  ;;  %v1403_v46 = vsel %vm4226_vm14, %v1102_v63, %v1296_v35  ;;  %v4279_v13 = vld [vmem:[%s7328_s1 + $0x18] sm:$0xff]  ;;  %v272_v63 = vand.u32 1, %v60_v9  ;;  %v7827_v53 = vperm.slane %v4023_v61, 7 }
 0x165   :  { %v1402_v25 = vsel %vm4215_vm1, %v1103_v49, %v1297_v41  ;;  %7824 = vst [vmem:[#allocation24_spill] sm:$0xff] %v4279_v13  ;;  %v7825_v41 = vperm.slane %v4003_v16, 5  ;;  %v4293_v35 = vmul.f32 %v2752_v52, %v7826_v45  ;;  %2042 = vrot.lane.b32.xlu1 %v1976_v60, %s2855_s22  ;;  %v7457_v52 = vperm.slane %v4279_v13, 1  ;;  %v1174_v60 = vpop.permute.xlu1 %1173  ;;  %v2754_v45 = vld [vmem:[%s7326_s2 + $0x100] sm:$0xff] }
 0x166   :  { %v1802_v29 = vmul.f32 %v7448_v26, %v1402_v25  ;;  %2040 = vrot.lane.b32.xlu0 %v1975_v21, %s2855_s22  ;;  %vm4314_vm15 = vcmp.eq.s32.totalorder %v279_v6, 0  ;;  %v4324_v17 = vpop.permute.xlu2 %1193  ;;  %vm4326_vm9 = vcmp.eq.s32.totalorder %v265_v33, 0  ;;  %vm4330_vm12 = vcmp.eq.s32.totalorder %v272_v63, 0  ;;  %v7837_v33 = vld [vmem:[#allocation27_spill] sm:$0xff] }
 0x167   :  { %v1803_v49 = vmul.f32 %v7825_v41, %v1403_v46  ;;  %v1868_v46 = vadd.f32 %v1804_v18, %v4013_v20  ;;  %v2753_v41 = vld [vmem:[%s7326_s2 + $0xf8] sm:$0xff]  ;;  %v7828_v20 = vmov 0  ;;  %v64_v18 = vadd.s32 3584, %v3537_v31 }
 0x168   :  { %v4303_v9 = vmul.f32 %v2753_v41, %v7827_v53  ;;  %v1866_v26 = vadd.f32 %v1802_v29, %v3911_v1  ;;  %v7829_v20 = vsel %vm4314_vm15, 4294967295, %v7828_v20  ;;  %v7831_v29 = vmov 0  ;;  %v7840_v41 = vld [vmem:[#allocation40_spill] sm:$0xff] }
 0x169   :  { %v1867_v23 = vadd.f32 %v1803_v49, %v4018_v47  ;;  %1932 = vst [vmem:[%s7329_s4 + $0xb0] sm:$0xff] %v1868_v46  ;;  %v7832_v29 = vsel %vm4326_vm9, 4294967295, %v7831_v29  ;;  %v7834_v6 = vmov 0  ;;  %v62_v49 = vadd.s32 3328, %v3537_v31  ;;  %v7838_v46 = vld [vmem:[#allocation39_spill] sm:$0xff] }
 0x16a   :  { %7830 = vst [vmem:[#allocation15_spill] sm:$0xff] %v7829_v20  ;;  %v7835_v6 = vsel %vm4330_vm12, 4294967295, %v7834_v6  ;;  %v63_v21 = vadd.s32 3456, %v3537_v31  ;;  %vm7839_vm0 = vcmp.lt.s32.totalorder %v3537_v31, 127  ;;  %vm7842_vm1 = vcmp.lt.s32.totalorder %v3537_v31, 1 }
 0x16b   :  { %1930 = vst [vmem:[%s7329_s4 + $0xa0] sm:$0xff] %v1866_v26  ;;  %v4341_v26 = vmul.f32 %v2754_v45, %v7454_v8  ;;  %v1098_v63 = vsel %vm7839_vm0, %v7838_v46, %v7837_v33  ;;  %vm7841_vm14 = vmmov %vm7839_vm0  ;;  %v1292_v25 = vsel %vm7842_vm1, %v1174_v60, %v4052_v28  ;;  %v1172_v45 = vpop.permute.xlu0 %1171 }
 0x16c   :  { %7833 = vst [vmem:[#allocation32_spill] sm:$0xff] %v7832_v29  ;;  %v1099_v53 = vsel %vm7841_vm14, %v7840_v41, %v7838_v46  ;;  %vm7843_vm11 = vmmov %vm7839_vm0  ;;  %v1407_v47 = vsel %vm4314_vm15, %v1098_v63, %v1292_v25  ;;  %v1979_v25 = vld [vmem:[%s7330_s3 + $0x28] sm:$0xff] }
 0x16d   :  { %7836 = vst [vmem:[#allocation33_spill] sm:$0xff] %v7835_v6  ;;  %v1100_v8 = vsel %vm7843_vm11, %v7814_v34, %v7840_v41  ;;  %vm7844_vm0 = vmmov %vm7842_vm1  ;;  %v1807_v1 = vmul.f32 %v7457_v52, %v1407_v47  ;;  %v1980_v34 = vld [vmem:[%s7330_s3 + $0x30] sm:$0xff]  ;;  %v7847_v47 = vperm.slane %v4279_v13, 0  ;;  %2048 = vrot.lane.b32.xlu1 %v1979_v25, %s2855_s22  ;;  %v1180_v25 = vpop.permute.xlu1 %1179 }
 0x16e   :  { %1931 = vst [vmem:[%s7329_s4 + $0xa8] sm:$0xff] %v1867_v23  ;;  %v1293_v46 = vsel %vm7844_vm0, %v1172_v45, %v1174_v60  ;;  %vm7845_vm14 = vmmov %vm7844_vm0  ;;  %v300_v60 = vand.u32 1, %v64_v18  ;;  %v7461_v18 = vperm.slane %v4251_v4, 3  ;;  %2050 = vrot.lane.b32.xlu2 %v1980_v34, %s2855_s22  ;;  %v4417_v34 = vpop.permute.xlu2 %1199 }
 0x16f   :  { %v1294_v23 = vsel %vm7845_vm14, %v3951_v10, %v1172_v45  ;;  %v1406_v11 = vsel %vm4330_vm12, %v1099_v53, %v1293_v46  ;;  %v7846_v10 = vperm.slane %v4003_v16, 7  ;;  %v286_v53 = vand.u32 1, %v62_v49  ;;  %v2755_v46 = vld [vmem:[%s7326_s2 + $0xf0] sm:$0xff] }
 0x170   :  { %v1405_v30 = vsel %vm4326_vm9, %v1100_v8, %v1294_v23  ;;  %v1806_v41 = vmul.f32 %v7847_v47, %v1406_v11  ;;  %v1978_v8 = vld [vmem:[%s7330_s3 + $0x20] sm:$0xff]  ;;  %v293_v45 = vand.u32 1, %v63_v21  ;;  %v7848_v23 = vperm.slane %v4023_v61, 6 }
 0x171   :  { %v1805_v63 = vmul.f32 %v7846_v10, %v1405_v30  ;;  %v1871_v11 = vadd.f32 %v1807_v1, %v4177_v19  ;;  %v7464_v21 = vperm.slane %v4279_v13, 4  ;;  %2046 = vrot.lane.b32.xlu0 %v1978_v8, %s2855_s22  ;;  %vm4407_vm11 = vcmp.eq.s32.totalorder %v300_v60, 0 }
 0x172   :  { %v4392_v52 = vmul.f32 %v2755_v46, %v7848_v23  ;;  %v1870_v49 = vadd.f32 %v1806_v41, %v4186_v24  ;;  %v7849_v19 = vmov 0  ;;  %v67_v1 = vadd.s32 3968, %v3537_v31  ;;  %v2756_v46 = vld [vmem:[%s7326_s2 + $0x118] sm:$0xff] }
 0x173   :  { %v1869_v47 = vadd.f32 %v1805_v63, %v4008_v55  ;;  %1935 = vst [vmem:[%s7329_s4 + $0xc8] sm:$0xff] %v1871_v11  ;;  %v7850_v19 = vsel %vm4407_vm11, 4294967295, %v7849_v19  ;;  %vm4419_vm1 = vcmp.eq.s32.totalorder %v286_v53, 0  ;;  %v7852_v63 = vmov 0  ;;  %v7858_v53 = vld [vmem:[#allocation31_spill] sm:$0xff]  ;;  %v7859_v11 = vld [vmem:[#allocation42_spill] sm:$0xff] }
 0x174   :  { %7851 = vst [vmem:[#allocation2_spill] sm:$0xff] %v7850_v19  ;;  %v7853_v63 = vsel %vm4419_vm1, 4294967295, %v7852_v63  ;;  %vm4423_vm0 = vcmp.eq.s32.totalorder %v293_v45, 0  ;;  %v7855_v60 = vmov 0  ;;  %v65_v41 = vadd.s32 3712, %v3537_v31 }
 0x175   :  { %1933 = vst [vmem:[%s7329_s4 + $0xb8] sm:$0xff] %v1869_v47  ;;  %v7856_v60 = vsel %vm4423_vm0, 4294967295, %v7855_v60  ;;  %v66_v8 = vadd.s32 3840, %v3537_v31  ;;  %v4434_v23 = vmul.f32 %v2756_v46, %v7461_v18  ;;  %vm7860_vm14 = vcmp.lt.s32.totalorder %v3537_v31, 127  ;;  %v7861_v47 = vld [vmem:[#allocation43_spill] sm:$0xff]  ;;  %v1178_v46 = vpop.permute.xlu0 %1177 }
 0x176   :  { %7854 = vst [vmem:[#allocation3_spill] sm:$0xff] %v7853_v63  ;;  %v1095_v45 = vsel %vm7860_vm14, %v7859_v11, %v7858_v53  ;;  %vm7862_vm15 = vmmov %vm7860_vm14  ;;  %vm7863_vm12 = vcmp.lt.s32.totalorder %v3537_v31, 1 }
 0x177   :  { %7857 = vst [vmem:[#allocation4_spill] sm:$0xff] %v7856_v60  ;;  %v1096_v10 = vsel %vm7862_vm15, %v7861_v47, %v7859_v11  ;;  %v1289_v30 = vsel %vm7863_vm12, %v1180_v25, %v4131_v59  ;;  %vm7864_vm9 = vmmov %vm7860_vm14 }
 0x178   :  { %1934 = vst [vmem:[%s7329_s4 + $0xc0] sm:$0xff] %v1870_v49  ;;  %v1097_v18 = vsel %vm7864_vm9, %v7837_v33, %v7861_v47  ;;  %v1410_v24 = vsel %vm4407_vm11, %v1095_v45, %v1289_v30  ;;  %vm7865_vm14 = vmmov %vm7863_vm12  ;;  %v1983_v33 = vld [vmem:[%s7330_s3 + $0x48] sm:$0xff]  ;;  %v1982_v30 = vld [vmem:[%s7330_s3 + $0x40] sm:$0xff] }
 0x179   :  { %v1290_v11 = vsel %vm7865_vm14, %v1178_v46, %v1180_v25  ;;  %vm7866_vm15 = vmmov %vm7863_vm12  ;;  %v1810_v55 = vmul.f32 %v7464_v21, %v1410_v24  ;;  %v321_v25 = vand.u32 1, %v67_v1  ;;  %v7868_v24 = vperm.slane %v4279_v13, 3  ;;  %2056 = vrot.lane.b32.xlu2 %v1983_v33, %s2855_s22  ;;  %2054 = vrot.lane.b32.xlu1 %v1982_v30, %s2855_s22  ;;  %v4516_v33 = vpop.permute.xlu2 %1205  ;;  %v1186_v30 = vpop.permute.xlu1 %1185 }
 0x17a   :  { %v1291_v49 = vsel %vm7866_vm15, %v4052_v28, %v1178_v46  ;;  %v1409_v6 = vsel %vm4423_vm0, %v1096_v10, %v1290_v11  ;;  %v7867_v28 = vperm.slane %v4279_v13, 2  ;;  %v307_v10 = vand.u32 1, %v65_v41  ;;  %v2757_v11 = vld [vmem:[%s7326_s2 + $0x110] sm:$0xff] }
 0x17b   :  { %v1408_v20 = vsel %vm4419_vm1, %v1097_v18, %v1291_v49  ;;  %v1809_v47 = vmul.f32 %v7868_v24, %v1409_v6  ;;  %v1981_v18 = vld [vmem:[%s7330_s3 + $0x38] sm:$0xff]  ;;  %v314_v46 = vand.u32 1, %v66_v8  ;;  %v7869_v49 = vperm.slane %v4251_v4, 2 }
 0x17c   :  { %v1808_v45 = vmul.f32 %v7867_v28, %v1408_v20  ;;  %v2758_v20 = vld [vmem:[%s7326_s2 + $0x108] sm:$0xff]  ;;  %v7870_v6 = vperm.slane %v4251_v4, 1  ;;  %v1874_v41 = vadd.f32 %v1810_v55, %v4198_v62  ;;  %2052 = vrot.lane.b32.xlu0 %v1981_v18, %s2855_s22  ;;  %vm4506_vm9 = vcmp.eq.s32.totalorder %v321_v25, 0 }
 0x17d   :  { %v4485_v21 = vmul.f32 %v2757_v11, %v7869_v49  ;;  %v1873_v19 = vadd.f32 %v1809_v47, %v4293_v35  ;;  %v7470_v11 = vperm.slane %v4279_v13, 7  ;;  %v7871_v62 = vmov 0  ;;  %v1184_v8 = vpop.permute.xlu0 %1183 }
 0x17e   :  { %v4492_v1 = vmul.f32 %v2758_v20, %v7870_v6  ;;  %v1872_v24 = vadd.f32 %v1808_v45, %v4100_v32  ;;  %1938 = vst [vmem:[%s7329_s4 + $0xe0] sm:$0xff] %v1874_v41  ;;  %v7872_v62 = vsel %vm4506_vm9, 4294967295, %v7871_v62  ;;  %v70_v55 = vadd.s32 4352, %v3537_v31  ;;  %v7880_v20 = vld [vmem:[#allocation35_spill] sm:$0xff]  ;;  %v7881_v6 = vld [vmem:[#allocation45_spill] sm:$0xff] }
 0x17f   :  { %7873 = vst [vmem:[#allocation34_spill] sm:$0xff] %v7872_v62  ;;  %vm4518_vm12 = vcmp.eq.s32.totalorder %v307_v10, 0  ;;  %v7874_v45 = vmov 0  ;;  %vm4522_vm14 = vcmp.eq.s32.totalorder %v314_v46, 0  ;;  %v7877_v25 = vmov 0  ;;  %v7883_v10 = vld [vmem:[#allocation46_spill] sm:$0xff] }
 0x180   :  { %1936 = vst [vmem:[%s7329_s4 + $0xd0] sm:$0xff] %v1872_v24  ;;  %v7875_v45 = vsel %vm4518_vm12, 4294967295, %v7874_v45  ;;  %v7878_v25 = vsel %vm4522_vm14, 4294967295, %v7877_v25  ;;  %v68_v47 = vadd.s32 4096, %v3537_v31  ;;  %v69_v18 = vadd.s32 4224, %v3537_v31  ;;  %v7906_v62 = vld [vmem:[#allocation48_spill] sm:$0xff] }
 0x181   :  { %7876 = vst [vmem:[#allocation30_spill] sm:$0xff] %v7875_v45  ;;  %vm7882_vm15 = vcmp.lt.s32.totalorder %v3537_v31, 127  ;;  %vm7885_vm0 = vcmp.lt.s32.totalorder %v3537_v31, 1 }
 0x182   :  { %7879 = vst [vmem:[#allocation21_spill] sm:$0xff] %v7878_v25  ;;  %v1092_v41 = vsel %vm7882_vm15, %v7881_v6, %v7880_v20  ;;  %vm7884_vm11 = vmmov %vm7882_vm15  ;;  %v1286_v46 = vsel %vm7885_vm0, %v1186_v30, %v4224_v39 }
 0x183   :  { %v1093_v24 = vsel %vm7884_vm11, %v7883_v10, %v7881_v6  ;;  %1937 = vst [vmem:[%s7329_s4 + $0xd8] sm:$0xff] %v1873_v19  ;;  %vm7886_vm1 = vmmov %vm7884_vm11  ;;  %v1413_v28 = vsel %vm4506_vm9, %v1092_v41, %v1286_v46  ;;  %v342_v41 = vand.u32 1, %v70_v55  ;;  %v328_v46 = vand.u32 1, %v68_v47  ;;  %v2759_v55 = vld [vmem:[%s7326_s2 + $0x130] sm:$0xff]  ;;  %v2761_v47 = vld [vmem:[%s7326_s2 + $0x120] sm:$0xff] }
 0x184   :  { %v1094_v49 = vsel %vm7886_vm1, %v7858_v53, %v7883_v10  ;;  %vm7887_vm15 = vmmov %vm7885_vm0  ;;  %v1813_v35 = vmul.f32 %v7470_v11, %v1413_v28  ;;  %v1986_v53 = vld [vmem:[%s7330_s3 + $0x60] sm:$0xff]  ;;  %v7890_v28 = vperm.slane %v4279_v13, 5 }
 0x185   :  { %v1287_v6 = vsel %vm7887_vm15, %v1184_v8, %v1186_v30  ;;  %vm7888_vm11 = vmmov %vm7885_vm0  ;;  %v1985_v30 = vld [vmem:[%s7330_s3 + $0x58] sm:$0xff]  ;;  %2062 = vrot.lane.b32.xlu2 %v1986_v53, %s2855_s22  ;;  %vm4615_vm1 = vcmp.eq.s32.totalorder %v342_v41, 0  ;;  %v4625_v53 = vpop.permute.xlu2 %1211  ;;  %vm4627_vm0 = vcmp.eq.s32.totalorder %v328_v46, 0  ;;  %v7902_v41 = vmov 0 }
 0x186   :  { %v1288_v19 = vsel %vm7888_vm11, %v4131_v59, %v1184_v8  ;;  %v1412_v60 = vsel %vm4522_vm14, %v1093_v24, %v1287_v6  ;;  %v4569_v59 = vld [vmem:[%s7328_s1 + $0x20] sm:$0xff]  ;;  %v1984_v24 = vld [vmem:[%s7330_s3 + $0x50] sm:$0xff]  ;;  %v335_v6 = vand.u32 1, %v69_v18  ;;  %v7894_v18 = vperm.slane %v4251_v4, 4  ;;  %2060 = vrot.lane.b32.xlu1 %v1985_v30, %s2855_s22  ;;  %v1192_v30 = vpop.permute.xlu1 %1191  ;;  %v7908_v46 = vld [vmem:[#allocation49_spill] sm:$0xff] }
 0x187   :  { %v1411_v32 = vsel %vm4518_vm12, %v1094_v49, %v1288_v19  ;;  %7889 = vst [vmem:[#allocation36_spill] sm:$0xff] %v4569_v59  ;;  %v7891_v49 = vperm.slane %v4279_v13, 6  ;;  %v7892_v19 = vperm.slane %v4251_v4, 6  ;;  %2058 = vrot.lane.b32.xlu0 %v1984_v24, %s2855_s22  ;;  %v72_v24 = vadd.s32 4608, %v3537_v31 }
 0x188   :  { %v1811_v8 = vmul.f32 %v7890_v28, %v1411_v32  ;;  %v2760_v32 = vld [vmem:[%s7326_s2 + $0x128] sm:$0xff]  ;;  %vm4631_vm15 = vcmp.eq.s32.totalorder %v335_v6, 0  ;;  %vm7907_vm11 = vcmp.lt.s32.totalorder %v3537_v31, 127  ;;  %vm7910_vm14 = vcmp.lt.s32.totalorder %v3537_v31, 1 }
 0x189   :  { %v1812_v10 = vmul.f32 %v7891_v49, %v1412_v60  ;;  %v4583_v11 = vmul.f32 %v2759_v55, %v7892_v19  ;;  %v7893_v60 = vperm.slane %v4251_v4, 5  ;;  %v4597_v49 = vmul.f32 %v2761_v47, %v7894_v18  ;;  %v4602_v55 = vld [vmem:[%s7327_s0 + $0x28] sm:$0xff]  ;;  %vm7909_vm9 = vmmov %vm7907_vm11 }
 0x18a   :  { %7895 = vst [vmem:[#allocation37_spill] sm:$0xff] %v4602_v55  ;;  %v1877_v19 = vadd.f32 %v1813_v35, %v4303_v9  ;;  %v7896_v9 = vmov 0  ;;  %v73_v35 = vadd.s32 4736, %v3537_v31  ;;  %v7903_v41 = vsel %vm4631_vm15, 4294967295, %v7902_v41  ;;  %vm7911_vm12 = vmmov %vm7909_vm9 }
 0x18b   :  { %v4590_v28 = vmul.f32 %v2760_v32, %v7893_v60  ;;  %v1875_v32 = vadd.f32 %v1811_v8, %v4191_v54  ;;  %v1876_v60 = vadd.f32 %v1812_v10, %v4392_v52  ;;  %v7897_v9 = vsel %vm4615_vm1, 4294967295, %v7896_v9  ;;  %7904 = vst [vmem:[#allocation40_spill] sm:$0xff] %v7903_v41  ;;  %v1190_v54 = vpop.permute.xlu0 %1189 }
 0x18c   :  { %1941 = vst [vmem:[%s7329_s4 + $0xf8] sm:$0xff] %v1877_v19  ;;  %v7899_v8 = vmov 0  ;;  %v71_v10 = vadd.s32 4480, %v3537_v31  ;;  %v7905_v19 = vld [vmem:[#allocation38_spill] sm:$0xff]  ;;  %v1090_v52 = vsel %vm7909_vm9, %v7908_v46, %v7906_v62  ;;  %v1283_v6 = vsel %vm7910_vm14, %v1192_v30, %v4324_v17 }
 0x18d   :  { %7898 = vst [vmem:[#allocation27_spill] sm:$0xff] %v7897_v9  ;;  %v7900_v8 = vsel %vm4627_vm0, 4294967295, %v7899_v8  ;;  %v1091_v18 = vsel %vm7911_vm12, %v7880_v20, %v7908_v46  ;;  %v7914_v25 = vperm.slane %v4569_v59, 2  ;;  %v1989_v20 = vld [vmem:[%s7330_s3 + $0x78] sm:$0xff]  ;;  %v356_v46 = vand.u32 1, %v72_v24 }
 0x18e   :  { %1939 = vst [vmem:[%s7329_s4 + $0xe8] sm:$0xff] %v1875_v32  ;;  %v1089_v32 = vsel %vm7907_vm11, %v7906_v62, %v7905_v19  ;;  %vm7912_vm11 = vmmov %vm7910_vm14  ;;  %2068 = vrot.lane.b32.xlu2 %v1989_v20, %s2855_s22  ;;  %v4718_v20 = vpop.permute.xlu2 %1217 }
 0x18f   :  { %7901 = vst [vmem:[#allocation39_spill] sm:$0xff] %v7900_v8  ;;  %v1416_v47 = vsel %vm4615_vm1, %v1089_v32, %v1283_v6  ;;  %v1284_v62 = vsel %vm7912_vm11, %v1190_v54, %v1192_v30  ;;  %vm7913_vm9 = vmmov %vm7912_vm11  ;;  %v1988_v30 = vld [vmem:[%s7330_s3 + $0x70] sm:$0xff]  ;;  %v363_v32 = vand.u32 1, %v73_v35  ;;  %v2762_v6 = vld [vmem:[%s7326_s2 + $0x148] sm:$0xff]  ;;  %vm4724_vm11 = vcmp.eq.s32.totalorder %v356_v46, 0 }
 0x190   :  { %1940 = vst [vmem:[%s7329_s4 + $0xf0] sm:$0xff] %v1876_v60  ;;  %v1285_v60 = vsel %vm7913_vm9, %v4224_v39, %v1190_v54  ;;  %v1816_v45 = vmul.f32 %v7914_v25, %v1416_v47  ;;  %v1415_v63 = vsel %vm4631_vm15, %v1090_v52, %v1284_v62  ;;  %v7915_v39 = vperm.slane %v4569_v59, 0  ;;  %2066 = vrot.lane.b32.xlu1 %v1988_v30, %s2855_s22  ;;  %v1198_v30 = vpop.permute.xlu1 %1197 }
 0x191   :  { %v1414_v13 = vsel %vm4627_vm0, %v1091_v18, %v1285_v60  ;;  %v7916_v25 = vperm.slane %v4569_v59, 1  ;;  %v1987_v18 = vld [vmem:[%s7330_s3 + $0x68] sm:$0xff]  ;;  %v349_v52 = vand.u32 1, %v71_v10  ;;  %v7917_v62 = vperm.slane %v4602_v55, 1 }
 0x192   :  { %v1814_v54 = vmul.f32 %v7915_v39, %v1414_v13  ;;  %v2763_v13 = vld [vmem:[%s7326_s2 + $0x140] sm:$0xff]  ;;  %v1880_v10 = vadd.f32 %v1816_v45, %v4485_v21  ;;  %2064 = vrot.lane.b32.xlu0 %v1987_v18, %s2855_s22  ;;  %vm4708_vm12 = vcmp.eq.s32.totalorder %v363_v32, 0  ;;  %v7919_v21 = vmov 0 }
 0x193   :  { %v1815_v47 = vmul.f32 %v7916_v25, %v1415_v63  ;;  %v4687_v60 = vmul.f32 %v2762_v6, %v7917_v62  ;;  %v7918_v63 = vperm.slane %v4602_v55, 0  ;;  %v7485_v6 = vperm.slane %v4569_v59, 5  ;;  %v1196_v24 = vpop.permute.xlu0 %1195 }
 0x194   :  { %v1878_v25 = vadd.f32 %v1814_v54, %v4341_v26  ;;  %1944 = vst [vmem:[%s7329_s4 + $0x110] sm:$0xff] %v1880_v10  ;;  %v7920_v21 = vsel %vm4708_vm12, 4294967295, %v7919_v21  ;;  %v76_v45 = vadd.s32 5120, %v3537_v31  ;;  %vm4720_vm14 = vcmp.eq.s32.totalorder %v349_v52, 0  ;;  %v7931_v52 = vld [vmem:[#allocation52_spill] sm:$0xff] }
 0x195   :  { %v4694_v35 = vmul.f32 %v2763_v13, %v7918_v63  ;;  %v1879_v9 = vadd.f32 %v1815_v47, %v4492_v1  ;;  %7921 = vst [vmem:[#allocation31_spill] sm:$0xff] %v7920_v21  ;;  %v7922_v54 = vmov 0  ;;  %v7925_v32 = vmov 0  ;;  %v7928_v13 = vld [vmem:[#allocation41_spill] sm:$0xff]  ;;  %v7929_v63 = vld [vmem:[#allocation51_spill] sm:$0xff] }
 0x196   :  { %1942 = vst [vmem:[%s7329_s4 + $0x100] sm:$0xff] %v1878_v25  ;;  %v7923_v54 = vsel %vm4720_vm14, 4294967295, %v7922_v54  ;;  %v7926_v32 = vsel %vm4724_vm11, 4294967295, %v7925_v32  ;;  %v74_v47 = vadd.s32 4864, %v3537_v31  ;;  %v75_v18 = vadd.s32 4992, %v3537_v31 }
 0x197   :  { %7924 = vst [vmem:[#allocation42_spill] sm:$0xff] %v7923_v54  ;;  %vm7930_vm9 = vcmp.lt.s32.totalorder %v3537_v31, 127  ;;  %vm7933_vm15 = vcmp.lt.s32.totalorder %v3537_v31, 1  ;;  %v7942_v21 = vperm.slane %v4602_v55, 3 }
 0x198   :  { %7927 = vst [vmem:[#allocation43_spill] sm:$0xff] %v7926_v32  ;;  %v1086_v10 = vsel %vm7930_vm9, %v7929_v63, %v7928_v13  ;;  %vm7932_vm1 = vmmov %vm7930_vm9  ;;  %v1280_v46 = vsel %vm7933_vm15, %v1198_v30, %v4417_v34 }
 0x199   :  { %v1087_v25 = vsel %vm7932_vm1, %v7931_v52, %v7929_v63  ;;  %1943 = vst [vmem:[%s7329_s4 + $0x108] sm:$0xff] %v1879_v9  ;;  %vm7934_vm0 = vmmov %vm7932_vm1  ;;  %v1419_v39 = vsel %vm4708_vm12, %v1086_v10, %v1280_v46  ;;  %v384_v10 = vand.u32 1, %v76_v45  ;;  %v370_v46 = vand.u32 1, %v74_v47  ;;  %v2764_v45 = vld [vmem:[%s7326_s2 + $0x138] sm:$0xff] }
 0x19a   :  { %v1088_v62 = vsel %vm7934_vm0, %v7905_v19, %v7931_v52  ;;  %vm7935_vm9 = vmmov %vm7933_vm15  ;;  %v1819_v1 = vmul.f32 %v7485_v6, %v1419_v39  ;;  %v1992_v19 = vld [vmem:[%s7330_s3 + $0x90] sm:$0xff]  ;;  %v7938_v39 = vperm.slane %v4569_v59, 3 }
 0x19b   :  { %v1281_v63 = vsel %vm7935_vm9, %v1196_v24, %v1198_v30  ;;  %vm7936_vm1 = vmmov %vm7935_vm9  ;;  %v1991_v30 = vld [vmem:[%s7330_s3 + $0x88] sm:$0xff]  ;;  %2074 = vrot.lane.b32.xlu2 %v1992_v19, %s2855_s22  ;;  %vm4810_vm0 = vcmp.eq.s32.totalorder %v384_v10, 0  ;;  %v1204_v19 = vpop.permute.xlu1 %1203  ;;  %vm4822_vm15 = vcmp.eq.s32.totalorder %v370_v46, 0  ;;  %v7949_v10 = vmov 0 }
 0x19c   :  { %v1282_v9 = vsel %vm7936_vm1, %v4324_v17, %v1196_v24  ;;  %v1418_v41 = vsel %vm4724_vm11, %v1087_v25, %v1281_v63  ;;  %v4771_v17 = vld [vmem:[%s7328_s1 + $0x28] sm:$0xff]  ;;  %v1990_v25 = vld [vmem:[%s7330_s3 + $0x80] sm:$0xff]  ;;  %v377_v63 = vand.u32 1, %v75_v18  ;;  %v1883_v47 = vadd.f32 %v1819_v1, %v4590_v28  ;;  %v2766_v18 = vld [vmem:[%s7326_s2 + $0x158] sm:$0xff]  ;;  %2072 = vrot.lane.b32.xlu1 %v1991_v30, %s2855_s22  ;;  %v4820_v1 = vpop.permute.xlu2 %1223 }
 0x19d   :  { %v1417_v26 = vsel %vm4720_vm14, %v1088_v62, %v1282_v9  ;;  %7937 = vst [vmem:[#allocation35_spill] sm:$0xff] %v4771_v17  ;;  %v7939_v62 = vperm.slane %v4569_v59, 4  ;;  %v7940_v9 = vperm.slane %v4251_v4, 7  ;;  %v4799_v32 = vmul.f32 %v2766_v18, %v7942_v21  ;;  %2070 = vrot.lane.b32.xlu0 %v1990_v25, %s2855_s22  ;;  %v7955_v46 = vld [vmem:[#allocation55_spill] sm:$0xff] }
 0x19e   :  { %v1817_v24 = vmul.f32 %v7938_v39, %v1417_v26  ;;  %v2765_v26 = vld [vmem:[%s7326_s2 + $0x160] sm:$0xff]  ;;  %v7941_v39 = vperm.slane %v4602_v55, 4  ;;  %1947 = vst [vmem:[%s7329_s4 + $0x128] sm:$0xff] %v1883_v47  ;;  %v7943_v28 = vmov 0  ;;  %v79_v21 = vadd.s32 5504, %v3537_v31 }
 0x19f   :  { %v1818_v52 = vmul.f32 %v7939_v62, %v1418_v41  ;;  %v1621_v6 = vmul.f32 %v2764_v45, %v7940_v9  ;;  %v7944_v28 = vsel %vm4810_vm0, 4294967295, %v7943_v28  ;;  %v7946_v30 = vmov 0  ;;  %v7953_v47 = vld [vmem:[#allocation54_spill] sm:$0xff]  ;;  %v1202_v62 = vpop.permute.xlu0 %1201 }
 0x1a0   :  { %v4790_v41 = vmul.f32 %v2765_v26, %v7941_v39  ;;  %v1881_v45 = vadd.f32 %v1817_v24, %v4434_v23  ;;  %v7493_v26 = vperm.slane %v4771_v17, 0  ;;  %7945 = vst [vmem:[#allocation45_spill] sm:$0xff] %v7944_v28  ;;  %v7947_v30 = vsel %vm4822_vm15, 4294967295, %v7946_v30  ;;  %v7952_v39 = vld [vmem:[#allocation44_spill] sm:$0xff] }
 0x1a1   :  { %v1882_v9 = vadd.f32 %v1818_v52, %v4597_v49  ;;  %7948 = vst [vmem:[#allocation46_spill] sm:$0xff] %v7947_v30  ;;  %vm4826_vm9 = vcmp.eq.s32.totalorder %v377_v63, 0  ;;  %v77_v24 = vadd.s32 5248, %v3537_v31  ;;  %v78_v52 = vadd.s32 5376, %v3537_v31 }
 0x1a2   :  { %1945 = vst [vmem:[%s7329_s4 + $0x118] sm:$0xff] %v1881_v45  ;;  %v7950_v10 = vsel %vm4826_vm9, 4294967295, %v7949_v10  ;;  %vm7954_vm1 = vcmp.lt.s32.totalorder %v3537_v31, 127  ;;  %vm7957_vm11 = vcmp.lt.s32.totalorder %v3537_v31, 1 }
 0x1a3   :  { %7951 = vst [vmem:[#allocation38_spill] sm:$0xff] %v7950_v10  ;;  %v1083_v18 = vsel %vm7954_vm1, %v7953_v47, %v7952_v39  ;;  %vm7956_vm12 = vmmov %vm7954_vm1  ;;  %v1277_v63 = vsel %vm7957_vm11, %v1204_v19, %v4516_v33 }
 0x1a4   :  { %v1084_v45 = vsel %vm7956_vm12, %v7955_v46, %v7953_v47  ;;  %1946 = vst [vmem:[%s7329_s4 + $0x120] sm:$0xff] %v1882_v9  ;;  %vm7958_vm14 = vmmov %vm7954_vm1  ;;  %v1422_v49 = vsel %vm4810_vm0, %v1083_v18, %v1277_v63  ;;  %v7962_v18 = vperm.slane %v4569_v59, 7  ;;  %v398_v63 = vand.u32 1, %v78_v52 }
 0x1a5   :  { %v1085_v25 = vsel %vm7958_vm14, %v7928_v13, %v7955_v46  ;;  %vm7959_vm1 = vmmov %vm7957_vm11  ;;  %v1822_v23 = vmul.f32 %v7493_v26, %v1422_v49  ;;  %v4867_v13 = vld [vmem:[%s7330_s3 + $0xa8] sm:$0xff]  ;;  %v4881_v46 = vld [vmem:[%s7330_s3 + $0x98] sm:$0xff]  ;;  %v7497_v26 = vperm.slane %v4602_v55, 6 }
 0x1a6   :  { %v1278_v47 = vsel %vm7959_vm1, %v1202_v62, %v1204_v19  ;;  %vm7960_vm12 = vmmov %vm7959_vm1  ;;  %v4872_v19 = vld [vmem:[%s7330_s3 + $0xa0] sm:$0xff]  ;;  %2080 = vrot.lane.b32.xlu2 %v4867_v13, %s2855_s22  ;;  %2076 = vrot.lane.b32.xlu0 %v4881_v46, %s2855_s22  ;;  %vm4925_vm1 = vcmp.eq.s32.totalorder %v398_v63, 0 }
 0x1a7   :  { %v1279_v9 = vsel %vm7960_vm12, %v4417_v34, %v1202_v62  ;;  %v1421_v8 = vsel %vm4826_vm9, %v1084_v45, %v1278_v47  ;;  %v405_v34 = vand.u32 1, %v79_v21  ;;  %v7961_v62 = vperm.slane %v4569_v59, 6  ;;  %v2767_v47 = vld [vmem:[%s7326_s2 + $0x150] sm:$0xff]  ;;  %2078 = vrot.lane.b32.xlu1 %v4872_v19, %s2855_s22 }
 0x1a8   :  { %v1420_v54 = vsel %vm4822_vm15, %v1085_v25, %v1279_v9  ;;  %v1821_v25 = vmul.f32 %v7962_v18, %v1421_v8  ;;  %v391_v45 = vand.u32 1, %v77_v24  ;;  %v7963_v9 = vperm.slane %v4602_v55, 2 }
 0x1a9   :  { %v1820_v49 = vmul.f32 %v7961_v62, %v1420_v54  ;;  %v1886_v8 = vadd.f32 %v1822_v23, %v4694_v35  ;;  %v2768_v62 = vld [vmem:[%s7326_s2 + $0x178] sm:$0xff]  ;;  %v7964_v24 = vperm.slane %v4602_v55, 7  ;;  %vm4909_vm14 = vcmp.eq.s32.totalorder %v405_v34, 0 }
 0x1aa   :  { %v1624_v21 = vmul.f32 %v2767_v47, %v7963_v9  ;;  %v1885_v28 = vadd.f32 %v1821_v25, %v1621_v6  ;;  %v7965_v35 = vmov 0  ;;  %v82_v23 = vadd.s32 5888, %v3537_v31  ;;  %v1210_v25 = vpop.permute.xlu1 %1209  ;;  %v7975_v54 = vld [vmem:[#allocation57_spill] sm:$0xff]  ;;  %v7977_v6 = vld [vmem:[#allocation58_spill] sm:$0xff] }
 0x1ab   :  { %v4896_v52 = vmul.f32 %v2768_v62, %v7964_v24  ;;  %v1884_v18 = vadd.f32 %v1820_v49, %v4583_v11  ;;  %1950 = vst [vmem:[%s7329_s4 + $0x140] sm:$0xff] %v1886_v8  ;;  %v7966_v35 = vsel %vm4909_vm14, 4294967295, %v7965_v35  ;;  %v4919_v49 = vpop.permute.xlu2 %1229  ;;  %vm4921_vm11 = vcmp.eq.s32.totalorder %v391_v45, 0  ;;  %v2769_v24 = vld [vmem:[%s7326_s2 + $0x170] sm:$0xff]  ;;  %v7974_v45 = vld [vmem:[#allocation47_spill] sm:$0xff] }
 0x1ac   :  { %7967 = vst [vmem:[#allocation48_spill] sm:$0xff] %v7966_v35  ;;  %v7968_v9 = vmov 0  ;;  %v7971_v34 = vmov 0  ;;  %v80_v8 = vadd.s32 5632, %v3537_v31  ;;  %v81_v62 = vadd.s32 5760, %v3537_v31 }
 0x1ad   :  { %1948 = vst [vmem:[%s7329_s4 + $0x130] sm:$0xff] %v1884_v18  ;;  %v7969_v9 = vsel %vm4921_vm11, 4294967295, %v7968_v9  ;;  %v7972_v34 = vsel %vm4925_vm1, 4294967295, %v7971_v34  ;;  %v4936_v18 = vmul.f32 %v2769_v24, %v7497_v26  ;;  %vm7976_vm12 = vcmp.lt.s32.totalorder %v3537_v31, 127  ;;  %v1208_v24 = vpop.permute.xlu0 %1207  ;;  %v4955_v26 = vld [vmem:[%s7327_s0 + $0x30] sm:$0xff] }
 0x1ae   :  { %7970 = vst [vmem:[#allocation49_spill] sm:$0xff] %v7969_v9  ;;  %v1080_v63 = vsel %vm7976_vm12, %v7975_v54, %v7974_v45  ;;  %vm7978_vm0 = vmmov %vm7976_vm12  ;;  %vm7979_vm9 = vcmp.lt.s32.totalorder %v3537_v31, 1  ;;  %v7984_v59 = vperm.slane %v4771_v17, 3 }
 0x1af   :  { %7973 = vst [vmem:[#allocation41_spill] sm:$0xff] %v7972_v34  ;;  %v1081_v11 = vsel %vm7978_vm0, %v7977_v6, %v7975_v54  ;;  %v1274_v47 = vsel %vm7979_vm9, %v1210_v25, %v4625_v53  ;;  %vm7981_vm12 = vmmov %vm7978_vm0  ;;  %v8006_v34 = vperm.slane %v4771_v17, 6 }
 0x1b0   :  { %1949 = vst [vmem:[%s7329_s4 + $0x138] sm:$0xff] %v1885_v28  ;;  %v1082_v10 = vsel %vm7981_vm12, %v7952_v39, %v7977_v6  ;;  %v1425_v54 = vsel %vm4909_vm14, %v1080_v63, %v1274_v47  ;;  %vm7982_vm0 = vmmov %vm7979_vm9  ;;  %v4977_v39 = vld [vmem:[%s7330_s3 + $0xc0] sm:$0xff]  ;;  %v4982_v47 = vld [vmem:[%s7330_s3 + $0xb8] sm:$0xff]  ;;  %v7985_v6 = vperm.slane %v4771_v17, 1  ;;  %v419_v63 = vand.u32 1, %v81_v62 }
 0x1b1   :  { %7980 = vst [vmem:[#allocation51_spill] sm:$0xff] %v4955_v26  ;;  %v1275_v28 = vsel %vm7982_vm0, %v1208_v24, %v1210_v25  ;;  %vm7983_vm9 = vmmov %vm7982_vm0  ;;  %v1825_v4 = vmul.f32 %v7984_v59, %v1425_v54  ;;  %v7986_v25 = vperm.slane %v4771_v17, 2  ;;  %v7987_v54 = vperm.slane %v4602_v55, 5  ;;  %2086 = vrot.lane.b32.xlu2 %v4977_v39, %s2855_s22  ;;  %2084 = vrot.lane.b32.xlu1 %v4982_v47, %s2855_s22 }
 0x1b2   :  { %v1276_v30 = vsel %vm7983_vm9, %v4516_v33, %v1208_v24  ;;  %v1424_v29 = vsel %vm4925_vm1, %v1081_v11, %v1275_v28  ;;  %v426_v33 = vand.u32 1, %v82_v23  ;;  %v412_v11 = vand.u32 1, %v80_v8  ;;  %v2770_v24 = vld [vmem:[%s7326_s2 + $0x168] sm:$0xff] }
 0x1b3   :  { %v1423_v61 = vsel %vm4921_vm11, %v1082_v10, %v1276_v30  ;;  %v1824_v30 = vmul.f32 %v7986_v25, %v1424_v29  ;;  %v4991_v10 = vld [vmem:[%s7330_s3 + $0xb0] sm:$0xff]  ;;  %v1627_v23 = vmul.f32 %v2770_v24, %v7987_v54  ;;  %v7512_v28 = vperm.slane %v4955_v26, 2  ;;  %v5023_v62 = vpop.permute.xlu2 %1235 }
 0x1b4   :  { %v1823_v59 = vmul.f32 %v7985_v6, %v1423_v61  ;;  %v1889_v29 = vadd.f32 %v1825_v4, %v4799_v32  ;;  %2082 = vrot.lane.b32.xlu0 %v4991_v10, %s2855_s22  ;;  %vm5013_vm12 = vcmp.eq.s32.totalorder %v426_v33, 0  ;;  %v7988_v4 = vmov 0  ;;  %v7998_v6 = vld [vmem:[#allocation60_spill] sm:$0xff]  ;;  %v8000_v61 = vld [vmem:[#allocation61_spill] sm:$0xff] }
 0x1b5   :  { %v1888_v35 = vadd.f32 %v1824_v30, %v1624_v21  ;;  %v7989_v4 = vsel %vm5013_vm12, 4294967295, %v7988_v4  ;;  %v85_v21 = vadd.s32 6272, %v3537_v31  ;;  %vm5025_vm0 = vcmp.eq.s32.totalorder %v412_v11, 0  ;;  %v7997_v11 = vld [vmem:[#allocation50_spill] sm:$0xff] }
 0x1b6   :  { %v1887_v25 = vadd.f32 %v1823_v59, %v4687_v60  ;;  %1953 = vst [vmem:[%s7329_s4 + $0x158] sm:$0xff] %v1889_v29  ;;  %v1216_v59 = vpop.permute.xlu1 %1215  ;;  %v7991_v30 = vmov 0  ;;  %vm5029_vm9 = vcmp.eq.s32.totalorder %v419_v63, 0  ;;  %v7994_v33 = vmov 0  ;;  %v2771_v29 = vld [vmem:[%s7326_s2 + $0x190] sm:$0xff] }
 0x1b7   :  { %7990 = vst [vmem:[#allocation52_spill] sm:$0xff] %v7989_v4  ;;  %v7992_v30 = vsel %vm5025_vm0, 4294967295, %v7991_v30  ;;  %v7995_v33 = vsel %vm5029_vm9, 4294967295, %v7994_v33  ;;  %v83_v24 = vadd.s32 6016, %v3537_v31  ;;  %v84_v54 = vadd.s32 6144, %v3537_v31 }
 0x1b8   :  { %1951 = vst [vmem:[%s7329_s4 + $0x148] sm:$0xff] %v1887_v25  ;;  %v5040_v25 = vmul.f32 %v2771_v29, %v7512_v28  ;;  %vm7999_vm14 = vcmp.lt.s32.totalorder %v3537_v31, 127  ;;  %vm8002_vm11 = vcmp.lt.s32.totalorder %v3537_v31, 1  ;;  %v1214_v29 = vpop.permute.xlu0 %1213 }
 0x1b9   :  { %7993 = vst [vmem:[#allocation44_spill] sm:$0xff] %v7992_v30  ;;  %v1077_v63 = vsel %vm7999_vm14, %v7998_v6, %v7997_v11  ;;  %vm8001_vm1 = vmmov %vm7999_vm14  ;;  %v1271_v60 = vsel %vm8002_vm11, %v1216_v59, %v4718_v20 }
 0x1ba   :  { %7996 = vst [vmem:[#allocation54_spill] sm:$0xff] %v7995_v33  ;;  %v1078_v32 = vsel %vm8001_vm1, %v8000_v61, %v7998_v6  ;;  %vm8003_vm15 = vmmov %vm8001_vm1  ;;  %v1428_v8 = vsel %vm5013_vm12, %v1077_v63, %v1271_v60  ;;  %v8009_v60 = vperm.slane %v4771_v17, 5  ;;  %v433_v63 = vand.u32 1, %v83_v24  ;;  %v8021_v24 = vld [vmem:[#allocation53_spill] sm:$0xff] }
 0x1bb   :  { %1952 = vst [vmem:[%s7329_s4 + $0x150] sm:$0xff] %v1888_v35  ;;  %v1079_v28 = vsel %vm8003_vm15, %v7974_v45, %v8000_v61  ;;  %vm8004_vm14 = vmmov %vm8002_vm11  ;;  %v1828_v9 = vmul.f32 %v8006_v34, %v1428_v8  ;;  %v5076_v45 = vld [vmem:[%s7330_s3 + $0xd8] sm:$0xff]  ;;  %v5081_v61 = vld [vmem:[%s7330_s3 + $0xd0] sm:$0xff] }
 0x1bc   :  { %v1272_v6 = vsel %vm8004_vm14, %v1214_v29, %v1216_v59  ;;  %vm8005_vm1 = vmmov %vm8002_vm11  ;;  %v5086_v34 = vld [vmem:[%s7328_s1 + $0x30] sm:$0xff]  ;;  %v5095_v59 = vld [vmem:[%s7330_s3 + $0xc8] sm:$0xff]  ;;  %2092 = vrot.lane.b32.xlu2 %v5076_v45, %s2855_s22  ;;  %2090 = vrot.lane.b32.xlu1 %v5081_v61, %s2855_s22  ;;  %vm5133_vm11 = vcmp.eq.s32.totalorder %v433_v63, 0 }
 0x1bd   :  { %v1273_v35 = vsel %vm8005_vm1, %v4625_v53, %v1214_v29  ;;  %v1427_v22 = vsel %vm5029_vm9, %v1078_v32, %v1272_v6  ;;  %v447_v53 = vand.u32 1, %v85_v21  ;;  %8007 = vst [vmem:[#allocation55_spill] sm:$0xff] %v5086_v34  ;;  %v440_v29 = vand.u32 1, %v84_v54  ;;  %v2772_v21 = vld [vmem:[%s7326_s2 + $0x188] sm:$0xff]  ;;  %2088 = vrot.lane.b32.xlu0 %v5095_v59, %s2855_s22  ;;  %v8024_v63 = vld [vmem:[#allocation64_spill] sm:$0xff] }
 0x1be   :  { %v1426_v55 = vsel %vm5025_vm0, %v1079_v28, %v1273_v35  ;;  %v8008_v28 = vperm.slane %v4771_v17, 4  ;;  %v1827_v32 = vmul.f32 %v8009_v60, %v1427_v22  ;;  %v8010_v6 = vperm.slane %v4955_v26, 1  ;;  %v8022_v60 = vld [vmem:[#allocation63_spill] sm:$0xff] }
 0x1bf   :  { %v8011_v22 = vperm.slane %v4955_v26, 0  ;;  %v1892_v4 = vadd.f32 %v1828_v9, %v4936_v18  ;;  %vm5121_vm15 = vcmp.eq.s32.totalorder %v447_v53, 0  ;;  %v8012_v9 = vmov 0 }
 0x1c0   :  { %v1826_v8 = vmul.f32 %v8008_v28, %v1426_v55  ;;  %v1631_v35 = vmul.f32 %v2772_v21, %v8010_v6  ;;  %v2773_v55 = vld [vmem:[%s7326_s2 + $0x180] sm:$0xff]  ;;  %v1891_v33 = vadd.f32 %v1827_v32, %v1627_v23  ;;  %v8013_v9 = vsel %vm5121_vm15, 4294967295, %v8012_v9 }
 0x1c1   :  { %v1630_v28 = vmul.f32 %v2773_v55, %v8011_v22  ;;  %1956 = vst [vmem:[%s7329_s4 + $0x170] sm:$0xff] %v1892_v4  ;;  %v88_v23 = vadd.s32 6656, %v3537_v31  ;;  %v1222_v4 = vpop.permute.xlu1 %1221  ;;  %v8015_v32 = vmov 0  ;;  %vm5137_vm14 = vcmp.eq.s32.totalorder %v440_v29, 0 }
 0x1c2   :  { %v1890_v54 = vadd.f32 %v1826_v8, %v4790_v41  ;;  %8014 = vst [vmem:[#allocation47_spill] sm:$0xff] %v8013_v9  ;;  %v5131_v8 = vpop.permute.xlu2 %1241  ;;  %v8016_v32 = vsel %vm5133_vm11, 4294967295, %v8015_v32  ;;  %v8018_v53 = vmov 0  ;;  %v86_v6 = vadd.s32 6400, %v3537_v31  ;;  %v1220_v41 = vpop.permute.xlu0 %1219  ;;  %v8045_v9 = vld [vmem:[#allocation56_spill] sm:$0xff] }
 0x1c3   :  { %8017 = vst [vmem:[#allocation57_spill] sm:$0xff] %v8016_v32  ;;  %v8019_v53 = vsel %vm5137_vm14, 4294967295, %v8018_v53  ;;  %v87_v55 = vadd.s32 6528, %v3537_v31  ;;  %vm8023_vm1 = vcmp.lt.s32.totalorder %v3537_v31, 127  ;;  %vm8026_vm9 = vcmp.lt.s32.totalorder %v3537_v31, 1 }
 0x1c4   :  { %1954 = vst [vmem:[%s7329_s4 + $0x160] sm:$0xff] %v1890_v54  ;;  %v1074_v54 = vsel %vm8023_vm1, %v8022_v60, %v8021_v24  ;;  %vm8025_vm12 = vmmov %vm8023_vm1  ;;  %v1268_v29 = vsel %vm8026_vm9, %v1222_v4, %v4820_v1  ;;  %v8030_v30 = vperm.slane %v5086_v34, 1 }
 0x1c5   :  { %8020 = vst [vmem:[#allocation58_spill] sm:$0xff] %v8019_v53  ;;  %v1075_v18 = vsel %vm8025_vm12, %v8024_v63, %v8022_v60  ;;  %vm8027_vm0 = vmmov %vm8023_vm1  ;;  %v1431_v21 = vsel %vm5121_vm15, %v1074_v54, %v1268_v29  ;;  %v454_v54 = vand.u32 1, %v86_v6  ;;  %v2774_v29 = vld [vmem:[%s7326_s2 + $0x1a8] sm:$0xff]  ;;  %v2776_v6 = vld [vmem:[%s7326_s2 + $0x198] sm:$0xff] }
 0x1c6   :  { %1955 = vst [vmem:[%s7329_s4 + $0x168] sm:$0xff] %v1891_v33  ;;  %v1076_v22 = vsel %vm8027_vm0, %v7997_v11, %v8024_v63  ;;  %vm8028_vm1 = vmmov %vm8026_vm9  ;;  %v1831_v36 = vmul.f32 %v8030_v30, %v1431_v21  ;;  %v5178_v11 = vld [vmem:[%s7330_s3 + $0xf0] sm:$0xff]  ;;  %v8032_v21 = vperm.slane %v5086_v34, 0  ;;  %v461_v63 = vand.u32 1, %v87_v55 }
 0x1c7   :  { %v1269_v60 = vsel %vm8028_vm1, %v1220_v41, %v1222_v4  ;;  %vm8029_vm12 = vmmov %vm8028_vm1  ;;  %v5183_v4 = vld [vmem:[%s7330_s3 + $0xe8] sm:$0xff]  ;;  %v8035_v55 = vperm.slane %v4955_v26, 3  ;;  %2098 = vrot.lane.b32.xlu2 %v5178_v11, %s2855_s22  ;;  %vm5235_vm9 = vcmp.eq.s32.totalorder %v454_v54, 0 }
 0x1c8   :  { %v1270_v33 = vsel %vm8029_vm12, %v4718_v20, %v1220_v41  ;;  %v1430_v42 = vsel %vm5137_vm14, %v1075_v18, %v1269_v60  ;;  %v468_v20 = vand.u32 1, %v88_v23  ;;  %v8031_v41 = vperm.slane %v4771_v17, 7  ;;  %v5192_v18 = vld [vmem:[%s7330_s3 + $0xe0] sm:$0xff]  ;;  %2096 = vrot.lane.b32.xlu1 %v5183_v4, %s2855_s22  ;;  %v8048_v54 = vld [vmem:[#allocation67_spill] sm:$0xff] }
 0x1c9   :  { %v1429_v12 = vsel %vm5133_vm11, %v1076_v22, %v1270_v33  ;;  %v1830_v22 = vmul.f32 %v8032_v21, %v1430_v42  ;;  %v8033_v60 = vperm.slane %v4955_v26, 5  ;;  %v8034_v42 = vperm.slane %v4955_v26, 4  ;;  %2094 = vrot.lane.b32.xlu0 %v5192_v18, %s2855_s22 }
 0x1ca   :  { %v1829_v30 = vmul.f32 %v8031_v41, %v1429_v12  ;;  %v2775_v12 = vld [vmem:[%s7326_s2 + $0x1a0] sm:$0xff]  ;;  %v1633_v41 = vmul.f32 %v2776_v6, %v8035_v55  ;;  %v1895_v21 = vadd.f32 %v1831_v36, %v1631_v35  ;;  %vm5223_vm0 = vcmp.eq.s32.totalorder %v468_v20, 0 }
 0x1cb   :  { %v5199_v23 = vmul.f32 %v2774_v29, %v8033_v60  ;;  %v1634_v33 = vmul.f32 %v2775_v12, %v8034_v42  ;;  %v1894_v60 = vadd.f32 %v1830_v22, %v1630_v28  ;;  %v8036_v36 = vmov 0  ;;  %v1228_v22 = vpop.permute.xlu1 %1227  ;;  %v8046_v35 = vld [vmem:[#allocation66_spill] sm:$0xff]  ;;  %v1226_v12 = vpop.permute.xlu0 %1225 }
 0x1cc   :  { %v1893_v29 = vadd.f32 %v1829_v30, %v4896_v52  ;;  %1959 = vst [vmem:[%s7329_s4 + $0x188] sm:$0xff] %v1895_v21  ;;  %v8037_v36 = vsel %vm5223_vm0, 4294967295, %v8036_v36  ;;  %v91_v28 = vadd.s32 7040, %v3537_v31  ;;  %v5233_v30 = vpop.permute.xlu2 %1247  ;;  %v8039_v42 = vmov 0  ;;  %v5263_v21 = vld [vmem:[%s7327_s0 + $0x38] sm:$0xff] }
 0x1cd   :  { %8038 = vst [vmem:[#allocation50_spill] sm:$0xff] %v8037_v36  ;;  %v8040_v42 = vsel %vm5235_vm9, 4294967295, %v8039_v42  ;;  %vm5239_vm1 = vcmp.eq.s32.totalorder %v461_v63, 0  ;;  %v8042_v20 = vmov 0  ;;  %v89_v6 = vadd.s32 6784, %v3537_v31 }
 0x1ce   :  { %1957 = vst [vmem:[%s7329_s4 + $0x178] sm:$0xff] %v1893_v29  ;;  %v8043_v20 = vsel %vm5239_vm1, 4294967295, %v8042_v20  ;;  %v90_v55 = vadd.s32 6912, %v3537_v31  ;;  %vm8047_vm12 = vcmp.lt.s32.totalorder %v3537_v31, 127  ;;  %vm8050_vm14 = vcmp.lt.s32.totalorder %v3537_v31, 1 }
 0x1cf   :  { %8041 = vst [vmem:[#allocation60_spill] sm:$0xff] %v8040_v42  ;;  %v1071_v29 = vsel %vm8047_vm12, %v8046_v35, %v8045_v9  ;;  %vm8049_vm15 = vmmov %vm8047_vm12  ;;  %v1265_v63 = vsel %vm8050_vm14, %v1228_v22, %v4919_v49  ;;  %v1073_v53 = vsel %vm8047_vm12, %v8021_v24, %v8048_v54  ;;  %v1267_v32 = vsel %vm8050_vm14, %v4820_v1, %v1226_v12  ;;  %v5285_v24 = vld [vmem:[%s7330_s3 + $0x108] sm:$0xff] }
 0x1d0   :  { %8044 = vst [vmem:[#allocation61_spill] sm:$0xff] %v8043_v20  ;;  %v1072_v52 = vsel %vm8049_vm15, %v8048_v54, %v8046_v35  ;;  %v1434_v35 = vsel %vm5223_vm0, %v1071_v29, %v1265_v63  ;;  %vm8052_vm15 = vmmov %vm8050_vm14  ;;  %v8053_v17 = vperm.slane %v5086_v34, 4  ;;  %v1432_v50 = vsel %vm5235_vm9, %v1073_v53, %v1267_v32  ;;  %v5299_v53 = vld [vmem:[%s7330_s3 + $0xf8] sm:$0xff]  ;;  %2104 = vrot.lane.b32.xlu2 %v5285_v24, %s2855_s22 }
 0x1d1   :  { %1958 = vst [vmem:[%s7329_s4 + $0x180] sm:$0xff] %v1894_v60  ;;  %v1266_v60 = vsel %vm8052_vm15, %v1226_v12, %v1228_v22  ;;  %v5290_v22 = vld [vmem:[%s7330_s3 + $0x100] sm:$0xff]  ;;  %v489_v1 = vand.u32 1, %v91_v28  ;;  %v8054_v12 = vperm.slane %v5086_v34, 2  ;;  %v8055_v29 = vperm.slane %v5086_v34, 3  ;;  %2100 = vrot.lane.b32.xlu0 %v5299_v53, %s2855_s22 }
 0x1d2   :  { %8051 = vst [vmem:[#allocation53_spill] sm:$0xff] %v5263_v21  ;;  %v1834_v16 = vmul.f32 %v8053_v17, %v1434_v35  ;;  %v1433_v57 = vsel %vm5239_vm1, %v1072_v52, %v1266_v60  ;;  %v475_v52 = vand.u32 1, %v89_v6  ;;  %v482_v54 = vand.u32 1, %v90_v55  ;;  %v2777_v35 = vld [vmem:[%s7326_s2 + $0x1b8] sm:$0xff]  ;;  %2102 = vrot.lane.b32.xlu1 %v5290_v22, %s2855_s22  ;;  %v8068_v6 = vld [vmem:[#allocation59_spill] sm:$0xff] }
 0x1d3   :  { %v1832_v17 = vmul.f32 %v8054_v12, %v1432_v50  ;;  %v1833_v32 = vmul.f32 %v8055_v29, %v1433_v57  ;;  %v8056_v28 = vperm.slane %v4955_v26, 7  ;;  %v2778_v57 = vld [vmem:[%s7326_s2 + $0x1b0] sm:$0xff]  ;;  %v8057_v50 = vperm.slane %v4955_v26, 6 }
 0x1d4   :  { %v1898_v29 = vadd.f32 %v1834_v16, %v1634_v33  ;;  %vm5324_vm12 = vcmp.eq.s32.totalorder %v489_v1, 0  ;;  %v8058_v16 = vmov 0  ;;  %vm5336_vm15 = vcmp.eq.s32.totalorder %v475_v52, 0  ;;  %v8069_v33 = vld [vmem:[#allocation68_spill] sm:$0xff]  ;;  %v8071_v52 = vld [vmem:[#allocation69_spill] sm:$0xff] }
 0x1d5   :  { %v1637_v60 = vmul.f32 %v2777_v35, %v8056_v28  ;;  %v1636_v12 = vmul.f32 %v2778_v57, %v8057_v50  ;;  %v1896_v55 = vadd.f32 %v1832_v17, %v5040_v25  ;;  %v1897_v63 = vadd.f32 %v1833_v32, %v1633_v41  ;;  %v5334_v17 = vpop.permute.xlu2 %2038  ;;  %v1234_v32 = vpop.permute.xlu1 %1233 }
 0x1d6   :  { %1962 = vst [vmem:[%s7329_s4 + $0x1a0] sm:$0xff] %v1898_v29  ;;  %v8059_v16 = vsel %vm5324_vm12, 4294967295, %v8058_v16  ;;  %v94_v41 = vadd.s32 7424, %v3537_v31  ;;  %v8062_v28 = vmov 0  ;;  %vm5340_vm14 = vcmp.eq.s32.totalorder %v482_v54, 0  ;;  %v1232_v35 = vpop.permute.xlu0 %1231 }
 0x1d7   :  { %8060 = vst [vmem:[#allocation63_spill] sm:$0xff] %v8059_v16  ;;  %v8063_v28 = vsel %vm5336_vm15, 4294967295, %v8062_v28  ;;  %v8065_v1 = vmov 0  ;;  %v92_v57 = vadd.s32 7168, %v3537_v31  ;;  %v93_v50 = vadd.s32 7296, %v3537_v31  ;;  %v8094_v16 = vld [vmem:[#allocation70_spill] sm:$0xff] }
 0x1d8   :  { %1960 = vst [vmem:[%s7329_s4 + $0x190] sm:$0xff] %v1896_v55  ;;  %v8066_v1 = vsel %vm5340_vm14, 4294967295, %v8065_v1  ;;  %vm8070_vm0 = vcmp.lt.s32.totalorder %v3537_v31, 127  ;;  %vm8073_vm9 = vcmp.lt.s32.totalorder %v3537_v31, 1  ;;  %v8077_v36 = vperm.slane %v5086_v34, 7 }
 0x1d9   :  { %8061 = vst [vmem:[#allocation64_spill] sm:$0xff] %v5334_v17  ;;  %v1068_v55 = vsel %vm8070_vm0, %v8069_v33, %v8068_v6  ;;  %vm8072_vm1 = vmmov %vm8070_vm0  ;;  %v1262_v54 = vsel %vm8073_vm9, %v1234_v32, %v5023_v62 }
 0x1da   :  { %8064 = vst [vmem:[#allocation56_spill] sm:$0xff] %v8063_v28  ;;  %v1069_v25 = vsel %vm8072_vm1, %v8071_v52, %v8069_v33  ;;  %vm8074_vm11 = vmmov %vm8070_vm0  ;;  %v1437_v17 = vsel %vm5324_vm12, %v1068_v55, %v1262_v54  ;;  %v5400_v55 = vld [vmem:[%s7330_s3 + $0x110] sm:$0xff]  ;;  %v503_v54 = vand.u32 1, %v93_v50  ;;  %v8083_v50 = vperm.slane %v5263_v21, 1 }
 0x1db   :  { %8067 = vst [vmem:[#allocation66_spill] sm:$0xff] %v8066_v1  ;;  %v1070_v29 = vsel %vm8074_vm11, %v8045_v9, %v8071_v52  ;;  %vm8075_vm0 = vmmov %vm8073_vm9  ;;  %v1837_v20 = vmul.f32 %v8077_v36, %v1437_v17  ;;  %v5381_v9 = vld [vmem:[%s7330_s3 + $0x120] sm:$0xff]  ;;  %v5391_v36 = vld [vmem:[%s7328_s1 + $0x38] sm:$0xff]  ;;  %v496_v52 = vand.u32 1, %v92_v57  ;;  %2106 = vrot.lane.b32.xlu0 %v5400_v55, %s2855_s22 }
 0x1dc   :  { %1961 = vst [vmem:[%s7329_s4 + $0x198] sm:$0xff] %v1897_v63  ;;  %v1263_v33 = vsel %vm8075_vm0, %v1232_v35, %v1234_v32  ;;  %vm8076_vm1 = vmmov %vm8075_vm0  ;;  %v5386_v32 = vld [vmem:[%s7330_s3 + $0x118] sm:$0xff]  ;;  %v2781_v57 = vld [vmem:[%s7326_s2 + $0x1c8] sm:$0xff]  ;;  %2110 = vrot.lane.b32.xlu2 %v5381_v9, %s2855_s22  ;;  %vm5445_vm0 = vcmp.eq.s32.totalorder %v503_v54, 0 }
 0x1dd   :  { %v1264_v63 = vsel %vm8076_vm1, %v4919_v49, %v1232_v35  ;;  %v1436_v26 = vsel %vm5340_vm14, %v1069_v25, %v1263_v33  ;;  %v510_v49 = vand.u32 1, %v94_v41  ;;  %8078 = vst [vmem:[#allocation67_spill] sm:$0xff] %v5391_v36  ;;  %v8079_v35 = vperm.slane %v5086_v34, 5  ;;  %v2779_v41 = vld [vmem:[%s7326_s2 + $0x1c0] sm:$0xff]  ;;  %2108 = vrot.lane.b32.xlu1 %v5386_v32, %s2855_s22 }
 0x1de   :  { %v1435_v42 = vsel %vm5336_vm15, %v1070_v29, %v1264_v63  ;;  %v8080_v25 = vperm.slane %v5086_v34, 6  ;;  %v8081_v33 = vperm.slane %v5263_v21, 0  ;;  %v1639_v1 = vmul.f32 %v2781_v57, %v8083_v50  ;;  %v8093_v50 = vld [vmem:[#allocation62_spill] sm:$0xff] }
 0x1df   :  { %v1835_v17 = vmul.f32 %v8079_v35, %v1435_v42  ;;  %v8082_v42 = vperm.slane %v5263_v21, 2  ;;  %vm5429_vm11 = vcmp.eq.s32.totalorder %v510_v49, 0  ;;  %vm5441_vm9 = vcmp.eq.s32.totalorder %v496_v52, 0  ;;  %v8096_v52 = vld [vmem:[#allocation71_spill] sm:$0xff] }
 0x1e0   :  { %v1836_v29 = vmul.f32 %v8080_v25, %v1436_v26  ;;  %v1638_v63 = vmul.f32 %v2779_v41, %v8081_v33  ;;  %v2780_v26 = vld [vmem:[%s7326_s2 + $0x1d0] sm:$0xff]  ;;  %v1901_v25 = vadd.f32 %v1837_v20, %v1637_v60  ;;  %v8084_v20 = vmov 0 }
 0x1e1   :  { %v1640_v35 = vmul.f32 %v2780_v26, %v8082_v42  ;;  %v1899_v28 = vadd.f32 %v1835_v17, %v5199_v23  ;;  %v8085_v20 = vsel %vm5429_vm11, 4294967295, %v8084_v20  ;;  %v5439_v17 = vpop.permute.xlu2 %2044  ;;  %v8087_v26 = vmov 0  ;;  %v1238_v23 = vpop.permute.xlu0 %1237 }
 0x1e2   :  { %v1900_v41 = vadd.f32 %v1836_v29, %v1636_v12  ;;  %1965 = vst [vmem:[%s7329_s4 + $0x1b8] sm:$0xff] %v1901_v25  ;;  %v97_v12 = vadd.s32 7808, %v3537_v31  ;;  %v1240_v29 = vpop.permute.xlu1 %1239  ;;  %v8088_v26 = vsel %vm5441_vm9, 4294967295, %v8087_v26  ;;  %v8090_v49 = vmov 0 }
 0x1e3   :  { %8086 = vst [vmem:[#allocation59_spill] sm:$0xff] %v8085_v20  ;;  %v8091_v49 = vsel %vm5445_vm0, 4294967295, %v8090_v49  ;;  %v95_v42 = vadd.s32 7552, %v3537_v31  ;;  %v96_v25 = vadd.s32 7680, %v3537_v31  ;;  %vm8095_vm1 = vcmp.lt.s32.totalorder %v3537_v31, 127 }
 0x1e4   :  { %1963 = vst [vmem:[%s7329_s4 + $0x1a8] sm:$0xff] %v1899_v28  ;;  %v1065_v28 = vsel %vm8095_vm1, %v8094_v16, %v8093_v50  ;;  %vm8097_vm12 = vmmov %vm8095_vm1  ;;  %vm8098_vm14 = vcmp.lt.s32.totalorder %v3537_v31, 1  ;;  %v8102_v34 = vperm.slane %v5391_v36, 2 }
 0x1e5   :  { %8089 = vst [vmem:[#allocation68_spill] sm:$0xff] %v8088_v26  ;;  %v1066_v60 = vsel %vm8097_vm12, %v8096_v52, %v8094_v16  ;;  %v1259_v54 = vsel %vm8098_vm14, %v1240_v29, %v5131_v8  ;;  %vm8099_vm15 = vmmov %vm8095_vm1  ;;  %v8126_v26 = vperm.slane %v5391_v36, 5 }
 0x1e6   :  { %8092 = vst [vmem:[#allocation69_spill] sm:$0xff] %v8091_v49  ;;  %v1067_v57 = vsel %vm8099_vm15, %v8068_v6, %v8096_v52  ;;  %v1440_v33 = vsel %vm5429_vm11, %v1065_v28, %v1259_v54  ;;  %vm8100_vm1 = vmmov %vm8098_vm14  ;;  %v5486_v6 = vld [vmem:[%s7330_s3 + $0x138] sm:$0xff]  ;;  %v517_v28 = vand.u32 1, %v95_v42  ;;  %v524_v52 = vand.u32 1, %v96_v25  ;;  %v2784_v42 = vld [vmem:[%s7326_s2 + $0x1e8] sm:$0xff] }
 0x1e7   :  { %1964 = vst [vmem:[%s7329_s4 + $0x1b0] sm:$0xff] %v1900_v41  ;;  %v1260_v16 = vsel %vm8100_vm1, %v1238_v23, %v1240_v29  ;;  %vm8101_vm12 = vmmov %vm8100_vm1  ;;  %v1840_v3 = vmul.f32 %v8102_v34, %v1440_v33  ;;  %v5491_v29 = vld [vmem:[%s7330_s3 + $0x130] sm:$0xff]  ;;  %v8104_v33 = vperm.slane %v5391_v36, 1  ;;  %v2782_v54 = vld [vmem:[%s7326_s2 + $0x1d8] sm:$0xff]  ;;  %v8107_v25 = vperm.slane %v5263_v21, 5  ;;  %2116 = vrot.lane.b32.xlu2 %v5486_v6, %s2855_s22 }
 0x1e8   :  { %v1261_v41 = vsel %vm8101_vm12, %v5023_v62, %v1238_v23  ;;  %v1439_v2 = vsel %vm5445_vm0, %v1066_v60, %v1260_v16  ;;  %v531_v62 = vand.u32 1, %v97_v12  ;;  %v8103_v23 = vperm.slane %v5391_v36, 0  ;;  %v5500_v60 = vld [vmem:[%s7330_s3 + $0x128] sm:$0xff]  ;;  %2114 = vrot.lane.b32.xlu1 %v5491_v29, %s2855_s22 }
 0x1e9   :  { %v1438_v44 = vsel %vm5441_vm9, %v1067_v57, %v1261_v41  ;;  %v1839_v57 = vmul.f32 %v8104_v33, %v1439_v2  ;;  %v8105_v16 = vperm.slane %v5263_v21, 3  ;;  %v7565_v41 = vperm.slane %v5263_v21, 4  ;;  %v5511_v2 = vld [vmem:[%s7327_s0] sm:$0xff]  ;;  %2112 = vrot.lane.b32.xlu0 %v5500_v60, %s2855_s22 }
 0x1ea   :  { %v1838_v34 = vmul.f32 %v8103_v23, %v1438_v44  ;;  %v1904_v44 = vadd.f32 %v1840_v3, %v1640_v35  ;;  %8106 = vst [vmem:[#allocation62_spill] sm:$0xff] %v5511_v2  ;;  %v1643_v33 = vmul.f32 %v2784_v42, %v8107_v25  ;;  %vm5528_vm15 = vcmp.eq.s32.totalorder %v531_v62, 0  ;;  %v2785_v42 = vld [vmem:[%s7326_s2 + $0x1e0] sm:$0xff]  ;;  %v8117_v25 = vld [vmem:[#allocation65_spill] sm:$0xff] }
 0x1eb   :  { %v1641_v12 = vmul.f32 %v2782_v54, %v8105_v16  ;;  %v1903_v49 = vadd.f32 %v1839_v57, %v1639_v1  ;;  %v8108_v3 = vmov 0  ;;  %v1246_v57 = vpop.permute.xlu1 %1245  ;;  %vm5540_vm14 = vcmp.eq.s32.totalorder %v517_v28, 0  ;;  %v8118_v28 = vld [vmem:[#allocation72_spill] sm:$0xff] }
 0x1ec   :  { %v1902_v20 = vadd.f32 %v1838_v34, %v1638_v63  ;;  %1968 = vst [vmem:[%s7329_s4 + $0x1d0] sm:$0xff] %v1904_v44  ;;  %v8109_v3 = vsel %vm5528_vm15, 4294967295, %v8108_v3  ;;  %v5538_v34 = vpop.permute.xlu2 %2050  ;;  %v8111_v54 = vmov 0  ;;  %vm5544_vm1 = vcmp.eq.s32.totalorder %v524_v52, 0  ;;  %v8120_v52 = vld [vmem:[#allocation73_spill] sm:$0xff]  ;;  %v1244_v63 = vpop.permute.xlu0 %1243 }
 0x1ed   :  { %8110 = vst [vmem:[#allocation70_spill] sm:$0xff] %v8109_v3  ;;  %v8112_v54 = vsel %vm5540_vm14, 4294967295, %v8111_v54  ;;  %v8114_v62 = vmov 0  ;;  %v98_v16 = vadd.s32 7936, %v3537_v31  ;;  %v99_v44 = vadd.s32 8064, %v3537_v31 }
 0x1ee   :  { %1966 = vst [vmem:[%s7329_s4 + $0x1c0] sm:$0xff] %v1902_v20  ;;  %v8115_v62 = vsel %vm5544_vm1, 4294967295, %v8114_v62  ;;  %v1642_v20 = vmul.f32 %v2785_v42, %v7565_v41  ;;  %vm8119_vm12 = vcmp.lt.s32.totalorder %v3537_v31, 127  ;;  %vm8122_vm0 = vcmp.lt.s32.totalorder %v3537_v31, 1 }
 0x1ef   :  { %8113 = vst [vmem:[#allocation71_spill] sm:$0xff] %v8112_v54  ;;  %v1062_v23 = vsel %vm8119_vm12, %v8118_v28, %v8117_v25  ;;  %vm8121_vm11 = vmmov %vm8119_vm12  ;;  %v1256_v1 = vsel %vm8122_vm0, %v1246_v57, %v5233_v30 }
 0x1f0   :  { %8116 = vst [vmem:[#allocation80_spill] sm:$0xff] %v8115_v62  ;;  %v1063_v35 = vsel %vm8121_vm11, %v8120_v52, %v8118_v28  ;;  %vm8123_vm9 = vmmov %vm8121_vm11  ;;  %v1443_v41 = vsel %vm5528_vm15, %v1062_v23, %v1256_v1  ;;  %v5594_v23 = vld [vmem:[%s7330_s3 + $0x148] sm:$0xff]  ;;  %vm8144_vm15 = vcmp.lt.s32.totalorder %v3537_v31, 1 }
 0x1f1   :  { %1967 = vst [vmem:[%s7329_s4 + $0x1c8] sm:$0xff] %v1903_v49  ;;  %v1064_v42 = vsel %vm8123_vm9, %v8093_v50, %v8120_v52  ;;  %vm8124_vm12 = vmmov %vm8122_vm0  ;;  %v1843_v5 = vmul.f32 %v8126_v26, %v1443_v41  ;;  %v5589_v50 = vld [vmem:[%s7330_s3 + $0x150] sm:$0xff]  ;;  %v8127_v26 = vperm.slane %v5391_v36, 3  ;;  %v545_v52 = vand.u32 1, %v99_v44  ;;  %2120 = vrot.lane.b32.xlu1 %v5594_v23, %s2855_s22 }
 0x1f2   :  { %v1257_v28 = vsel %vm8124_vm12, %v1244_v63, %v1246_v57  ;;  %vm8125_vm11 = vmmov %vm8122_vm0  ;;  %v538_v57 = vand.u32 1, %v98_v16  ;;  %2122 = vrot.lane.b32.xlu2 %v5589_v50, %s2855_s22  ;;  %v8130_v44 = vld [vmem:[#allocation8_spill] sm:$0xff] }
 0x1f3   :  { %v1258_v49 = vsel %vm8125_vm11, %v5131_v8, %v1244_v63  ;;  %v1442_v37 = vsel %vm5544_vm1, %v1063_v35, %v1257_v28  ;;  %v104_v8 = vand.u32 1, %v3537_v31  ;;  %v8128_v63 = vperm.slane %v5391_v36, 4  ;;  %v5604_v35 = vld [vmem:[%s7330_s3 + $0x140] sm:$0xff]  ;;  %vm8145_vm1 = vmmov %vm8123_vm9 }
 0x1f4   :  { %v1441_v40 = vsel %vm5540_vm14, %v1064_v42, %v1258_v49  ;;  %v7573_v42 = vperm.slane %v5263_v21, 6  ;;  %v7576_v28 = vperm.slane %v5263_v21, 7  ;;  %v1907_v49 = vadd.f32 %v1843_v5, %v1643_v33  ;;  %2118 = vrot.lane.b32.xlu0 %v5604_v35, %s2855_s22  ;;  %v5633_v33 = vld [vmem:[%s7328_s1] sm:$0xff]  ;;  %vm8146_vm14 = vmmov %vm8144_vm15 }
 0x1f5   :  { %v1841_v41 = vmul.f32 %v8127_v26, %v1441_v40  ;;  %v1842_v1 = vmul.f32 %v8128_v63, %v1442_v37  ;;  %v2786_v40 = vld [vmem:[%s7326_s2] sm:$0xff]  ;;  %v8129_v37 = vperm.slane %v5511_v2, 0  ;;  %vm5626_vm0 = vcmp.eq.s32.totalorder %v104_v8, 0  ;;  %8135 = vst [vmem:[#allocation72_spill] sm:$0xff] %v5633_v33  ;;  %v1252_v63 = vpop.permute.xlu1 %1251 }
 0x1f6   :  { %v8131_v26 = vld [vmem:[#allocation6_spill] sm:$0xff]  ;;  %1971 = vst [vmem:[%s7329_s4 + $0x1e8] sm:$0xff] %v1907_v49  ;;  %vm5641_vm12 = vcmp.eq.s32.totalorder %v538_v57, 0  ;;  %vm5645_vm11 = vcmp.eq.s32.totalorder %v545_v52, 0  ;;  %v8139_v8 = vmov 0  ;;  %v2789_v57 = vld [vmem:[%s7326_s2 + $0x1f8] sm:$0xff] }
 0x1f7   :  { %v1905_v3 = vadd.f32 %v1841_v41, %v1641_v12  ;;  %v1906_v62 = vadd.f32 %v1842_v1, %v1642_v20  ;;  %v1582_v16 = vmul.f32 %v2786_v40, %v8129_v37  ;;  %v1123_v5 = vsel %vm8123_vm9, %v8131_v26, %v8130_v44  ;;  %v5639_v41 = vpop.permute.xlu2 %2056  ;;  %v2788_v37 = vld [vmem:[%s7326_s2 + $0x1f0] sm:$0xff]  ;;  %v8142_v44 = vld [vmem:[#allocation75_spill] sm:$0xff]  ;;  %v8143_v40 = vld [vmem:[#allocation74_spill] sm:$0xff] }
 0x1f8   :  { %v8132_v12 = vmov 0  ;;  %v8136_v1 = vmov 0  ;;  %v8140_v8 = vsel %vm5645_vm11, 4294967295, %v8139_v8  ;;  %v1645_v52 = vmul.f32 %v2789_v57, %v7576_v28 }
 0x1f9   :  { %v8133_v12 = vsel %vm5626_vm0, 4294967295, %v8132_v12  ;;  %1969 = vst [vmem:[%s7329_s4 + $0x1d8] sm:$0xff] %v1905_v3  ;;  %v8137_v1 = vsel %vm5641_vm12, 4294967295, %v8136_v1  ;;  %v1644_v3 = vmul.f32 %v2788_v37, %v7573_v42  ;;  %v1061_v49 = vsel %vm8123_vm9, %v8117_v25, %v8142_v44  ;;  %v1250_v42 = vpop.permute.xlu0 %1249  ;;  %vm8147_vm9 = vmmov %vm8146_vm14 }
 0x1fa   :  { %8134 = vst [vmem:[#allocation65_spill] sm:$0xff] %v8133_v12  ;;  %v1317_v37 = vsel %vm8144_vm15, %v1252_v63, %v8143_v40  ;;  %v1124_v20 = vsel %vm8145_vm1, %v8142_v44, %v8131_v26  ;;  %v1254_v25 = vsel %vm8146_vm14, %v1250_v42, %v1252_v63  ;;  %v8148_v28 = vperm.slane %v5633_v33, 0  ;;  %v5691_v26 = vld [vmem:[%s7330_s3 + $0x168] sm:$0xff]  ;;  %vm8151_vm15 = vmmov %vm8145_vm1 }
 0x1fb   :  { %8138 = vst [vmem:[#allocation73_spill] sm:$0xff] %v8137_v1  ;;  %v1382_v57 = vsel %vm5626_vm0, %v1123_v5, %v1317_v37  ;;  %v1445_v54 = vsel %vm5645_vm11, %v1124_v20, %v1254_v25  ;;  %v5696_v5 = vld [vmem:[%s7330_s3 + $0x160] sm:$0xff]  ;;  %v5705_v20 = vld [vmem:[%s7330_s3 + $0x158] sm:$0xff]  ;;  %2128 = vrot.lane.b32.xlu2 %v5691_v26, %s2855_s22  ;;  %vm8153_vm14 = vmmov %vm8145_vm1 }
 0x1fc   :  { %8141 = vst [vmem:[#allocation8_spill] sm:$0xff] %v8140_v8  ;;  %v1782_v2 = vmul.f32 %v8148_v28, %v1382_v57  ;;  %v8150_v28 = vperm.slane %v5391_v36, 7  ;;  %2126 = vrot.lane.b32.xlu1 %v5696_v5, %s2855_s22  ;;  %2124 = vrot.lane.b32.xlu0 %v5705_v20, %s2855_s22  ;;  %v5737_v57 = vld [vmem:[%s7330_s3 + $0x180] sm:$0xff]  ;;  %v5742_v25 = vld [vmem:[%s7330_s3 + $0x178] sm:$0xff] }
 0x1fd   :  { %1970 = vst [vmem:[%s7329_s4 + $0x1e0] sm:$0xff] %v1906_v62  ;;  %v1255_v62 = vsel %vm8147_vm9, %v5233_v30, %v1250_v42  ;;  %v8149_v30 = vperm.slane %v5391_v36, 6  ;;  %vm8154_vm9 = vmmov %vm8145_vm1  ;;  %v5812_v1 = vld [vmem:[%s7330_s3 + $0x1a8] sm:$0xff] }
 0x1fe   :  { %v1444_v40 = vsel %vm5641_vm12, %v1061_v49, %v1255_v62  ;;  %v1845_v63 = vmul.f32 %v8150_v28, %v1445_v54  ;;  %v1846_v49 = vadd.f32 %v1782_v2, %v1582_v16  ;;  %v2043_v54 = vpop.permute.xlu1 %2042  ;;  %v5747_v62 = vld [vmem:[%s7330_s3 + $0x170] sm:$0xff]  ;;  %8163 = vst [vmem:[#allocation84_spill] sm:$0xff] %v5812_v1 }
 0x1ff   :  { %v1844_v42 = vmul.f32 %v8149_v30, %v1444_v40  ;;  %v2063_v2 = vpop.permute.xlu2 %2062  ;;  %v5725_v16 = vsel %vm8151_vm15, %v2043_v54, %v5439_v17  ;;  %vm8155_vm15 = vmmov %vm8145_vm1 }
 0x200   :  { %v1909_v37 = vadd.f32 %v1845_v63, %v1645_v52  ;;  %1910 = vst [vmem:[%s7329_s4] sm:$0xff] %v1846_v49 }
 0x201   :  { %v1908_v44 = vadd.f32 %v1844_v42, %v1644_v3  ;;  %v5727_v3 = vpop.permute.xlu0 %2040 }
 0x202   :  { %1973 = vst [vmem:[%s7329_s4 + $0x1f8] sm:$0xff] %v1909_v37  ;;  %v5732_v52 = vsel %vm8153_vm14, %v5727_v3, %v2043_v54  ;;  %v5777_v37 = vld [vmem:[%s7330_s3 + $0x190] sm:$0xff]  ;;  %v5782_v54 = vld [vmem:[%s7330_s3 + $0x188] sm:$0xff]  ;;  %vm8157_vm14 = vmmov %vm8145_vm1 }
 0x203   :  { %1972 = vst [vmem:[%s7329_s4 + $0x1f0] sm:$0xff] %v1908_v44  ;;  %2134 = vrot.lane.b32.xlu2 %v5737_v57, %s2855_s22  ;;  %v5772_v44 = vld [vmem:[%s7330_s3 + $0x198] sm:$0xff] }
 0x204   :  { %8152 = vst [vmem:[#allocation6_spill] sm:$0xff] %v5727_v3  ;;  %2132 = vrot.lane.b32.xlu1 %v5742_v25, %s2855_s22  ;;  %2130 = vrot.lane.b32.xlu0 %v5747_v62, %s2855_s22  ;;  %v5807_v3 = vld [vmem:[%s7330_s3 + $0x1b0] sm:$0xff] }
 0x205   :  { %8156 = vst [vmem:[#allocation75_spill] sm:$0xff] %v5772_v44 }
 0x206   :  { %v2049_v30 = vpop.permute.xlu1 %2048  ;;  %8162 = vst [vmem:[#allocation83_spill] sm:$0xff] %v5807_v3 }
 0x207   :  { %v2069_v40 = vpop.permute.xlu2 %2068  ;;  %v5758_v42 = vsel %vm8145_vm1, %v2049_v30, %v5538_v34 }
 0x209   :  { %v2047_v28 = vpop.permute.xlu0 %2046 }
 0x20a   :  { %v5762_v63 = vsel %vm8154_vm9, %v2047_v28, %v2049_v30  ;;  %v5767_v49 = vsel %vm8155_vm15, %v5439_v17, %v2047_v28  ;;  %vm8160_vm9 = vmmov %vm8145_vm1 }
 0x20b   :  { %2140 = vrot.lane.b32.xlu2 %v5772_v44, %s2855_s22  ;;  %vm8165_vm15 = vmmov %vm8145_vm1 }
 0x20c   :  { %2138 = vrot.lane.b32.xlu1 %v5777_v37, %s2855_s22  ;;  %2136 = vrot.lane.b32.xlu0 %v5782_v54, %s2855_s22 }
 0x20e   :  { %v2055_v30 = vpop.permute.xlu1 %2054 }
 0x20f   :  { %v2075_v17 = vpop.permute.xlu2 %2074  ;;  %v5793_v28 = vsel %vm8157_vm14, %v2055_v30, %v5639_v41  ;;  %vm8167_vm14 = vmmov %vm8145_vm1 }
 0x210   :  { %8158 = vst [vmem:[#allocation74_spill] sm:$0xff] %v5793_v28  ;;  %v6036_v28 = vld [vmem:[%s7330_s3 + $0x50] sm:$0xff] }
 0x211   :  { %v2053_v33 = vpop.permute.xlu0 %2052  ;;  %8212 = vst [vmem:[#allocation117_spill] sm:$0xff] %v6036_v28 }
 0x212   :  { %v5797_v8 = vsel %vm8145_vm1, %v2053_v33, %v2055_v30  ;;  %v5802_v12 = vsel %vm8160_vm9, %v5538_v34, %v2053_v33  ;;  %v5817_v30 = vld [vmem:[%s7330_s3 + $0x1a0] sm:$0xff]  ;;  %vm8173_vm9 = vmmov %vm8145_vm1 }
 0x213   :  { %8159 = vst [vmem:[#allocation81_spill] sm:$0xff] %v5797_v8  ;;  %2146 = vrot.lane.b32.xlu2 %v5807_v3, %s2855_s22  ;;  %v5970_v8 = vld [vmem:[%s7330_s3 + $0x20] sm:$0xff] }
 0x214   :  { %8161 = vst [vmem:[#allocation82_spill] sm:$0xff] %v5802_v12  ;;  %2144 = vrot.lane.b32.xlu1 %v5812_v1, %s2855_s22  ;;  %2142 = vrot.lane.b32.xlu0 %v5817_v30, %s2855_s22  ;;  %v5841_v1 = vld [vmem:[%s7330_s3 + $0x1c8] sm:$0xff]  ;;  %v6003_v12 = vld [vmem:[%s7330_s3 + $0x38] sm:$0xff] }
 0x215   :  { %8164 = vst [vmem:[#allocation85_spill] sm:$0xff] %v5817_v30  ;;  %v5846_v30 = vld [vmem:[%s7330_s3 + $0x1c0] sm:$0xff] }
 0x216   :  { %v2061_v33 = vpop.permute.xlu1 %2060  ;;  %8170 = vst [vmem:[#allocation89_spill] sm:$0xff] %v5841_v1 }
 0x217   :  { %v2081_v34 = vpop.permute.xlu2 %2080  ;;  %v5827_v36 = vsel %vm8165_vm15, %v2061_v33, %v2063_v2  ;;  %8171 = vst [vmem:[#allocation90_spill] sm:$0xff] %v5846_v30  ;;  %vm8175_vm15 = vmmov %vm8145_vm1 }
 0x218   :  { %8166 = vst [vmem:[#allocation86_spill] sm:$0xff] %v5827_v36 }
 0x219   :  { %v2059_v21 = vpop.permute.xlu0 %2058  ;;  %8206 = vst [vmem:[#allocation113_spill] sm:$0xff] %v6003_v12 }
 0x21a   :  { %v5831_v44 = vsel %vm8167_vm14, %v2059_v21, %v2061_v33  ;;  %v5836_v3 = vsel %vm8145_vm1, %v5639_v41, %v2059_v21  ;;  %v5851_v33 = vld [vmem:[%s7330_s3 + $0x1b8] sm:$0xff]  ;;  %vm8177_vm14 = vmmov %vm8145_vm1 }
 0x21b   :  { %8168 = vst [vmem:[#allocation87_spill] sm:$0xff] %v5831_v44  ;;  %2152 = vrot.lane.b32.xlu2 %v5841_v1, %s2855_s22 }
 0x21c   :  { %8169 = vst [vmem:[#allocation88_spill] sm:$0xff] %v5836_v3  ;;  %2150 = vrot.lane.b32.xlu1 %v5846_v30, %s2855_s22  ;;  %2148 = vrot.lane.b32.xlu0 %v5851_v33, %s2855_s22  ;;  %v5874_v30 = vld [vmem:[%s7330_s3 + $0x1e0] sm:$0xff] }
 0x21d   :  { %8172 = vst [vmem:[#allocation91_spill] sm:$0xff] %v5851_v33  ;;  %v5879_v33 = vld [vmem:[%s7330_s3 + $0x1d8] sm:$0xff] }
 0x21e   :  { %v2067_v41 = vpop.permute.xlu1 %2066  ;;  %8179 = vst [vmem:[#allocation95_spill] sm:$0xff] %v5874_v30 }
 0x21f   :  { %v2087_v21 = vpop.permute.xlu2 %2086  ;;  %v5861_v44 = vsel %vm8173_vm9, %v2067_v41, %v2069_v40  ;;  %8180 = vst [vmem:[#allocation96_spill] sm:$0xff] %v5879_v33  ;;  %vm8183_vm9 = vmmov %vm8145_vm1 }
 0x220   :  { %8174 = vst [vmem:[#allocation92_spill] sm:$0xff] %v5861_v44  ;;  %v5884_v44 = vld [vmem:[%s7330_s3 + $0x1d0] sm:$0xff] }
 0x221   :  { %v2065_v3 = vpop.permute.xlu0 %2064  ;;  %8181 = vst [vmem:[#allocation97_spill] sm:$0xff] %v5884_v44 }
 0x222   :  { %v5865_v36 = vsel %vm8175_vm15, %v2065_v3, %v2067_v41  ;;  %v5869_v1 = vsel %vm8177_vm14, %v2063_v2, %v2065_v3  ;;  %vm8185_vm15 = vmmov %vm8145_vm1 }
 0x223   :  { %8176 = vst [vmem:[#allocation93_spill] sm:$0xff] %v5865_v36  ;;  %2158 = vrot.lane.b32.xlu2 %v5874_v30, %s2855_s22  ;;  %vm8190_vm14 = vmmov %vm8145_vm1 }
 0x224   :  { %8178 = vst [vmem:[#allocation94_spill] sm:$0xff] %v5869_v1  ;;  %2156 = vrot.lane.b32.xlu1 %v5879_v33, %s2855_s22  ;;  %2154 = vrot.lane.b32.xlu0 %v5884_v44, %s2855_s22  ;;  %v5907_v33 = vld [vmem:[%s7330_s3 + $0x1f8] sm:$0xff]  ;;  %v5912_v44 = vld [vmem:[%s7330_s3 + $0x1f0] sm:$0xff] }
 0x225   :  { %8187 = vst [vmem:[#allocation101_spill] sm:$0xff] %v5907_v33 }
 0x226   :  { %v2073_v3 = vpop.permute.xlu1 %2072  ;;  %8188 = vst [vmem:[#allocation102_spill] sm:$0xff] %v5912_v44 }
 0x227   :  { %v2093_v2 = vpop.permute.xlu2 %2092  ;;  %v5894_v41 = vsel %vm8145_vm1, %v2073_v3, %v2075_v17 }
 0x228   :  { %8182 = vst [vmem:[#allocation98_spill] sm:$0xff] %v5894_v41  ;;  %v5917_v41 = vld [vmem:[%s7330_s3 + $0x1e8] sm:$0xff] }
 0x229   :  { %v2071_v36 = vpop.permute.xlu0 %2070  ;;  %8189 = vst [vmem:[#allocation103_spill] sm:$0xff] %v5917_v41 }
 0x22a   :  { %v5898_v1 = vsel %vm8183_vm9, %v2071_v36, %v2073_v3  ;;  %v5902_v30 = vsel %vm8185_vm15, %v2069_v40, %v2071_v36  ;;  %vm8193_vm9 = vmmov %vm8145_vm1 }
 0x22b   :  { %8184 = vst [vmem:[#allocation99_spill] sm:$0xff] %v5898_v1  ;;  %2164 = vrot.lane.b32.xlu2 %v5907_v33, %s2855_s22  ;;  %vm8195_vm15 = vmmov %vm8145_vm1 }
 0x22c   :  { %8186 = vst [vmem:[#allocation100_spill] sm:$0xff] %v5902_v30  ;;  %2162 = vrot.lane.b32.xlu1 %v5912_v44, %s2855_s22  ;;  %2160 = vrot.lane.b32.xlu0 %v5917_v41, %s2855_s22  ;;  %v5940_v44 = vld [vmem:[%s7330_s3 + $0x8] sm:$0xff] }
 0x22e   :  { %v2079_v40 = vpop.permute.xlu1 %2078 }
 0x22f   :  { %v2099_v36 = vpop.permute.xlu2 %2098  ;;  %v5927_v3 = vsel %vm8190_vm14, %v2079_v40, %v2081_v34  ;;  %vm8197_vm14 = vmmov %vm8145_vm1 }
 0x230   :  { %8191 = vst [vmem:[#allocation104_spill] sm:$0xff] %v5927_v3  ;;  %v5947_v3 = vld [vmem:[%s7330_s3 + $0x10] sm:$0xff] }
 0x231   :  { %v2077_v1 = vpop.permute.xlu0 %2076 }
 0x232   :  { %v5931_v30 = vsel %vm8145_vm1, %v2077_v1, %v2079_v40  ;;  %v5935_v33 = vsel %vm8193_vm9, %v2075_v17, %v2077_v1  ;;  %v2792_v1 = vld [vmem:[%s7330_s3] sm:$0xff]  ;;  %vm8200_vm9 = vmmov %vm8145_vm1 }
 0x233   :  { %8192 = vst [vmem:[#allocation105_spill] sm:$0xff] %v5931_v30  ;;  %2234 = vrot.lane.b32.xlu2 %v5947_v3, %s2856_s27 }
 0x234   :  { %8194 = vst [vmem:[#allocation106_spill] sm:$0xff] %v5935_v33  ;;  %2232 = vrot.lane.b32.xlu1 %v5940_v44, %s2856_s27  ;;  %2230 = vrot.lane.b32.xlu0 %v2792_v1, %s2856_s27  ;;  %v5977_v1 = vld [vmem:[%s7330_s3 + $0x28] sm:$0xff] }
 0x236   :  { %v2085_v40 = vpop.permute.xlu1 %2084 }
 0x237   :  { %v2105_v17 = vpop.permute.xlu2 %2104  ;;  %v5957_v30 = vsel %vm8195_vm15, %v2085_v40, %v2087_v21  ;;  %vm8202_vm15 = vmmov %vm8145_vm1 }
 0x238   :  { %8196 = vst [vmem:[#allocation107_spill] sm:$0xff] %v5957_v30 }
 0x239   :  { %v2083_v33 = vpop.permute.xlu0 %2082 }
 0x23a   :  { %v5961_v41 = vsel %vm8197_vm14, %v2083_v33, %v2085_v40  ;;  %v5965_v15 = vsel %vm8145_vm1, %v2081_v34, %v2083_v33  ;;  %v5984_v34 = vld [vmem:[%s7330_s3 + $0x18] sm:$0xff]  ;;  %vm8204_vm14 = vmmov %vm8145_vm1 }
 0x23b   :  { %8198 = vst [vmem:[#allocation108_spill] sm:$0xff] %v5961_v41  ;;  %2240 = vrot.lane.b32.xlu2 %v5977_v1, %s2856_s27 }
 0x23c   :  { %8199 = vst [vmem:[#allocation109_spill] sm:$0xff] %v5965_v15  ;;  %2238 = vrot.lane.b32.xlu1 %v5970_v8, %s2856_s27  ;;  %2236 = vrot.lane.b32.xlu0 %v5984_v34, %s2856_s27 }
 0x23e   :  { %v2091_v40 = vpop.permute.xlu1 %2090 }
 0x23f   :  { %v2111_v33 = vpop.permute.xlu2 %2110  ;;  %v5990_v41 = vsel %vm8200_vm9, %v2091_v40, %v2093_v2  ;;  %vm8208_vm9 = vmmov %vm8145_vm1 }
 0x240   :  { %8201 = vst [vmem:[#allocation110_spill] sm:$0xff] %v5990_v41  ;;  %v6010_v41 = vld [vmem:[%s7330_s3 + $0x40] sm:$0xff] }
 0x241   :  { %v2089_v15 = vpop.permute.xlu0 %2088 }
 0x242   :  { %v5994_v30 = vsel %vm8202_vm15, %v2089_v15, %v2091_v40  ;;  %v5998_v51 = vsel %vm8204_vm14, %v2087_v21, %v2089_v15  ;;  %v6017_v15 = vld [vmem:[%s7330_s3 + $0x30] sm:$0xff]  ;;  %vm8210_vm15 = vmmov %vm8145_vm1 }
 0x243   :  { %8203 = vst [vmem:[#allocation111_spill] sm:$0xff] %v5994_v30  ;;  %2246 = vrot.lane.b32.xlu2 %v6010_v41, %s2856_s27  ;;  %vm8215_vm14 = vmmov %vm8145_vm1 }
 0x244   :  { %8205 = vst [vmem:[#allocation112_spill] sm:$0xff] %v5998_v51  ;;  %2244 = vrot.lane.b32.xlu1 %v6003_v12, %s2856_s27  ;;  %2242 = vrot.lane.b32.xlu0 %v6017_v15, %s2856_s27  ;;  %v6069_v12 = vld [vmem:[%s7330_s3 + $0x68] sm:$0xff] }
 0x245   :  { %8220 = vst [vmem:[#allocation123_spill] sm:$0xff] %v6069_v12 }
 0x246   :  { %v2097_v40 = vpop.permute.xlu1 %2096 }
 0x247   :  { %v2117_v21 = vpop.permute.xlu2 %2116  ;;  %v6023_v30 = vsel %vm8145_vm1, %v2097_v40, %v2099_v36 }
 0x248   :  { %8207 = vst [vmem:[#allocation114_spill] sm:$0xff] %v6023_v30  ;;  %v6043_v30 = vld [vmem:[%s7330_s3 + $0x58] sm:$0xff] }
 0x249   :  { %v2095_v51 = vpop.permute.xlu0 %2094  ;;  %8213 = vst [vmem:[#allocation118_spill] sm:$0xff] %v6043_v30 }
 0x24a   :  { %v6027_v14 = vsel %vm8208_vm9, %v2095_v51, %v2097_v40  ;;  %v6031_v7 = vsel %vm8210_vm15, %v2093_v2, %v2095_v51  ;;  %v6050_v51 = vld [vmem:[%s7330_s3 + $0x48] sm:$0xff]  ;;  %vm8218_vm9 = vmmov %vm8145_vm1 }
 0x24b   :  { %8209 = vst [vmem:[#allocation115_spill] sm:$0xff] %v6027_v14  ;;  %2252 = vrot.lane.b32.xlu2 %v6043_v30, %s2856_s27  ;;  %vm8222_vm15 = vmmov %vm8145_vm1 }
 0x24c   :  { %8211 = vst [vmem:[#allocation116_spill] sm:$0xff] %v6031_v7  ;;  %2250 = vrot.lane.b32.xlu1 %v6036_v28, %s2856_s27  ;;  %2248 = vrot.lane.b32.xlu0 %v6050_v51, %s2856_s27 }
 0x24d   :  { %8214 = vst [vmem:[#allocation119_spill] sm:$0xff] %v6050_v51  ;;  %v6102_v51 = vld [vmem:[%s7330_s3 + $0x80] sm:$0xff] }
 0x24e   :  { %v2103_v40 = vpop.permute.xlu1 %2102  ;;  %8227 = vst [vmem:[#allocation128_spill] sm:$0xff] %v6102_v51 }
 0x24f   :  { %v2123_v2 = vpop.permute.xlu2 %2122  ;;  %v6056_v14 = vsel %vm8215_vm14, %v2103_v40, %v2105_v17  ;;  %vm8224_vm14 = vmmov %vm8145_vm1 }
 0x250   :  { %8216 = vst [vmem:[#allocation120_spill] sm:$0xff] %v6056_v14  ;;  %v6076_v14 = vld [vmem:[%s7330_s3 + $0x70] sm:$0xff] }
 0x251   :  { %v2101_v7 = vpop.permute.xlu0 %2100  ;;  %8221 = vst [vmem:[#allocation124_spill] sm:$0xff] %v6076_v14 }
 0x252   :  { %v6060_v28 = vsel %vm8145_vm1, %v2101_v7, %v2103_v40  ;;  %v6064_v30 = vsel %vm8218_vm9, %v2099_v36, %v2101_v7  ;;  %v6083_v7 = vld [vmem:[%s7330_s3 + $0x60] sm:$0xff]  ;;  %vm8230_vm9 = vmmov %vm8145_vm1 }
 0x253   :  { %8217 = vst [vmem:[#allocation121_spill] sm:$0xff] %v6060_v28  ;;  %2258 = vrot.lane.b32.xlu2 %v6076_v14, %s2856_s27 }
 0x254   :  { %8219 = vst [vmem:[#allocation122_spill] sm:$0xff] %v6064_v30  ;;  %2256 = vrot.lane.b32.xlu1 %v6069_v12, %s2856_s27  ;;  %2254 = vrot.lane.b32.xlu0 %v6083_v7, %s2856_s27 }
 0x256   :  { %v2109_v40 = vpop.permute.xlu1 %2108 }
 0x257   :  { %v2129_v36 = vpop.permute.xlu2 %2128  ;;  %v6089_v28 = vsel %vm8222_vm15, %v2109_v40, %v2111_v33  ;;  %vm8232_vm15 = vmmov %vm8145_vm1 }
 0x258   :  { %8223 = vst [vmem:[#allocation125_spill] sm:$0xff] %v6089_v28  ;;  %v6109_v28 = vld [vmem:[%s7330_s3 + $0x88] sm:$0xff] }
 0x259   :  { %v2107_v30 = vpop.permute.xlu0 %2106  ;;  %8228 = vst [vmem:[#allocation129_spill] sm:$0xff] %v6109_v28 }
 0x25a   :  { %v6093_v12 = vsel %vm8224_vm14, %v2107_v30, %v2109_v40  ;;  %v6097_v14 = vsel %vm8145_vm1, %v2105_v17, %v2107_v30  ;;  %v6116_v30 = vld [vmem:[%s7330_s3 + $0x78] sm:$0xff]  ;;  %vm8234_vm14 = vmmov %vm8145_vm1 }
 0x25b   :  { %8225 = vst [vmem:[#allocation126_spill] sm:$0xff] %v6093_v12  ;;  %2264 = vrot.lane.b32.xlu2 %v6109_v28, %s2856_s27 }
 0x25c   :  { %8226 = vst [vmem:[#allocation127_spill] sm:$0xff] %v6097_v14  ;;  %2262 = vrot.lane.b32.xlu1 %v6102_v51, %s2856_s27  ;;  %2260 = vrot.lane.b32.xlu0 %v6116_v30, %s2856_s27 }
 0x25d   :  { %8229 = vst [vmem:[#allocation130_spill] sm:$0xff] %v6116_v30  ;;  %v6139_v30 = vld [vmem:[%s7330_s3 + $0x90] sm:$0xff] }
 0x25e   :  { %v2115_v40 = vpop.permute.xlu1 %2114 }
 0x25f   :  { %v2135_v17 = vpop.permute.xlu2 %2134  ;;  %v6122_v12 = vsel %vm8230_vm9, %v2115_v40, %v2117_v21  ;;  %vm8237_vm9 = vmmov %vm8145_vm1 }
 0x260   :  { %8231 = vst [vmem:[#allocation131_spill] sm:$0xff] %v6122_v12 }
 0x261   :  { %v2113_v14 = vpop.permute.xlu0 %2112 }
 0x262   :  { %v6126_v51 = vsel %vm8232_vm15, %v2113_v14, %v2115_v40  ;;  %v6130_v28 = vsel %vm8234_vm14, %v2111_v33, %v2113_v14  ;;  %vm8238_vm15 = vmmov %vm8145_vm1 }
 0x263   :  { %8233 = vst [vmem:[#allocation132_spill] sm:$0xff] %v6126_v51  ;;  %2270 = vrot.lane.b32.xlu2 %v4872_v19, %s2856_s27  ;;  %vm8239_vm14 = vmmov %vm8145_vm1 }
 0x264   :  { %8235 = vst [vmem:[#allocation133_spill] sm:$0xff] %v6130_v28  ;;  %2268 = vrot.lane.b32.xlu1 %v4881_v46, %s2856_s27  ;;  %2266 = vrot.lane.b32.xlu0 %v6139_v30, %s2856_s27 }
 0x266   :  { %v2121_v51 = vpop.permute.xlu1 %2120 }
 0x267   :  { %v2141_v40 = vpop.permute.xlu2 %2140  ;;  %v6145_v14 = vsel %vm8145_vm1, %v2121_v51, %v2123_v2 }
 0x268   :  { %8236 = vst [vmem:[#allocation134_spill] sm:$0xff] %v6145_v14 }
 0x269   :  { %v2119_v33 = vpop.permute.xlu0 %2118 }
 0x26a   :  { %v6149_v46 = vsel %vm8237_vm9, %v2119_v33, %v2121_v51  ;;  %v6153_v19 = vsel %vm8238_vm15, %v2117_v21, %v2119_v33  ;;  %vm8240_vm9 = vmmov %vm8145_vm1 }
 0x26b   :  { %2276 = vrot.lane.b32.xlu2 %v4982_v47, %s2856_s27  ;;  %vm8241_vm15 = vmmov %vm8145_vm1 }
 0x26c   :  { %2274 = vrot.lane.b32.xlu1 %v4991_v10, %s2856_s27  ;;  %2272 = vrot.lane.b32.xlu0 %v4867_v13, %s2856_s27 }
 0x26e   :  { %v2127_v14 = vpop.permute.xlu1 %2126 }
 0x26f   :  { %v2147_v28 = vpop.permute.xlu2 %2146  ;;  %v6163_v12 = vsel %vm8239_vm14, %v2127_v14, %v2129_v36  ;;  %vm8242_vm14 = vmmov %vm8145_vm1 }
 0x271   :  { %v2125_v51 = vpop.permute.xlu0 %2124 }
 0x272   :  { %v6167_v21 = vsel %vm8145_vm1, %v2125_v51, %v2127_v14  ;;  %v6171_v10 = vsel %vm8240_vm9, %v2123_v2, %v2125_v51  ;;  %vm8243_vm9 = vmmov %vm8145_vm1 }
 0x273   :  { %2282 = vrot.lane.b32.xlu2 %v5081_v61, %s2856_s27 }
 0x274   :  { %2280 = vrot.lane.b32.xlu1 %v5095_v59, %s2856_s27  ;;  %2278 = vrot.lane.b32.xlu0 %v4977_v39, %s2856_s27 }
 0x276   :  { %v2133_v47 = vpop.permute.xlu1 %2132 }
 0x277   :  { %v2153_v13 = vpop.permute.xlu2 %2152  ;;  %v6181_v33 = vsel %vm8241_vm15, %v2133_v47, %v2135_v17  ;;  %vm8244_vm15 = vmmov %vm8145_vm1 }
 0x279   :  { %v2131_v14 = vpop.permute.xlu0 %2130 }
 0x27a   :  { %v6185_v2 = vsel %vm8242_vm14, %v2131_v14, %v2133_v47  ;;  %v6189_v59 = vsel %vm8145_vm1, %v2129_v36, %v2131_v14  ;;  %vm8245_vm14 = vmmov %vm8145_vm1 }
 0x27b   :  { %2288 = vrot.lane.b32.xlu2 %v5183_v4, %s2856_s27 }
 0x27c   :  { %2286 = vrot.lane.b32.xlu1 %v5192_v18, %s2856_s27  ;;  %2284 = vrot.lane.b32.xlu0 %v5076_v45, %s2856_s27 }
 0x27e   :  { %v2139_v61 = vpop.permute.xlu1 %2138 }
 0x27f   :  { %v2159_v39 = vpop.permute.xlu2 %2158  ;;  %v6199_v51 = vsel %vm8243_vm9, %v2139_v61, %v2141_v40  ;;  %vm8247_vm9 = vmmov %vm8145_vm1 }
 0x281   :  { %v2137_v47 = vpop.permute.xlu0 %2136 }
 0x282   :  { %v6203_v36 = vsel %vm8244_vm15, %v2137_v47, %v2139_v61  ;;  %v6207_v18 = vsel %vm8245_vm14, %v2135_v17, %v2137_v47  ;;  %vm8248_vm15 = vmmov %vm8145_vm1 }
 0x283   :  { %2294 = vrot.lane.b32.xlu2 %v5290_v22, %s2856_s27  ;;  %vm8249_vm14 = vmmov %vm8145_vm1 }
 0x284   :  { %2292 = vrot.lane.b32.xlu1 %v5299_v53, %s2856_s27  ;;  %2290 = vrot.lane.b32.xlu0 %v5178_v11, %s2856_s27 }
 0x286   :  { %v2145_v4 = vpop.permute.xlu1 %2144 }
 0x287   :  { %v6215_v45 = vpop.permute.xlu2 %2164  ;;  %v6219_v14 = vsel %vm8145_vm1, %v2145_v4, %v2147_v28 }
 0x288   :  { %8246 = vst [vmem:[#allocation135_spill] sm:$0xff] %v6215_v45 }
 0x289   :  { %v2143_v61 = vpop.permute.xlu0 %2142 }
 0x28a   :  { %v6223_v17 = vsel %vm8247_vm9, %v2143_v61, %v2145_v4  ;;  %v6227_v53 = vsel %vm8248_vm15, %v2141_v40, %v2143_v61  ;;  %vm8250_vm9 = vmmov %vm8145_vm1 }
 0x28b   :  { %2300 = vrot.lane.b32.xlu2 %v5386_v32, %s2856_s27  ;;  %vm8251_vm15 = vmmov %vm8145_vm1 }
 0x28c   :  { %2298 = vrot.lane.b32.xlu1 %v5400_v55, %s2856_s27  ;;  %2296 = vrot.lane.b32.xlu0 %v5285_v24, %s2856_s27 }
 0x28e   :  { %v2151_v11 = vpop.permute.xlu1 %2150 }
 0x28f   :  { %v2235_v22 = vpop.permute.xlu2 %2234  ;;  %v6237_v47 = vsel %vm8249_vm14, %v2151_v11, %v2153_v13  ;;  %vm8252_vm14 = vmmov %vm8145_vm1 }
 0x291   :  { %v2149_v4 = vpop.permute.xlu0 %2148 }
 0x292   :  { %v6241_v40 = vsel %vm8145_vm1, %v2149_v4, %v2151_v11  ;;  %v6245_v55 = vsel %vm8250_vm9, %v2147_v28, %v2149_v4  ;;  %vm8254_vm9 = vmmov %vm8145_vm1 }
 0x293   :  { %2306 = vrot.lane.b32.xlu2 %v5491_v29, %s2856_s27 }
 0x294   :  { %2304 = vrot.lane.b32.xlu1 %v5500_v60, %s2856_s27  ;;  %2302 = vrot.lane.b32.xlu0 %v5381_v9, %s2856_s27 }
 0x296   :  { %v2157_v24 = vpop.permute.xlu1 %2156 }
 0x297   :  { %v6253_v32 = vpop.permute.xlu2 %2240  ;;  %v6257_v61 = vsel %vm8251_vm15, %v2157_v24, %v2159_v39  ;;  %vm8256_vm15 = vmmov %vm8145_vm1 }
 0x299   :  { %v2155_v11 = vpop.permute.xlu0 %2154 }
 0x29a   :  { %v6261_v28 = vsel %vm8252_vm14, %v2155_v11, %v2157_v24  ;;  %v6265_v60 = vsel %vm8145_vm1, %v2153_v13, %v2155_v11  ;;  %vm8258_vm14 = vmmov %vm8145_vm1  ;;  %v8260_v11 = vperm.slane %v3549_v38, 2  ;;  %vm8261_vm1 = vcmp.lt.s32.totalorder %v3537_v31, 1 }
 0x29b   :  { %8253 = vst [vmem:[#allocation136_spill] sm:$0xff] %v6261_v28  ;;  %2312 = vrot.lane.b32.xlu2 %v5594_v23, %s2856_s27 }
 0x29c   :  { %2310 = vrot.lane.b32.xlu1 %v5604_v35, %s2856_s27  ;;  %2308 = vrot.lane.b32.xlu0 %v5486_v6, %s2856_s27 }
 0x29e   :  { %v2163_v9 = vpop.permute.xlu1 %2162 }
 0x29f   :  { %v6273_v29 = vpop.permute.xlu2 %2246  ;;  %v6278_v4 = vsel %vm8254_vm9, %v2163_v9, %v6215_v45  ;;  %vm8263_vm9 = vmmov %vm8261_vm1 }
 0x2a0   :  { %8255 = vst [vmem:[#allocation137_spill] sm:$0xff] %v6278_v4 }
 0x2a1   :  { %v2161_v24 = vpop.permute.xlu0 %2160 }
 0x2a2   :  { %v6282_v13 = vsel %vm8256_vm15, %v2161_v24, %v2163_v9  ;;  %v6286_v35 = vsel %vm8258_vm14, %v2159_v39, %v2161_v24  ;;  %v2488_v9 = vmul.f32 %v5947_v3, %v8260_v11  ;;  %vm8271_vm15 = vmmov %vm8261_vm1 }
 0x2a3   :  { %8257 = vst [vmem:[#allocation138_spill] sm:$0xff] %v6282_v13  ;;  %2318 = vrot.lane.b32.xlu2 %v5696_v5, %s2856_s27  ;;  %v8264_v13 = vperm.slane %v3564_v48, 2 }
 0x2a4   :  { %8259 = vst [vmem:[#allocation139_spill] sm:$0xff] %v6286_v35  ;;  %2316 = vrot.lane.b32.xlu1 %v5705_v20, %s2856_s27  ;;  %2314 = vrot.lane.b32.xlu0 %v5589_v50, %s2856_s27  ;;  %v8262_v20 = vperm.slane %v3549_v38, 1  ;;  %v8265_v35 = vperm.slane %v3564_v48, 1 }
 0x2a6   :  { %v2233_v6 = vpop.permute.xlu1 %2232  ;;  %v2487_v45 = vmul.f32 %v5940_v44, %v8262_v20  ;;  %v8275_v20 = vperm.slane %v3564_v48, 4 }
 0x2a7   :  { %v6294_v23 = vpop.permute.xlu2 %2252  ;;  %v2419_v39 = vsel %vm8261_vm1, %v2233_v6, %v2235_v22 }
 0x2a8   :  { %v2424_v50 = vsel %vm3692_vm4, %v5725_v16, %v2419_v39  ;;  %v8266_v16 = vperm.slane %v3549_v38, 3  ;;  %vm8270_vm4 = vmmov %vm8261_vm1 }
 0x2a9   :  { %v6301_v24 = vpop.permute.xlu0 %2230  ;;  %v2552_v3 = vmul.f32 %v2424_v50, %v8264_v13 }
 0x2aa   :  { %v2420_v5 = vsel %vm8263_vm9, %v6301_v24, %v2233_v6 }
 0x2ab   :  { %v2423_v11 = vsel %vm3596_vm2, %v5732_v52, %v2420_v5  ;;  %v2616_v28 = vadd.f32 %v2552_v3, %v2488_v9  ;;  %2324 = vrot.lane.b32.xlu2 %v5742_v25, %s2856_s27  ;;  %v2489_v52 = vmul.f32 %v5984_v34, %v8266_v16  ;;  %v8267_v25 = vperm.slane %v3549_v38, 5  ;;  %vm8268_vm2 = vmmov %vm8261_vm1  ;;  %v8280_v16 = vld [vmem:[#allocation113_spill] sm:$0xff] }
 0x2ac   :  { %v2551_v4 = vmul.f32 %v2423_v11, %v8265_v35  ;;  %2322 = vrot.lane.b32.xlu1 %v5747_v62, %s2856_s27  ;;  %2320 = vrot.lane.b32.xlu0 %v5691_v26, %s2856_s27 }
 0x2ad   :  { %2680 = vst [vmem:[%s7331_s5 + $0x10] sm:$0xff] %v2616_v28  ;;  %v2491_v62 = vmul.f32 %v5977_v1, %v8267_v25  ;;  %v8269_v28 = vperm.slane %v3549_v38, 4  ;;  %v8272_v1 = vperm.slane %v3564_v48, 5  ;;  %v8281_v25 = vld [vmem:[#allocation74_spill] sm:$0xff] }
 0x2ae   :  { %v2615_v44 = vadd.f32 %v2551_v4, %v2487_v45  ;;  %v2239_v0 = vpop.permute.xlu1 %2238 }
 0x2af   :  { %v6331_v27 = vpop.permute.xlu2 %2258  ;;  %v2416_v45 = vsel %vm8268_vm2, %v2239_v0, %v6253_v32  ;;  %v2490_v4 = vmul.f32 %v5970_v8, %v8269_v28 }
 0x2b0   :  { %2679 = vst [vmem:[%s7331_s5 + $0x8] sm:$0xff] %v2615_v44  ;;  %v2427_v13 = vsel %vm3772_vm7, %v5758_v42, %v2416_v45  ;;  %vm8284_vm7 = vmmov %vm8261_vm1 }
 0x2b1   :  { %v2237_v26 = vpop.permute.xlu0 %2236  ;;  %v2555_v6 = vmul.f32 %v2427_v13, %v8272_v1  ;;  %v8287_v13 = vld [vmem:[#allocation82_spill] sm:$0xff]  ;;  %v8311_v1 = vld [vmem:[#allocation87_spill] sm:$0xff] }
 0x2b2   :  { %v2417_v34 = vsel %vm8270_vm4, %v2237_v26, %v2239_v0  ;;  %v2418_v35 = vsel %vm8271_vm15, %v2235_v22, %v2237_v26  ;;  %v8279_v0 = vperm.slane %v3549_v38, 7  ;;  %v8285_v26 = vld [vmem:[#allocation11_spill] sm:$0xff]  ;;  %vm8328_vm4 = vmmov %vm8268_vm2 }
 0x2b3   :  { %v2425_v9 = vsel %vm3699_vm5, %v5767_v49, %v2418_v35  ;;  %v2426_v8 = vsel %vm3687_vm3, %v5762_v63, %v2417_v34  ;;  %v2619_v5 = vadd.f32 %v2555_v6, %v2491_v62  ;;  %2330 = vrot.lane.b32.xlu2 %v5777_v37, %s2856_s27  ;;  %v8276_v49 = vperm.slane %v3549_v38, 6  ;;  %vm8278_vm3 = vmmov %vm8261_vm1  ;;  %v8289_v35 = vld [vmem:[#allocation81_spill] sm:$0xff]  ;;  %v8303_v62 = vld [vmem:[#allocation86_spill] sm:$0xff] }
 0x2b4   :  { %v2553_v42 = vmul.f32 %v2425_v9, %v8274_v58  ;;  %v2554_v50 = vmul.f32 %v2426_v8, %v8275_v20  ;;  %2328 = vrot.lane.b32.xlu1 %v5782_v54, %s2856_s27  ;;  %2326 = vrot.lane.b32.xlu0 %v5737_v57, %s2856_s27  ;;  %v8277_v37 = vperm.slane %v3575_v43, 0  ;;  %vm8283_vm5 = vmmov %vm8261_vm1  ;;  %v8286_v28 = vperm.slane %v8285_v26, 0  ;;  %v8308_v34 = vld [vmem:[#allocation88_spill] sm:$0xff] }
 0x2b5   :  { %2683 = vst [vmem:[%s7331_s5 + $0x28] sm:$0xff] %v2619_v5  ;;  %v2492_v54 = vmul.f32 %v6017_v15, %v8276_v49  ;;  %v8291_v9 = vperm.slane %v3564_v48, 6  ;;  %v8292_v8 = vperm.slane %v3564_v48, 7  ;;  %v8294_v5 = vld [vmem:[#allocation84_spill] sm:$0xff]  ;;  %v8297_v49 = vld [vmem:[#allocation119_spill] sm:$0xff] }
 0x2b6   :  { %v2617_v3 = vadd.f32 %v2553_v42, %v2489_v52  ;;  %v2618_v22 = vadd.f32 %v2554_v50, %v2490_v4  ;;  %v2245_v56 = vpop.permute.xlu1 %2244  ;;  %v2494_v11 = vmul.f32 %v6010_v41, %v8277_v37  ;;  %v2493_v52 = vmul.f32 %v8280_v16, %v8279_v0  ;;  %v8293_v50 = vld [vmem:[#allocation85_spill] sm:$0xff] }
 0x2b7   :  { %v6376_v63 = vpop.permute.xlu2 %2264  ;;  %v2413_v57 = vsel %vm8278_vm3, %v2245_v56, %v6273_v29  ;;  %v8298_v37 = vperm.slane %v3575_v43, 3  ;;  %v8301_v16 = vperm.slane %v3575_v43, 2 }
 0x2b8   :  { %2681 = vst [vmem:[%s7331_s5 + $0x18] sm:$0xff] %v2617_v3  ;;  %v2430_v15 = vsel %vm3860_vm10, %v8281_v25, %v2413_v57  ;;  %v8295_v3 = vld [vmem:[#allocation75_spill] sm:$0xff]  ;;  %vm8306_vm10 = vmmov %vm8261_vm1 }
 0x2b9   :  { %2682 = vst [vmem:[%s7331_s5 + $0x20] sm:$0xff] %v2618_v22  ;;  %v2243_v44 = vpop.permute.xlu0 %2242  ;;  %v2558_v4 = vmul.f32 %v2430_v15, %v8286_v28  ;;  %v8326_v15 = vld [vmem:[#allocation7_spill] sm:$0xff] }
 0x2ba   :  { %v2414_v41 = vsel %vm8283_vm5, %v2243_v44, %v2245_v56  ;;  %v2415_v45 = vsel %vm8284_vm7, %v6253_v32, %v2243_v44  ;;  %v8296_v56 = vperm.slane %v3575_v43, 1  ;;  %vm8327_vm9 = vnez %v8326_v15  ;;  %vm8346_vm5 = vmmov %vm8268_vm2  ;;  %v8350_v15 = vld [vmem:[#allocation25_spill] sm:$0xff] }
 0x2bb   :  { %v2428_v38 = vsel %vm3782_vm8, %v8287_v13, %v2415_v45  ;;  %v2429_v6 = vsel %vm3767_vm6, %v8289_v35, %v2414_v41  ;;  %v2622_v42 = vadd.f32 %v2558_v4, %v2494_v11  ;;  %2336 = vrot.lane.b32.xlu2 %v8294_v5, %s2856_s27  ;;  %v8299_v11 = vld [vmem:[#allocation118_spill] sm:$0xff]  ;;  %vm8300_vm6 = vmmov %vm8261_vm1  ;;  %v8307_v4 = vperm.slane %v8285_v26, 3 }
 0x2bc   :  { %v2556_v39 = vmul.f32 %v2428_v38, %v8291_v9  ;;  %v2557_v58 = vmul.f32 %v2429_v6, %v8292_v8  ;;  %2334 = vrot.lane.b32.xlu1 %v8293_v50, %s2856_s27  ;;  %2332 = vrot.lane.b32.xlu0 %v8295_v3, %s2856_s27  ;;  %v2497_v57 = vmul.f32 %v8299_v11, %v8298_v37  ;;  %vm8305_vm8 = vmmov %vm8261_vm1  ;;  %v8309_v38 = vld [vmem:[#allocation9_spill] sm:$0xff]  ;;  %v8316_v50 = vld [vmem:[#allocation91_spill] sm:$0xff]  ;;  %v8320_v37 = vperm.slane %v3575_v43, 6 }
 0x2bd   :  { %2686 = vst [vmem:[%s7331_s5 + $0x40] sm:$0xff] %v2622_v42  ;;  %vm8310_vm14 = vnez %v8309_v38  ;;  %v8312_v6 = vld [vmem:[#allocation13_spill] sm:$0xff]  ;;  %v8317_v5 = vld [vmem:[#allocation90_spill] sm:$0xff]  ;;  %v8318_v3 = vld [vmem:[#allocation83_spill] sm:$0xff]  ;;  %vm8351_vm7 = vnez %v8350_v15 }
 0x2be   :  { %v2620_v20 = vadd.f32 %v2556_v39, %v2492_v54  ;;  %v2621_v32 = vadd.f32 %v2557_v58, %v2493_v52  ;;  %v2251_v48 = vpop.permute.xlu1 %2250  ;;  %v2495_v54 = vmul.f32 %v8297_v49, %v8296_v56  ;;  %v8302_v52 = vld [vmem:[#allocation117_spill] sm:$0xff]  ;;  %vm8313_vm1 = vnez %v8312_v6  ;;  %v8321_v11 = vld [vmem:[#allocation124_spill] sm:$0xff] }
 0x2bf   :  { %v6425_v22 = vpop.permute.xlu2 %2270  ;;  %v2410_v44 = vsel %vm8300_vm6, %v2251_v48, %v6294_v23  ;;  %v2496_v25 = vmul.f32 %v8302_v52, %v8301_v16  ;;  %v8314_v39 = vperm.slane %v8285_v26, 1  ;;  %v8315_v58 = vperm.slane %v8285_v26, 2  ;;  %v8324_v52 = vld [vmem:[#allocation123_spill] sm:$0xff]  ;;  %vm8352_vm6 = vmmov %vm8268_vm2 }
 0x2c0   :  { %2684 = vst [vmem:[%s7331_s5 + $0x30] sm:$0xff] %v2620_v20  ;;  %v2433_v41 = vsel %vm3943_vm13, %v8303_v62, %v2410_v44  ;;  %v8319_v49 = vperm.slane %v3575_v43, 4  ;;  %vm8322_vm13 = vmmov %vm8268_vm2  ;;  %v8323_v16 = vperm.slane %v3575_v43, 5  ;;  %v8325_v62 = vld [vmem:[#allocation92_spill] sm:$0xff] }
 0x2c1   :  { %2685 = vst [vmem:[%s7331_s5 + $0x38] sm:$0xff] %v2621_v32  ;;  %v2249_v0 = vpop.permute.xlu0 %2248  ;;  %v2561_v13 = vmul.f32 %v2433_v41, %v8307_v4 }
 0x2c2   :  { %v2411_v45 = vsel %vm8305_vm8, %v2249_v0, %v2251_v48  ;;  %v2412_v28 = vsel %vm8306_vm10, %v6273_v29, %v2249_v0  ;;  %vm8353_vm8 = vmmov %vm8268_vm2 }
 0x2c3   :  { %v2431_v35 = vsel %vm8310_vm14, %v8308_v34, %v2412_v28  ;;  %v2432_v9 = vsel %vm8313_vm1, %v8311_v1, %v2411_v45  ;;  %v2625_v20 = vadd.f32 %v2561_v13, %v2497_v57  ;;  %2342 = vrot.lane.b32.xlu2 %v8317_v5, %s2856_s27  ;;  %v2500_v57 = vmul.f32 %v8321_v11, %v8320_v37  ;;  %v8330_v13 = vld [vmem:[#allocation94_spill] sm:$0xff]  ;;  %v8331_v34 = vld [vmem:[#allocation17_spill] sm:$0xff]  ;;  %v8343_v37 = vld [vmem:[#allocation76_spill] sm:$0xff] }
 0x2c4   :  { %v2559_v8 = vmul.f32 %v2431_v35, %v8314_v39  ;;  %v2560_v42 = vmul.f32 %v2432_v9, %v8315_v58  ;;  %2340 = vrot.lane.b32.xlu1 %v8316_v50, %s2856_s27  ;;  %2338 = vrot.lane.b32.xlu0 %v8318_v3, %s2856_s27  ;;  %v8329_v28 = vperm.slane %v8285_v26, 6  ;;  %vm8332_vm15 = vnez %v8331_v34  ;;  %v8333_v35 = vld [vmem:[#allocation93_spill] sm:$0xff]  ;;  %v8356_v34 = vld [vmem:[#allocation100_spill] sm:$0xff]  ;;  %vm8369_vm1 = vmmov %vm8268_vm2 }
 0x2c5   :  { %2689 = vst [vmem:[%s7331_s5 + $0x58] sm:$0xff] %v2625_v20  ;;  %v8334_v1 = vld [vmem:[#allocation5_spill] sm:$0xff]  ;;  %v8336_v9 = vperm.slane %v8285_v26, 4  ;;  %v8344_v11 = vperm.slane %v8343_v37, 1 }
 0x2c6   :  { %v2623_v32 = vadd.f32 %v2559_v8, %v2495_v54  ;;  %v2624_v29 = vadd.f32 %v2560_v42, %v2496_v25  ;;  %v2257_v48 = vpop.permute.xlu1 %2256  ;;  %v2498_v54 = vmul.f32 %v6083_v7, %v8319_v49  ;;  %v2499_v25 = vmul.f32 %v8324_v52, %v8323_v16  ;;  %v8340_v50 = vld [vmem:[#allocation89_spill] sm:$0xff]  ;;  %v8342_v49 = vld [vmem:[#allocation130_spill] sm:$0xff] }
 0x2c7   :  { %v6474_v56 = vpop.permute.xlu2 %2276  ;;  %v2407_v44 = vsel %vm8322_vm13, %v2257_v48, %v6331_v27  ;;  %vm8335_vm3 = vnez %v8334_v1  ;;  %v8337_v8 = vperm.slane %v8285_v26, 5  ;;  %v8347_v52 = vperm.slane %v8343_v37, 0  ;;  %v8359_v1 = vld [vmem:[#allocation99_spill] sm:$0xff] }
 0x2c8   :  { %2687 = vst [vmem:[%s7331_s5 + $0x48] sm:$0xff] %v2623_v32  ;;  %v2436_v7 = vsel %vm8327_vm9, %v8325_v62, %v2407_v44  ;;  %v8338_v32 = vld [vmem:[#allocation97_spill] sm:$0xff]  ;;  %vm8374_vm9 = vmmov %vm8369_vm1 }
 0x2c9   :  { %2688 = vst [vmem:[%s7331_s5 + $0x50] sm:$0xff] %v2624_v29  ;;  %v2255_v0 = vpop.permute.xlu0 %2254  ;;  %v2564_v4 = vmul.f32 %v2436_v7, %v8329_v28  ;;  %v8339_v29 = vld [vmem:[#allocation96_spill] sm:$0xff]  ;;  %v8354_v28 = vld [vmem:[#allocation19_spill] sm:$0xff] }
 0x2ca   :  { %v2408_v41 = vsel %vm8268_vm2, %v2255_v0, %v2257_v48  ;;  %v2409_v45 = vsel %vm8328_vm4, %v6294_v23, %v2255_v0  ;;  %v8341_v48 = vperm.slane %v3575_v43, 7  ;;  %v8349_v43 = vld [vmem:[#allocation98_spill] sm:$0xff]  ;;  %vm8375_vm2 = vmmov %vm8369_vm1 }
 0x2cb   :  { %v2434_v38 = vsel %vm8332_vm15, %v8330_v13, %v2409_v45  ;;  %v2435_v6 = vsel %vm8335_vm3, %v8333_v35, %v2408_v41  ;;  %v2628_v42 = vadd.f32 %v2564_v4, %v2500_v57  ;;  %2348 = vrot.lane.b32.xlu2 %v8339_v29, %s2856_s27  ;;  %v8345_v57 = vld [vmem:[#allocation129_spill] sm:$0xff]  ;;  %v8355_v4 = vperm.slane %v8354_v28, 1  ;;  %v8365_v29 = vld [vmem:[#allocation102_spill] sm:$0xff]  ;;  %vm8388_vm3 = vmmov %vm8369_vm1 }
 0x2cc   :  { %v2562_v39 = vmul.f32 %v2434_v38, %v8336_v9  ;;  %v2563_v58 = vmul.f32 %v2435_v6, %v8337_v8  ;;  %2346 = vrot.lane.b32.xlu1 %v8338_v32, %s2856_s27  ;;  %2344 = vrot.lane.b32.xlu0 %v8340_v50, %s2856_s27  ;;  %v2503_v44 = vmul.f32 %v8345_v57, %v8344_v11  ;;  %v8357_v38 = vld [vmem:[#allocation22_spill] sm:$0xff]  ;;  %v8360_v6 = vld [vmem:[#allocation12_spill] sm:$0xff]  ;;  %v8364_v32 = vld [vmem:[#allocation103_spill] sm:$0xff]  ;;  %v8368_v11 = vperm.slane %v8343_v37, 4 }
 0x2cd   :  { %2692 = vst [vmem:[%s7331_s5 + $0x70] sm:$0xff] %v2628_v42  ;;  %vm8358_vm10 = vnez %v8357_v38  ;;  %vm8361_vm14 = vnez %v8360_v6  ;;  %v8366_v50 = vld [vmem:[#allocation95_spill] sm:$0xff]  ;;  %v8380_v38 = vld [vmem:[#allocation105_spill] sm:$0xff]  ;;  %v8383_v6 = vperm.slane %v8354_v28, 2 }
 0x2ce   :  { %v2626_v20 = vadd.f32 %v2562_v39, %v2498_v54  ;;  %v2627_v23 = vadd.f32 %v2563_v58, %v2499_v25  ;;  %v2263_v5 = vpop.permute.xlu1 %2262  ;;  %v2501_v54 = vmul.f32 %v8342_v49, %v8341_v48  ;;  %v8348_v25 = vld [vmem:[#allocation128_spill] sm:$0xff]  ;;  %v8362_v39 = vperm.slane %v8285_v26, 7 }
 0x2cf   :  { %v6523_v3 = vpop.permute.xlu2 %2282  ;;  %v2404_v0 = vsel %vm8346_vm5, %v2263_v5, %v6376_v63  ;;  %v2502_v62 = vmul.f32 %v8348_v25, %v8347_v52  ;;  %v8363_v58 = vperm.slane %v8354_v28, 0  ;;  %v8367_v48 = vperm.slane %v8343_v37, 2  ;;  %v8371_v25 = vld [vmem:[#allocation104_spill] sm:$0xff] }
 0x2d0   :  { %2690 = vst [vmem:[%s7331_s5 + $0x60] sm:$0xff] %v2626_v20  ;;  %v2439_v7 = vsel %vm8351_vm7, %v8349_v43, %v2404_v0  ;;  %vm8393_vm7 = vmmov %vm8369_vm1 }
 0x2d1   :  { %2691 = vst [vmem:[%s7331_s5 + $0x68] sm:$0xff] %v2627_v23  ;;  %v2261_v16 = vpop.permute.xlu0 %2260  ;;  %v2567_v13 = vmul.f32 %v2439_v7, %v8355_v4  ;;  %v2504_v49 = vmul.f32 %v6139_v30, %v8367_v48  ;;  %v2810_v30 = vld [vmem:[%s7330_s3 + $0x98] sm:$0xff]  ;;  %v8377_v4 = vld [vmem:[#allocation106_spill] sm:$0xff] }
 0x2d2   :  { %v2405_v41 = vsel %vm8352_vm6, %v2261_v16, %v2263_v5  ;;  %v2406_v45 = vsel %vm8353_vm8, %v6331_v27, %v2261_v16  ;;  %v8370_v16 = vperm.slane %v8343_v37, 3  ;;  %vm8394_vm6 = vmmov %vm8369_vm1 }
 0x2d3   :  { %v2437_v35 = vsel %vm8358_vm10, %v8356_v34, %v2406_v45  ;;  %v2438_v9 = vsel %vm8361_vm14, %v8359_v1, %v2405_v41  ;;  %v2631_v20 = vadd.f32 %v2567_v13, %v2503_v44  ;;  %2354 = vrot.lane.b32.xlu2 %v8365_v29, %s2856_s27  ;;  %v8376_v41 = vperm.slane %v8354_v28, 4  ;;  %v8378_v13 = vld [vmem:[#allocation26_spill] sm:$0xff]  ;;  %vm8407_vm14 = vmmov %vm8369_vm1 }
 0x2d4   :  { %v2565_v8 = vmul.f32 %v2437_v35, %v8362_v39  ;;  %v2566_v42 = vmul.f32 %v2438_v9, %v8363_v58  ;;  %2352 = vrot.lane.b32.xlu1 %v8364_v32, %s2856_s27  ;;  %2350 = vrot.lane.b32.xlu0 %v8366_v50, %s2856_s27  ;;  %v2505_v52 = vmul.f32 %v2810_v30, %v8370_v16  ;;  %v8381_v35 = vld [vmem:[#allocation23_spill] sm:$0xff]  ;;  %v8384_v39 = vperm.slane %v8354_v28, 3  ;;  %v2812_v50 = vld [vmem:[%s7330_s3 + $0xb8] sm:$0xff]  ;;  %v8391_v30 = vld [vmem:[#allocation32_spill] sm:$0xff] }
 0x2d5   :  { %2695 = vst [vmem:[%s7331_s5 + $0x88] sm:$0xff] %v2631_v20  ;;  %vm8379_vm4 = vnez %v8378_v13  ;;  %vm8382_vm15 = vnez %v8381_v35  ;;  %v8385_v20 = vld [vmem:[#allocation101_spill] sm:$0xff]  ;;  %v8386_v32 = vperm.slane %v8343_v37, 5  ;;  %vm8392_vm5 = vnez %v8391_v30 }
 0x2d6   :  { %v2629_v23 = vadd.f32 %v2565_v8, %v2501_v54  ;;  %v2630_v27 = vadd.f32 %v2566_v42, %v2502_v62  ;;  %v2269_v26 = vpop.permute.xlu1 %2268  ;;  %v2809_v54 = vld [vmem:[%s7330_s3 + $0xa0] sm:$0xff]  ;;  %v8403_v35 = vperm.slane %v8354_v28, 6 }
 0x2d7   :  { %v6572_v5 = vpop.permute.xlu2 %2288  ;;  %v2506_v57 = vmul.f32 %v2809_v54, %v8368_v11  ;;  %v2401_v44 = vsel %vm8369_vm1, %v2269_v26, %v6425_v22  ;;  %v8372_v62 = vld [vmem:[#allocation10_spill] sm:$0xff]  ;;  %v2813_v11 = vld [vmem:[%s7330_s3 + $0xb0] sm:$0xff] }
 0x2d8   :  { %2693 = vst [vmem:[%s7331_s5 + $0x78] sm:$0xff] %v2629_v23  ;;  %vm8373_vm13 = vnez %v8372_v62 }
 0x2d9   :  { %2694 = vst [vmem:[%s7331_s5 + $0x80] sm:$0xff] %v2630_v27  ;;  %v2267_v0 = vpop.permute.xlu0 %2266  ;;  %v2442_v43 = vsel %vm8373_vm13, %v8371_v25, %v2401_v44  ;;  %v2811_v27 = vld [vmem:[%s7330_s3 + $0xa8] sm:$0xff]  ;;  %vm8412_vm13 = vmmov %vm8375_vm2 }
 0x2da   :  { %v2402_v15 = vsel %vm8374_vm9, %v2267_v0, %v2269_v26  ;;  %v2403_v7 = vsel %vm8375_vm2, %v6376_v63, %v2267_v0  ;;  %v2570_v45 = vmul.f32 %v2442_v43, %v8376_v41  ;;  %v2507_v29 = vmul.f32 %v2811_v27, %v8386_v32  ;;  %v8390_v0 = vld [vmem:[#allocation107_spill] sm:$0xff]  ;;  %v8397_v41 = vld [vmem:[#allocation28_spill] sm:$0xff]  ;;  %vm8413_vm9 = vmmov %vm8375_vm2 }
 0x2db   :  { %v2440_v34 = vsel %vm8379_vm4, %v8377_v4, %v2403_v7  ;;  %v2441_v1 = vsel %vm8382_vm15, %v8380_v38, %v2402_v15  ;;  %v8387_v26 = vperm.slane %v8343_v37, 7  ;;  %v8395_v43 = vperm.slane %v8354_v28, 7  ;;  %v8396_v7 = vld [vmem:[#allocation109_spill] sm:$0xff]  ;;  %v8400_v4 = vld [vmem:[#allocation18_spill] sm:$0xff]  ;;  %vm8426_vm15 = vmmov %vm8388_vm3 }
 0x2dc   :  { %v2568_v9 = vmul.f32 %v2440_v34, %v8383_v6  ;;  %v2569_v8 = vmul.f32 %v2441_v1, %v8384_v39  ;;  %v2634_v58 = vadd.f32 %v2570_v45, %v2506_v57  ;;  %2356 = vrot.lane.b32.xlu0 %v8385_v20, %s2856_s27  ;;  %v8389_v57 = vperm.slane %v8343_v37, 6  ;;  %v8399_v45 = vld [vmem:[#allocation108_spill] sm:$0xff] }
 0x2dd   :  { %v2509_v48 = vmul.f32 %v2812_v50, %v8387_v26  ;;  %vm8398_vm8 = vnez %v8397_v41  ;;  %vm8401_vm10 = vnez %v8400_v4  ;;  %v8402_v34 = vperm.slane %v8354_v28, 5 }
 0x2de   :  { %v2632_v42 = vadd.f32 %v2568_v9, %v2504_v49  ;;  %v2633_v63 = vadd.f32 %v2569_v8, %v2505_v52  ;;  %2698 = vst [vmem:[%s7331_s5 + $0xa0] sm:$0xff] %v2634_v58  ;;  %v2275_v23 = vpop.permute.xlu1 %2274  ;;  %v2508_v44 = vmul.f32 %v2813_v11, %v8389_v57  ;;  %v2814_v8 = vld [vmem:[%s7330_s3 + $0xc0] sm:$0xff]  ;;  %v8404_v58 = vld [vmem:[#allocation20_spill] sm:$0xff] }
 0x2df   :  { %v2398_v49 = vsel %vm8388_vm3, %v2275_v23, %v6474_v56  ;;  %v6650_v62 = vpop.permute.xlu2 %2294  ;;  %v8406_v20 = vperm.slane %v8404_v58, 2  ;;  %v8408_v50 = vperm.slane %v8404_v58, 1 }
 0x2e0   :  { %2696 = vst [vmem:[%s7331_s5 + $0x90] sm:$0xff] %v2632_v42  ;;  %v2445_v16 = vsel %vm8392_vm5, %v8390_v0, %v2398_v49  ;;  %v8405_v42 = vperm.slane %v8404_v58, 0  ;;  %v8410_v49 = vld [vmem:[#allocation3_spill] sm:$0xff]  ;;  %vm8431_vm5 = vmmov %vm8394_vm6 }
 0x2e1   :  { %2697 = vst [vmem:[%s7331_s5 + $0x98] sm:$0xff] %v2633_v63  ;;  %v2273_v54 = vpop.permute.xlu0 %2272  ;;  %v2573_v15 = vmul.f32 %v2445_v16, %v8395_v43  ;;  %v2815_v63 = vld [vmem:[%s7330_s3 + $0xd0] sm:$0xff]  ;;  %vm8411_vm1 = vnez %v8410_v49  ;;  %v8419_v43 = vld [vmem:[#allocation111_spill] sm:$0xff] }
 0x2e2   :  { %v2399_v52 = vsel %vm8393_vm7, %v2273_v54, %v2275_v23  ;;  %v2400_v25 = vsel %vm8394_vm6, %v6425_v22, %v2273_v54  ;;  %v2510_v28 = vmul.f32 %v2814_v8, %v8405_v42  ;;  %v2512_v23 = vmul.f32 %v2815_v63, %v8406_v20  ;;  %v8416_v16 = vld [vmem:[#allocation112_spill] sm:$0xff]  ;;  %v2819_v63 = vld [vmem:[%s7330_s3 + $0xe0] sm:$0xff]  ;;  %vm8432_vm7 = vmmov %vm8431_vm5 }
 0x2e3   :  { %v2443_v37 = vsel %vm8398_vm8, %v8396_v7, %v2400_v25  ;;  %v2444_v13 = vsel %vm8401_vm10, %v8399_v45, %v2399_v52  ;;  %v2637_v22 = vadd.f32 %v2573_v15, %v2509_v48  ;;  %v8409_v48 = vld [vmem:[#allocation110_spill] sm:$0xff]  ;;  %v8417_v52 = vld [vmem:[#allocation33_spill] sm:$0xff]  ;;  %v8420_v15 = vld [vmem:[#allocation15_spill] sm:$0xff]  ;;  %v8427_v20 = vperm.slane %v8404_v58, 4 }
 0x2e4   :  { %v2571_v38 = vmul.f32 %v2443_v37, %v8402_v34  ;;  %v2572_v1 = vmul.f32 %v2444_v13, %v8403_v35  ;;  %vm8418_vm2 = vnez %v8417_v52  ;;  %vm8421_vm4 = vnez %v8420_v15  ;;  %vm8445_vm10 = vmmov %vm8431_vm5 }
 0x2e5   :  { %2701 = vst [vmem:[%s7331_s5 + $0xb8] sm:$0xff] %v2637_v22  ;;  %v8424_v22 = vperm.slane %v8404_v58, 3 }
 0x2e6   :  { %v2635_v6 = vadd.f32 %v2571_v38, %v2507_v29  ;;  %v2636_v9 = vadd.f32 %v2572_v1, %v2508_v44  ;;  %v2281_v39 = vpop.permute.xlu1 %2280  ;;  %v2816_v29 = vld [vmem:[%s7330_s3 + $0xc8] sm:$0xff]  ;;  %v8414_v44 = vld [vmem:[#allocation24_spill] sm:$0xff]  ;;  %v2817_v1 = vld [vmem:[%s7330_s3 + $0xd8] sm:$0xff] }
 0x2e7   :  { %v2395_v27 = vsel %vm8407_vm14, %v2281_v39, %v6523_v3  ;;  %v2511_v26 = vmul.f32 %v2816_v29, %v8408_v50  ;;  %v8415_v0 = vperm.slane %v8414_v44, 2  ;;  %v8422_v41 = vperm.slane %v8414_v44, 0  ;;  %v6711_v13 = vpop.permute.xlu2 %2300 }
 0x2e8   :  { %2699 = vst [vmem:[%s7331_s5 + $0xa8] sm:$0xff] %v2635_v6  ;;  %v2448_v54 = vsel %vm8411_vm1, %v8409_v48, %v2395_v27  ;;  %v8423_v45 = vperm.slane %v8414_v44, 1  ;;  %v2513_v6 = vmul.f32 %v2817_v1, %v8424_v22  ;;  %v8428_v27 = vld [vmem:[#allocation114_spill] sm:$0xff]  ;;  %v8433_v48 = vperm.slane %v8414_v44, 5  ;;  %vm8450_vm1 = vmmov %vm8431_vm5 }
 0x2e9   :  { %2700 = vst [vmem:[%s7331_s5 + $0xb0] sm:$0xff] %v2636_v9  ;;  %v2279_v32 = vpop.permute.xlu0 %2278  ;;  %v2576_v30 = vmul.f32 %v2448_v54, %v8415_v0  ;;  %v2818_v9 = vld [vmem:[%s7330_s3 + $0xe8] sm:$0xff]  ;;  %v8434_v54 = vld [vmem:[#allocation116_spill] sm:$0xff]  ;;  %v8440_v52 = vperm.slane %v8414_v44, 3 }
 0x2ea   :  { %v2396_v11 = vsel %vm8412_vm13, %v2279_v32, %v2281_v39  ;;  %v2397_v57 = vsel %vm8413_vm9, %v6474_v56, %v2279_v32  ;;  %v8425_v39 = vperm.slane %v8404_v58, 5  ;;  %v8429_v32 = vld [vmem:[#allocation30_spill] sm:$0xff]  ;;  %v8437_v0 = vld [vmem:[#allocation115_spill] sm:$0xff]  ;;  %vm8451_vm13 = vmmov %vm8450_vm1 }
 0x2eb   :  { %v2446_v25 = vsel %vm8418_vm2, %v8416_v16, %v2397_v57  ;;  %v2447_v7 = vsel %vm8421_vm4, %v8419_v43, %v2396_v11  ;;  %v2640_v56 = vadd.f32 %v2576_v30, %v2512_v23  ;;  %v2514_v23 = vmul.f32 %v2819_v63, %v8427_v20  ;;  %v8435_v11 = vld [vmem:[#allocation4_spill] sm:$0xff]  ;;  %v8438_v30 = vld [vmem:[#allocation2_spill] sm:$0xff]  ;;  %v8448_v63 = vld [vmem:[#allocation39_spill] sm:$0xff] }
 0x2ec   :  { %v2574_v37 = vmul.f32 %v2446_v25, %v8422_v41  ;;  %v2575_v4 = vmul.f32 %v2447_v7, %v8423_v45  ;;  %v2515_v8 = vmul.f32 %v2818_v9, %v8425_v39  ;;  %vm8430_vm3 = vnez %v8429_v32  ;;  %v2822_v39 = vld [vmem:[%s7330_s3 + $0xf8] sm:$0xff]  ;;  %v8452_v32 = vld [vmem:[#allocation36_spill] sm:$0xff]  ;;  %vm8464_vm4 = vmmov %vm8450_vm1 }
 0x2ed   :  { %2704 = vst [vmem:[%s7331_s5 + $0xd0] sm:$0xff] %v2640_v56  ;;  %vm8436_vm6 = vnez %v8435_v11  ;;  %vm8439_vm8 = vnez %v8438_v30  ;;  %v8441_v43 = vperm.slane %v8414_v44, 4  ;;  %v8442_v56 = vperm.slane %v8404_v58, 6 }
 0x2ee   :  { %v2638_v34 = vadd.f32 %v2574_v37, %v2510_v28  ;;  %v2639_v38 = vadd.f32 %v2575_v4, %v2511_v26  ;;  %v2287_v35 = vpop.permute.xlu1 %2286  ;;  %v2820_v4 = vld [vmem:[%s7330_s3 + $0xf0] sm:$0xff]  ;;  %vm8449_vm14 = vnez %v8448_v63  ;;  %v8461_v30 = vperm.slane %v8414_v44, 7 }
 0x2ef   :  { %v2392_v42 = vsel %vm8426_vm15, %v2287_v35, %v6572_v5  ;;  %v6760_v37 = vpop.permute.xlu2 %2306 }
 0x2f0   :  { %2702 = vst [vmem:[%s7331_s5 + $0xc0] sm:$0xff] %v2638_v34  ;;  %v2451_v29 = vsel %vm8430_vm3, %v8428_v27, %v2392_v42  ;;  %v2516_v34 = vmul.f32 %v2820_v4, %v8442_v56  ;;  %vm8469_vm3 = vmmov %vm8450_vm1 }
 0x2f1   :  { %2703 = vst [vmem:[%s7331_s5 + $0xc8] sm:$0xff] %v2639_v38  ;;  %v2285_v28 = vpop.permute.xlu0 %2284  ;;  %v2579_v49 = vmul.f32 %v2451_v29, %v8433_v48  ;;  %v2821_v38 = vld [vmem:[%s7330_s3 + $0x100] sm:$0xff]  ;;  %v8453_v29 = vperm.slane %v8452_v32, 0  ;;  %v8455_v48 = vld [vmem:[#allocation21_spill] sm:$0xff] }
 0x2f2   :  { %v2393_v50 = vsel %vm8431_vm5, %v2285_v28, %v2287_v35  ;;  %v2394_v26 = vsel %vm8432_vm7, %v6523_v3, %v2285_v28  ;;  %v8443_v35 = vld [vmem:[#allocation29_spill] sm:$0xff]  ;;  %v8447_v28 = vld [vmem:[#allocation120_spill] sm:$0xff]  ;;  %vm8456_vm9 = vnez %v8455_v48  ;;  %vm8470_vm5 = vmmov %vm8450_vm1  ;;  %v8478_v48 = vperm.slane %v8452_v32, 1 }
 0x2f3   :  { %v2449_v57 = vsel %vm8436_vm6, %v8434_v54, %v2394_v26  ;;  %v2450_v16 = vsel %vm8439_vm8, %v8437_v0, %v2393_v50  ;;  %v2643_v7 = vadd.f32 %v2579_v49, %v2515_v8  ;;  %v8444_v1 = vperm.slane %v8443_v35, 0  ;;  %v8454_v26 = vld [vmem:[#allocation122_spill] sm:$0xff]  ;;  %vm8482_vm8 = vmmov %vm8450_vm1 }
 0x2f4   :  { %v2577_v25 = vmul.f32 %v2449_v57, %v8440_v52  ;;  %v2578_v15 = vmul.f32 %v2450_v16, %v8441_v43  ;;  %v8446_v8 = vperm.slane %v8404_v58, 7  ;;  %v8457_v58 = vld [vmem:[#allocation121_spill] sm:$0xff]  ;;  %v8458_v54 = vld [vmem:[#allocation34_spill] sm:$0xff]  ;;  %v8460_v57 = vperm.slane %v8414_v44, 6 }
 0x2f5   :  { %2707 = vst [vmem:[%s7331_s5 + $0xe8] sm:$0xff] %v2643_v7  ;;  %v2518_v22 = vmul.f32 %v2821_v38, %v8444_v1  ;;  %vm8459_vm2 = vnez %v8458_v54  ;;  %v2823_v7 = vld [vmem:[%s7330_s3 + $0x108] sm:$0xff]  ;;  %v8462_v44 = vperm.slane %v8443_v35, 1  ;;  %v2825_v38 = vld [vmem:[%s7330_s3 + $0x110] sm:$0xff]  ;;  %v8465_v1 = vperm.slane %v8443_v35, 2 }
 0x2f6   :  { %v2641_v41 = vadd.f32 %v2577_v25, %v2513_v6  ;;  %v2642_v3 = vadd.f32 %v2578_v15, %v2514_v23  ;;  %v2293_v45 = vpop.permute.xlu1 %2292  ;;  %v2517_v42 = vmul.f32 %v2822_v39, %v8446_v8 }
 0x2f7   :  { %v2389_v6 = vsel %vm8445_vm10, %v2293_v45, %v6650_v62  ;;  %v6815_v15 = vpop.permute.xlu2 %2312 }
 0x2f8   :  { %2705 = vst [vmem:[%s7331_s5 + $0xd8] sm:$0xff] %v2641_v41  ;;  %v2454_v20 = vsel %vm8449_vm14, %v8447_v28, %v2389_v6  ;;  %v2519_v41 = vmul.f32 %v2823_v7, %v8462_v44  ;;  %v8466_v6 = vld [vmem:[#allocation125_spill] sm:$0xff]  ;;  %v8471_v28 = vperm.slane %v8452_v32, 3  ;;  %vm8487_vm14 = vmmov %vm8450_vm1 }
 0x2f9   :  { %2706 = vst [vmem:[%s7331_s5 + $0xe0] sm:$0xff] %v2642_v3  ;;  %v2291_v9 = vpop.permute.xlu0 %2290  ;;  %v2582_v50 = vmul.f32 %v2454_v20, %v8453_v29  ;;  %v2824_v3 = vld [vmem:[%s7330_s3 + $0x118] sm:$0xff]  ;;  %v8472_v20 = vld [vmem:[#allocation127_spill] sm:$0xff]  ;;  %v8475_v29 = vld [vmem:[#allocation126_spill] sm:$0xff] }
 0x2fa   :  { %v2390_v23 = vsel %vm8450_vm1, %v2291_v9, %v2293_v45  ;;  %v2391_v27 = vsel %vm8451_vm13, %v6572_v5, %v2291_v9  ;;  %v8463_v45 = vperm.slane %v8443_v35, 3  ;;  %v8467_v9 = vld [vmem:[#allocation42_spill] sm:$0xff] }
 0x2fb   :  { %v2452_v49 = vsel %vm8456_vm9, %v8454_v26, %v2391_v27  ;;  %v2453_v11 = vsel %vm8459_vm2, %v8457_v58, %v2390_v23  ;;  %v2646_v52 = vadd.f32 %v2582_v50, %v2518_v22  ;;  %v2520_v22 = vmul.f32 %v2825_v38, %v8465_v1  ;;  %v8473_v23 = vld [vmem:[#allocation40_spill] sm:$0xff]  ;;  %v8476_v50 = vld [vmem:[#allocation27_spill] sm:$0xff]  ;;  %vm8500_vm2 = vmmov %vm8450_vm1 }
 0x2fc   :  { %v2580_v0 = vmul.f32 %v2452_v49, %v8460_v57  ;;  %v2581_v16 = vmul.f32 %v2453_v11, %v8461_v30  ;;  %v2521_v4 = vmul.f32 %v2824_v3, %v8463_v45  ;;  %vm8468_vm15 = vnez %v8467_v9  ;;  %v2826_v30 = vld [vmem:[%s7330_s3 + $0x120] sm:$0xff] }
 0x2fd   :  { %2710 = vst [vmem:[%s7331_s5 + $0x100] sm:$0xff] %v2646_v52  ;;  %vm8474_vm7 = vnez %v8473_v23  ;;  %vm8477_vm6 = vnez %v8476_v50  ;;  %v8479_v58 = vperm.slane %v8452_v32, 2  ;;  %v8483_v3 = vperm.slane %v8443_v35, 5 }
 0x2fe   :  { %v2644_v25 = vadd.f32 %v2580_v0, %v2516_v34  ;;  %v2645_v5 = vadd.f32 %v2581_v16, %v2517_v42  ;;  %v2299_v43 = vpop.permute.xlu1 %2298  ;;  %v8480_v16 = vperm.slane %v8443_v35, 4  ;;  %v8495_v23 = vperm.slane %v8452_v32, 4 }
 0x2ff   :  { %v2386_v56 = vsel %vm8464_vm4, %v2299_v43, %v6711_v13 }
 0x300   :  { %2708 = vst [vmem:[%s7331_s5 + $0xf0] sm:$0xff] %v2644_v25  ;;  %v2457_v39 = vsel %vm8468_vm15, %v8466_v6, %v2386_v56  ;;  %v2522_v52 = vmul.f32 %v2826_v30, %v8480_v16  ;;  %v2827_v25 = vld [vmem:[%s7330_s3 + $0x130] sm:$0xff]  ;;  %v8485_v56 = vld [vmem:[#allocation46_spill] sm:$0xff]  ;;  %v8488_v6 = vperm.slane %v8452_v32, 6  ;;  %vm8505_vm15 = vmmov %vm8450_vm1 }
 0x301   :  { %2709 = vst [vmem:[%s7331_s5 + $0xf8] sm:$0xff] %v2645_v5  ;;  %v2297_v34 = vpop.permute.xlu0 %2296  ;;  %v2585_v63 = vmul.f32 %v2457_v39, %v8471_v28  ;;  %v8481_v5 = vperm.slane %v8443_v35, 6  ;;  %vm8486_vm10 = vnez %v8485_v56  ;;  %v8489_v39 = vld [vmem:[#allocation133_spill] sm:$0xff]  ;;  %v8492_v28 = vld [vmem:[#allocation132_spill] sm:$0xff] }
 0x302   :  { %v2387_v8 = vsel %vm8469_vm3, %v2297_v34, %v2299_v43  ;;  %v2388_v42 = vsel %vm8470_vm5, %v6650_v62, %v2297_v34  ;;  %vm8506_vm3 = vmmov %vm8450_vm1 }
 0x303   :  { %v2455_v27 = vsel %vm8474_vm7, %v8472_v20, %v2388_v42  ;;  %v2456_v26 = vsel %vm8477_vm6, %v8475_v29, %v2387_v8  ;;  %v2649_v11 = vadd.f32 %v2585_v63, %v2521_v4  ;;  %v2524_v43 = vmul.f32 %v2827_v25, %v8481_v5  ;;  %v8484_v4 = vld [vmem:[#allocation131_spill] sm:$0xff]  ;;  %vm8517_vm6 = vmmov %vm8450_vm1 }
 0x304   :  { %v2583_v49 = vmul.f32 %v2455_v27, %v8478_v48  ;;  %v2584_v54 = vmul.f32 %v2456_v26, %v8479_v58  ;;  %v8490_v8 = vld [vmem:[#allocation43_spill] sm:$0xff]  ;;  %v8496_v29 = vperm.slane %v8452_v32, 5  ;;  %v2829_v58 = vld [vmem:[%s7330_s3 + $0x138] sm:$0xff] }
 0x305   :  { %2713 = vst [vmem:[%s7331_s5 + $0x118] sm:$0xff] %v2649_v11  ;;  %vm8491_vm13 = vnez %v8490_v8  ;;  %v8493_v63 = vld [vmem:[#allocation31_spill] sm:$0xff] }
 0x306   :  { %v2647_v57 = vadd.f32 %v2583_v49, %v2519_v41  ;;  %v2648_v62 = vadd.f32 %v2584_v54, %v2520_v22  ;;  %v2305_v0 = vpop.permute.xlu1 %2304  ;;  %v2828_v41 = vld [vmem:[%s7330_s3 + $0x128] sm:$0xff]  ;;  %v6893_v22 = vpop.permute.xlu2 %2318  ;;  %vm8494_vm9 = vnez %v8493_v63  ;;  %v8497_v54 = vperm.slane %v8443_v35, 7  ;;  %v2831_v35 = vld [vmem:[%s7330_s3 + $0x140] sm:$0xff] }
 0x307   :  { %v2383_v7 = vsel %vm8482_vm8, %v2305_v0, %v6760_v37  ;;  %v2523_v45 = vmul.f32 %v2828_v41, %v8483_v3 }
 0x308   :  { %2711 = vst [vmem:[%s7331_s5 + $0x108] sm:$0xff] %v2647_v57  ;;  %v2460_v34 = vsel %vm8486_vm10, %v8484_v4, %v2383_v7  ;;  %v2525_v11 = vmul.f32 %v2829_v58, %v8497_v54  ;;  %v2830_v57 = vld [vmem:[%s7330_s3 + $0x148] sm:$0xff]  ;;  %v8503_v7 = vld [vmem:[#allocation49_spill] sm:$0xff]  ;;  %v8519_v54 = vld [vmem:[#allocation44_spill] sm:$0xff] }
 0x309   :  { %2712 = vst [vmem:[%s7331_s5 + $0x110] sm:$0xff] %v2648_v62  ;;  %v2303_v44 = vpop.permute.xlu0 %2302  ;;  %v2588_v9 = vmul.f32 %v2460_v34, %v8488_v6  ;;  %v8498_v62 = vld [vmem:[#allocation37_spill] sm:$0xff]  ;;  %vm8504_vm4 = vnez %v8503_v7  ;;  %v8509_v34 = vld [vmem:[#allocation38_spill] sm:$0xff]  ;;  %vm8520_vm8 = vnez %v8519_v54  ;;  %vm8521_vm10 = vmmov %vm8450_vm1 }
 0x30a   :  { %v2384_v38 = vsel %vm8487_vm14, %v2303_v44, %v2305_v0  ;;  %v2385_v1 = vsel %vm8450_vm1, %v6711_v13, %v2303_v44  ;;  %v8499_v0 = vperm.slane %v8498_v62, 1  ;;  %v8501_v25 = vperm.slane %v8498_v62, 0  ;;  %vm8522_vm14 = vmmov %vm8450_vm1 }
 0x30b   :  { %v2458_v42 = vsel %vm8491_vm13, %v8489_v39, %v2385_v1  ;;  %v2459_v20 = vsel %vm8494_vm9, %v8492_v28, %v2384_v38  ;;  %v2652_v13 = vadd.f32 %v2588_v9, %v2524_v43  ;;  %v8502_v43 = vld [vmem:[#allocation134_spill] sm:$0xff]  ;;  %vm8510_vm5 = vnez %v8509_v34  ;;  %v8511_v1 = vld [vmem:[#allocation45_spill] sm:$0xff]  ;;  %vm8532_vm9 = vmmov %vm8500_vm2 }
 0x30c   :  { %v2586_v27 = vmul.f32 %v2458_v42, %v8495_v23  ;;  %v2587_v50 = vmul.f32 %v2459_v20, %v8496_v29  ;;  %v2527_v30 = vmul.f32 %v2830_v57, %v8499_v0  ;;  %v2526_v5 = vmul.f32 %v2831_v35, %v8501_v25  ;;  %v8526_v25 = vld [vmem:[#allocation48_spill] sm:$0xff] }
 0x30d   :  { %2716 = vst [vmem:[%s7331_s5 + $0x130] sm:$0xff] %v2652_v13  ;;  %vm8512_vm7 = vnez %v8511_v1  ;;  %v8513_v9 = vperm.slane %v8452_v32, 7  ;;  %v8515_v32 = vperm.slane %v8498_v62, 2  ;;  %v8516_v29 = vperm.slane %v8498_v62, 4 }
 0x30e   :  { %v2650_v26 = vadd.f32 %v2586_v27, %v2522_v52  ;;  %v2651_v48 = vadd.f32 %v2587_v50, %v2523_v45  ;;  %v2311_v49 = vpop.permute.xlu1 %2310  ;;  %v8507_v45 = vld [vmem:[#allocation35_spill] sm:$0xff]  ;;  %v6954_v28 = vpop.permute.xlu2 %2324  ;;  %v2833_v27 = vld [vmem:[%s7330_s3 + $0x160] sm:$0xff]  ;;  %vm8527_vm13 = vnez %v8526_v25  ;;  %v8531_v1 = vperm.slane %v8498_v62, 7 }
 0x30f   :  { %v2380_v16 = vsel %vm8500_vm2, %v2311_v49, %v6815_v15  ;;  %v8508_v4 = vperm.slane %v8507_v45, 1  ;;  %v8514_v8 = vperm.slane %v8507_v45, 0  ;;  %v2530_v50 = vmul.f32 %v2833_v27, %v8516_v29  ;;  %v8539_v27 = vld [vmem:[#allocation54_spill] sm:$0xff]  ;;  %v2840_v25 = vld [vmem:[%s7330_s3 + $0x188] sm:$0xff] }
 0x310   :  { %2714 = vst [vmem:[%s7331_s5 + $0x120] sm:$0xff] %v2650_v26  ;;  %v2463_v44 = vsel %vm8504_vm4, %v8502_v43, %v2380_v16  ;;  %v8529_v7 = vperm.slane %v8507_v45, 3  ;;  %vm8536_vm4 = vmmov %vm8506_vm3 }
 0x311   :  { %2715 = vst [vmem:[%s7331_s5 + $0x128] sm:$0xff] %v2651_v48  ;;  %v2309_v52 = vpop.permute.xlu0 %2308  ;;  %v2591_v56 = vmul.f32 %v2463_v44, %v8508_v4  ;;  %v2834_v48 = vld [vmem:[%s7330_s3 + $0x158] sm:$0xff] }
 0x312   :  { %v2381_v41 = vsel %vm8505_vm15, %v2309_v52, %v2311_v49  ;;  %v2382_v3 = vsel %vm8506_vm3, %v6760_v37, %v2309_v52  ;;  %v8518_v49 = vperm.slane %v8498_v62, 3  ;;  %v8524_v52 = vld [vmem:[#allocation41_spill] sm:$0xff]  ;;  %vm8537_vm15 = vmmov %vm8506_vm3  ;;  %vm8540_vm3 = vnez %v8539_v27 }
 0x313   :  { %v2461_v38 = vsel %vm8510_vm5, %v6153_v19, %v2382_v3  ;;  %v2462_v6 = vsel %vm8512_vm7, %v6149_v46, %v2381_v41  ;;  %v2655_v37 = vadd.f32 %v2591_v56, %v2527_v30  ;;  %v2832_v19 = vld [vmem:[%s7330_s3 + $0x150] sm:$0xff]  ;;  %v8523_v30 = vperm.slane %v8507_v45, 4  ;;  %vm8548_vm7 = vmmov %vm8536_vm4 }
 0x314   :  { %v2589_v39 = vmul.f32 %v2461_v38, %v8513_v9  ;;  %v2590_v42 = vmul.f32 %v2462_v6, %v8514_v8  ;;  %v2528_v23 = vmul.f32 %v2832_v19, %v8515_v32  ;;  %v2529_v58 = vmul.f32 %v2834_v48, %v8518_v49  ;;  %v2836_v38 = vld [vmem:[%s7330_s3 + $0x178] sm:$0xff]  ;;  %v2837_v8 = vld [vmem:[%s7330_s3 + $0x170] sm:$0xff] }
 0x315   :  { %2719 = vst [vmem:[%s7331_s5 + $0x148] sm:$0xff] %v2655_v37  ;;  %vm8525_vm1 = vnez %v8524_v52  ;;  %v8530_v56 = vperm.slane %v8498_v62, 5  ;;  %v2533_v6 = vmul.f32 %v2836_v38, %v8531_v1  ;;  %v8538_v32 = vperm.slane %v8507_v45, 7 }
 0x316   :  { %v2653_v63 = vadd.f32 %v2589_v39, %v2525_v11  ;;  %v2654_v20 = vadd.f32 %v2590_v42, %v2526_v5  ;;  %v2317_v46 = vpop.permute.xlu1 %2316  ;;  %v7003_v4 = vpop.permute.xlu2 %2330  ;;  %v8533_v42 = vperm.slane %v8498_v62, 6  ;;  %v8541_v62 = vld [vmem:[#allocation52_spill] sm:$0xff] }
 0x317   :  { %v2377_v13 = vsel %vm8517_vm6, %v2317_v46, %v6893_v22  ;;  %vm8542_vm5 = vnez %v8541_v62  ;;  %v8566_v62 = vld [vmem:[#allocation56_spill] sm:$0xff] }
 0x318   :  { %2717 = vst [vmem:[%s7331_s5 + $0x138] sm:$0xff] %v2653_v63  ;;  %v2466_v11 = vsel %vm8520_vm8, %v6163_v12, %v2377_v13  ;;  %v8528_v12 = vperm.slane %v8507_v45, 2  ;;  %v2532_v37 = vmul.f32 %v2837_v8, %v8533_v42  ;;  %v8534_v63 = vld [vmem:[#allocation57_spill] sm:$0xff]  ;;  %vm8552_vm8 = vmmov %vm8536_vm4 }
 0x319   :  { %2718 = vst [vmem:[%s7331_s5 + $0x140] sm:$0xff] %v2654_v20  ;;  %v2315_v26 = vpop.permute.xlu0 %2314  ;;  %v2594_v16 = vmul.f32 %v2466_v11, %v8523_v30  ;;  %vm8535_vm2 = vnez %v8534_v63  ;;  %v8545_v11 = vld [vmem:[#allocation51_spill] sm:$0xff] }
 0x31a   :  { %v2378_v57 = vsel %vm8521_vm10, %v2315_v26, %v2317_v46  ;;  %v2379_v0 = vsel %vm8522_vm14, %v6815_v15, %v2315_v26  ;;  %v8544_v26 = vperm.slane %v8507_v45, 6  ;;  %v8547_v30 = vperm.slane %v8545_v11, 2  ;;  %vm8553_vm10 = vmmov %vm8536_vm4  ;;  %v2842_v63 = vld [vmem:[%s7330_s3 + $0x1a8] sm:$0xff] }
 0x31b   :  { %v2464_v35 = vsel %vm8525_vm1, %v6171_v10, %v2379_v0  ;;  %v2465_v5 = vsel %vm8527_vm13, %v6167_v21, %v2378_v57  ;;  %v2658_v41 = vadd.f32 %v2594_v16, %v2530_v50  ;;  %v2835_v10 = vld [vmem:[%s7330_s3 + $0x168] sm:$0xff]  ;;  %v2839_v0 = vld [vmem:[%s7330_s3 + $0x190] sm:$0xff]  ;;  %v8562_v42 = vperm.slane %v8545_v11, 3  ;;  %vm8564_vm13 = vmmov %vm8536_vm4 }
 0x31c   :  { %v2592_v43 = vmul.f32 %v2464_v35, %v8528_v12  ;;  %v2593_v44 = vmul.f32 %v2465_v5, %v8529_v7  ;;  %v2531_v34 = vmul.f32 %v2835_v10, %v8530_v56  ;;  %v2536_v16 = vmul.f32 %v2839_v0, %v8547_v30  ;;  %v8556_v10 = vld [vmem:[#allocation58_spill] sm:$0xff] }
 0x31d   :  { %2722 = vst [vmem:[%s7331_s5 + $0x160] sm:$0xff] %v2658_v41  ;;  %v8549_v5 = vperm.slane %v8545_v11, 1  ;;  %vm8557_vm14 = vnez %v8556_v10  ;;  %v8565_v27 = vperm.slane %v8545_v11, 4  ;;  %v8582_v10 = vld [vmem:[#allocation68_spill] sm:$0xff] }
 0x31e   :  { %v2656_v3 = vadd.f32 %v2592_v43, %v2528_v23  ;;  %v2657_v15 = vadd.f32 %v2593_v44, %v2529_v58  ;;  %v2323_v21 = vpop.permute.xlu1 %2322  ;;  %v2337_v54 = vpop.permute.xlu2 %2336  ;;  %v8550_v43 = vld [vmem:[#allocation60_spill] sm:$0xff] }
 0x31f   :  { %v2374_v9 = vsel %vm8532_vm9, %v2323_v21, %v6954_v28  ;;  %v2535_v12 = vmul.f32 %v2840_v25, %v8549_v5  ;;  %vm8551_vm6 = vnez %v8550_v43  ;;  %vm8567_vm9 = vnez %v8566_v62  ;;  %v2845_v25 = vld [vmem:[%s7330_s3 + $0x1c0] sm:$0xff]  ;;  %v8578_v5 = vld [vmem:[#allocation53_spill] sm:$0xff] }
 0x320   :  { %2720 = vst [vmem:[%s7331_s5 + $0x150] sm:$0xff] %v2656_v3  ;;  %v2469_v20 = vsel %vm8535_vm2, %v6181_v33, %v2374_v9  ;;  %v8543_v33 = vperm.slane %v8507_v45, 5  ;;  %v8546_v45 = vperm.slane %v8545_v11, 0  ;;  %v8554_v3 = vld [vmem:[#allocation55_spill] sm:$0xff]  ;;  %vm8568_vm2 = vmmov %vm8536_vm4  ;;  %v8597_v62 = vperm.slane %v8578_v5, 2 }
 0x321   :  { %2721 = vst [vmem:[%s7331_s5 + $0x158] sm:$0xff] %v2657_v15  ;;  %v2321_v39 = vpop.permute.xlu0 %2320  ;;  %v2597_v23 = vmul.f32 %v2469_v20, %v8538_v32  ;;  %v8555_v15 = vperm.slane %v8554_v3, 2  ;;  %v8563_v20 = vperm.slane %v8545_v11, 5 }
 0x322   :  { %v2375_v46 = vsel %vm8536_vm4, %v2321_v39, %v2323_v21  ;;  %v2376_v19 = vsel %vm8537_vm15, %v6893_v22, %v2321_v39  ;;  %vm8569_vm4 = vmmov %vm8568_vm2 }
 0x323   :  { %v2467_v29 = vsel %vm8540_vm3, %v6189_v59, %v2376_v19  ;;  %v2468_v50 = vsel %vm8542_vm5, %v6185_v2, %v2375_v46  ;;  %v2661_v49 = vadd.f32 %v2597_v23, %v2533_v6  ;;  %v2838_v2 = vld [vmem:[%s7330_s3 + $0x180] sm:$0xff]  ;;  %v8561_v6 = vperm.slane %v8554_v3, 1  ;;  %vm8580_vm5 = vmmov %vm8568_vm2 }
 0x324   :  { %v2595_v13 = vmul.f32 %v2467_v29, %v8543_v33  ;;  %v2596_v48 = vmul.f32 %v2468_v50, %v8544_v26  ;;  %v2534_v57 = vmul.f32 %v2838_v2, %v8546_v45  ;;  %v2539_v46 = vmul.f32 %v2842_v63, %v8563_v20  ;;  %v2843_v23 = vld [vmem:[%s7330_s3 + $0x1a0] sm:$0xff] }
 0x325   :  { %2725 = vst [vmem:[%s7331_s5 + $0x178] sm:$0xff] %v2661_v49  ;;  %v2538_v29 = vmul.f32 %v2843_v23, %v8565_v27 }
 0x326   :  { %v2659_v58 = vadd.f32 %v2595_v13, %v2531_v34  ;;  %v2660_v22 = vadd.f32 %v2596_v48, %v2532_v37  ;;  %v2329_v59 = vpop.permute.xlu1 %2328  ;;  %v8558_v34 = vld [vmem:[#allocation47_spill] sm:$0xff]  ;;  %v2343_v26 = vpop.permute.xlu2 %2342  ;;  %v8570_v48 = vperm.slane %v8554_v3, 5 }
 0x327   :  { %v2371_v52 = vsel %vm8548_vm7, %v2329_v59, %v7003_v4  ;;  %vm8559_vm1 = vnez %v8558_v34  ;;  %vm8583_vm7 = vnez %v8582_v10 }
 0x328   :  { %2723 = vst [vmem:[%s7331_s5 + $0x168] sm:$0xff] %v2659_v58  ;;  %v2472_v7 = vsel %vm8551_vm6, %v6199_v51, %v2371_v52  ;;  %v8560_v51 = vperm.slane %v8554_v3, 0  ;;  %v8571_v58 = vld [vmem:[#allocation61_spill] sm:$0xff]  ;;  %v8577_v52 = vperm.slane %v8545_v11, 6  ;;  %vm8584_vm6 = vmmov %vm8568_vm2 }
 0x329   :  { %2724 = vst [vmem:[%s7331_s5 + $0x170] sm:$0xff] %v2660_v22  ;;  %v2327_v35 = vpop.permute.xlu0 %2326  ;;  %v2600_v21 = vmul.f32 %v2472_v7, %v8555_v15  ;;  %vm8572_vm15 = vnez %v8571_v58  ;;  %v8581_v15 = vperm.slane %v8545_v11, 7  ;;  %v8590_v11 = vld [vmem:[#allocation63_spill] sm:$0xff] }
 0x32a   :  { %v2372_v44 = vsel %vm8552_vm8, %v2327_v35, %v2329_v59  ;;  %v2373_v41 = vsel %vm8553_vm10, %v6954_v28, %v2327_v35  ;;  %v8573_v59 = vld [vmem:[#allocation50_spill] sm:$0xff]  ;;  %vm8585_vm8 = vmmov %vm8568_vm2 }
 0x32b   :  { %v2470_v56 = vsel %vm8557_vm14, %v6207_v18, %v2373_v41  ;;  %v2471_v38 = vsel %vm8559_vm1, %v6203_v36, %v2372_v44  ;;  %v2664_v39 = vadd.f32 %v2600_v21, %v2536_v16  ;;  %v2841_v36 = vld [vmem:[%s7330_s3 + $0x198] sm:$0xff]  ;;  %vm8574_vm3 = vnez %v8573_v59  ;;  %vm8596_vm1 = vmmov %vm8568_vm2 }
 0x32c   :  { %v2598_v1 = vmul.f32 %v2470_v56, %v8560_v51  ;;  %v2599_v9 = vmul.f32 %v2471_v38, %v8561_v6  ;;  %v2537_v37 = vmul.f32 %v2841_v36, %v8562_v42  ;;  %v2846_v41 = vld [vmem:[%s7330_s3 + $0x1b8] sm:$0xff]  ;;  %v8586_v51 = vld [vmem:[#allocation67_spill] sm:$0xff]  ;;  %vm8591_vm14 = vnez %v8590_v11 }
 0x32d   :  { %2728 = vst [vmem:[%s7331_s5 + $0x190] sm:$0xff] %v2664_v39  ;;  %v2541_v21 = vmul.f32 %v2846_v41, %v8581_v15  ;;  %v8602_v58 = vperm.slane %v8586_v51, 3  ;;  %v8603_v59 = vld [vmem:[#allocation69_spill] sm:$0xff]  ;;  %v2852_v15 = vld [vmem:[%s7330_s3 + $0x1e8] sm:$0xff] }
 0x32e   :  { %v2662_v8 = vadd.f32 %v2598_v1, %v2534_v57  ;;  %v2663_v28 = vadd.f32 %v2599_v9, %v2535_v12  ;;  %v2335_v18 = vpop.permute.xlu1 %2334  ;;  %v8576_v57 = vperm.slane %v8554_v3, 4  ;;  %v8579_v12 = vperm.slane %v8578_v5, 0  ;;  %v8588_v9 = vld [vmem:[#allocation66_spill] sm:$0xff]  ;;  %v2349_v42 = vpop.permute.xlu2 %2348  ;;  %v8619_v11 = vld [vmem:[#allocation139_spill] sm:$0xff] }
 0x32f   :  { %v2368_v19 = vsel %vm8564_vm13, %v2335_v18, %v2337_v54  ;;  %v8587_v1 = vperm.slane %v8586_v51, 0  ;;  %vm8589_vm10 = vnez %v8588_v9  ;;  %v8618_v9 = vperm.slane %v8586_v51, 6 }
 0x330   :  { %2726 = vst [vmem:[%s7331_s5 + $0x180] sm:$0xff] %v2662_v8  ;;  %v2475_v50 = vsel %vm8567_vm9, %v6219_v14, %v2368_v19  ;;  %v8575_v14 = vperm.slane %v8554_v3, 3  ;;  %v2542_v43 = vmul.f32 %v2845_v25, %v8579_v12  ;;  %v8595_v19 = vperm.slane %v8578_v5, 3  ;;  %vm8600_vm9 = vmmov %vm8596_vm1  ;;  %v2851_v12 = vld [vmem:[%s7330_s3 + $0x1f0] sm:$0xff] }
 0x331   :  { %2727 = vst [vmem:[%s7331_s5 + $0x188] sm:$0xff] %v2663_v28  ;;  %v2333_v32 = vpop.permute.xlu0 %2332  ;;  %v2603_v49 = vmul.f32 %v2475_v50, %v8570_v48  ;;  %v8592_v28 = vperm.slane %v8554_v3, 6 }
 0x332   :  { %v2369_v33 = vsel %vm8568_vm2, %v2333_v32, %v2335_v18  ;;  %v2370_v13 = vsel %vm8569_vm4, %v7003_v4, %v2333_v32  ;;  %v8593_v18 = vperm.slane %v8554_v3, 7  ;;  %v8594_v3 = vperm.slane %v8578_v5, 1  ;;  %vm8601_vm2 = vmmov %vm8596_vm1 }
 0x333   :  { %v2473_v22 = vsel %vm8572_vm15, %v6227_v53, %v2370_v13  ;;  %v2474_v2 = vsel %vm8574_vm3, %v6223_v17, %v2369_v33  ;;  %v2667_v30 = vadd.f32 %v2603_v49, %v2539_v46  ;;  %v2844_v17 = vld [vmem:[%s7330_s3 + $0x1b0] sm:$0xff]  ;;  %v2848_v46 = vld [vmem:[%s7330_s3 + $0x1d8] sm:$0xff]  ;;  %v8598_v33 = vld [vmem:[#allocation71_spill] sm:$0xff]  ;;  %vm8604_vm4 = vnez %v8603_v59 }
 0x334   :  { %v2601_v45 = vmul.f32 %v2473_v22, %v8575_v14  ;;  %v2602_v0 = vmul.f32 %v2474_v2, %v8576_v57  ;;  %v2540_v35 = vmul.f32 %v2844_v17, %v8577_v52  ;;  %v2545_v32 = vmul.f32 %v2848_v46, %v8595_v19  ;;  %v8605_v14 = vld [vmem:[#allocation136_spill] sm:$0xff]  ;;  %v2850_v52 = vld [vmem:[%s7330_s3 + $0x1e0] sm:$0xff]  ;;  %vm8612_vm3 = vmmov %vm8596_vm1 }
 0x335   :  { %2731 = vst [vmem:[%s7331_s5 + $0x1a8] sm:$0xff] %v2667_v30  ;;  %vm8599_vm13 = vnez %v8598_v33  ;;  %v8609_v30 = vperm.slane %v8586_v51, 2  ;;  %v8627_v46 = vld [vmem:[#allocation62_spill] sm:$0xff]  ;;  %v8632_v33 = vperm.slane %v8578_v5, 7 }
 0x336   :  { %v2665_v4 = vadd.f32 %v2601_v45, %v2537_v37  ;;  %v2666_v16 = vadd.f32 %v2602_v0, %v2538_v29  ;;  %v2341_v53 = vpop.permute.xlu1 %2340  ;;  %v2849_v29 = vld [vmem:[%s7330_s3 + $0x1d0] sm:$0xff]  ;;  %v8606_v45 = vld [vmem:[#allocation59_spill] sm:$0xff]  ;;  %v8608_v0 = vperm.slane %v8586_v51, 1  ;;  %v2355_v17 = vpop.permute.xlu2 %2354  ;;  %v8628_v19 = vperm.slane %v8627_v46, 0 }
 0x337   :  { %v2365_v7 = vsel %vm8580_vm5, %v2341_v53, %v2343_v26  ;;  %v2544_v50 = vmul.f32 %v2849_v29, %v8597_v62  ;;  %vm8607_vm15 = vnez %v8606_v45  ;;  %vm8616_vm5 = vmmov %vm8596_vm1 }
 0x338   :  { %2729 = vst [vmem:[%s7331_s5 + $0x198] sm:$0xff] %v2665_v4  ;;  %v2478_v56 = vsel %vm8583_vm7, %v6237_v47, %v2365_v7  ;;  %vm8617_vm7 = vmmov %vm8596_vm1 }
 0x339   :  { %2730 = vst [vmem:[%s7331_s5 + $0x1a0] sm:$0xff] %v2666_v16  ;;  %v2339_v44 = vpop.permute.xlu0 %2338  ;;  %v2606_v6 = vmul.f32 %v2478_v56, %v8587_v1  ;;  %v8614_v56 = vld [vmem:[#allocation137_spill] sm:$0xff] }
 0x33a   :  { %v2366_v34 = vsel %vm8584_vm6, %v2339_v44, %v2341_v53  ;;  %v2367_v38 = vsel %vm8585_vm8, %v2337_v54, %v2339_v44 }
 0x33b   :  { %v2476_v39 = vsel %vm8589_vm10, %v6245_v55, %v2367_v38  ;;  %v2477_v8 = vsel %vm8591_vm14, %v6241_v40, %v2366_v34  ;;  %v2670_v37 = vadd.f32 %v2606_v6, %v2542_v43  ;;  %v2847_v40 = vld [vmem:[%s7330_s3 + $0x1c8] sm:$0xff]  ;;  %v8611_v43 = vperm.slane %v8578_v5, 6  ;;  %vm8635_vm14 = vmmov %vm8596_vm1 }
 0x33c   :  { %v2604_v47 = vmul.f32 %v2476_v39, %v8592_v28  ;;  %v2605_v36 = vmul.f32 %v2477_v8, %v8593_v18  ;;  %v2543_v20 = vmul.f32 %v2847_v40, %v8594_v3  ;;  %v8620_v8 = vld [vmem:[#allocation80_spill] sm:$0xff]  ;;  %v8623_v18 = vld [vmem:[#allocation70_spill] sm:$0xff] }
 0x33d   :  { %2734 = vst [vmem:[%s7331_s5 + $0x1c0] sm:$0xff] %v2670_v37  ;;  %v2548_v7 = vmul.f32 %v2851_v12, %v8611_v43  ;;  %vm8621_vm6 = vnez %v8620_v8  ;;  %vm8624_vm8 = vnez %v8623_v18  ;;  %v8625_v37 = vperm.slane %v8586_v51, 4 }
 0x33e   :  { %v2668_v54 = vadd.f32 %v2604_v47, %v2540_v35  ;;  %v2669_v63 = vadd.f32 %v2605_v36, %v2541_v21  ;;  %v2347_v55 = vpop.permute.xlu1 %2346  ;;  %v8610_v35 = vperm.slane %v8578_v5, 4  ;;  %v8613_v21 = vperm.slane %v8578_v5, 5  ;;  %v8622_v47 = vld [vmem:[#allocation138_spill] sm:$0xff]  ;;  %v8638_v5 = vld [vmem:[#allocation72_spill] sm:$0xff] }
 0x33f   :  { %v2362_v23 = vsel %vm8596_vm1, %v2347_v55, %v2349_v42 }
 0x340   :  { %2732 = vst [vmem:[%s7331_s5 + $0x1b0] sm:$0xff] %v2668_v54  ;;  %v2481_v13 = vsel %vm8599_vm13, %v6257_v61, %v2362_v23  ;;  %v2546_v25 = vmul.f32 %v2850_v52, %v8610_v35  ;;  %v2547_v10 = vmul.f32 %v2852_v15, %v8613_v21  ;;  %v8629_v23 = vld [vmem:[#allocation6_spill] sm:$0xff] }
 0x341   :  { %2733 = vst [vmem:[%s7331_s5 + $0x1b8] sm:$0xff] %v2669_v63  ;;  %v2345_v27 = vpop.permute.xlu0 %2344  ;;  %v2609_v22 = vmul.f32 %v2481_v13, %v8602_v58  ;;  %v8626_v63 = vperm.slane %v8586_v51, 5 }
 0x342   :  { %v2363_v48 = vsel %vm8600_vm9, %v2345_v27, %v2347_v55  ;;  %v2364_v49 = vsel %vm8601_vm2, %v2343_v26, %v2345_v27  ;;  %v8630_v27 = vld [vmem:[#allocation64_spill] sm:$0xff] }
 0x343   :  { %v2479_v2 = vsel %vm8604_vm4, %v6265_v60, %v2364_v49  ;;  %v2480_v57 = vsel %vm8607_vm15, %v8605_v14, %v2363_v48  ;;  %v2673_v16 = vadd.f32 %v2609_v22, %v2545_v32  ;;  %v8633_v48 = vld [vmem:[#allocation135_spill] sm:$0xff] }
 0x344   :  { %v2607_v61 = vmul.f32 %v2479_v2, %v8608_v0  ;;  %v2608_v4 = vmul.f32 %v2480_v57, %v8609_v30  ;;  %v8639_v57 = vperm.slane %v8638_v5, 0 }
 0x345   :  { %2737 = vst [vmem:[%s7331_s5 + $0x1d8] sm:$0xff] %v2673_v16 }
 0x346   :  { %v2671_v53 = vadd.f32 %v2607_v61, %v2543_v20  ;;  %v2672_v26 = vadd.f32 %v2608_v4, %v2544_v50  ;;  %v2353_v60 = vpop.permute.xlu1 %2352  ;;  %v2853_v20 = vld [vmem:[%s7330_s3] sm:$0xff]  ;;  %v2854_v50 = vld [vmem:[%s7330_s3 + $0x1f8] sm:$0xff]  ;;  %v8640_v61 = vperm.slane %v8586_v51, 7 }
 0x347   :  { %v2359_v44 = vsel %vm8612_vm3, %v2353_v60, %v2355_v17  ;;  %v2486_v32 = vmul.f32 %v2853_v20, %v8628_v19  ;;  %v2549_v13 = vmul.f32 %v2854_v50, %v8632_v33 }
 0x348   :  { %2735 = vst [vmem:[%s7331_s5 + $0x1c8] sm:$0xff] %v2671_v53  ;;  %v2484_v38 = vsel %vm5641_vm12, %v8614_v56, %v2359_v44  ;;  %vm8631_vm12 = vcmp.lt.s32.totalorder %v3537_v31, 127 }
 0x349   :  { %2736 = vst [vmem:[%s7331_s5 + $0x1d0] sm:$0xff] %v2672_v26  ;;  %v2351_v41 = vpop.permute.xlu0 %2350  ;;  %v2612_v39 = vmul.f32 %v2484_v38, %v8618_v9  ;;  %v2228_v29 = vsel %vm8631_vm12, %v8630_v27, %v8629_v23  ;;  %vm8634_vm10 = vmmov %vm8631_vm12 }
 0x34a   :  { %v2360_v1 = vsel %vm8616_vm5, %v2351_v41, %v2353_v60  ;;  %v2361_v6 = vsel %vm8617_vm7, %v2349_v42, %v2351_v41  ;;  %v2229_v49 = vsel %vm8634_vm10, %v8633_v48, %v8630_v27 }
 0x34b   :  { %v2482_v28 = vsel %vm8621_vm6, %v8619_v11, %v2361_v6  ;;  %v2483_v36 = vsel %vm8624_vm8, %v8622_v47, %v2360_v1  ;;  %v2676_v40 = vadd.f32 %v2612_v39, %v2548_v7 }
 0x34c   :  { %v2610_v54 = vmul.f32 %v2482_v28, %v8625_v37  ;;  %v2611_v55 = vmul.f32 %v2483_v36, %v8626_v63 }
 0x34d   :  { %2740 = vst [vmem:[%s7331_s5 + $0x1f0] sm:$0xff] %v2676_v40 }
 0x34e   :  { %v2674_v3 = vadd.f32 %v2610_v54, %v2546_v25  ;;  %v2675_v42 = vadd.f32 %v2611_v55, %v2547_v10 }
 0x350   :  { %2738 = vst [vmem:[%s7331_s5 + $0x1e0] sm:$0xff] %v2674_v3 }
 0x351   :  { %2739 = vst [vmem:[%s7331_s5 + $0x1e8] sm:$0xff] %v2675_v42  ;;  %v2357_v62 = vpop.permute.xlu0 %2356 }
 0x352   :  { %v2358_v58 = vsel %vm8635_vm14, %v2355_v17, %v2357_v62  ;;  %v2421_v22 = vsel %vm8596_vm1, %v2357_v62, %v6301_v24 }
 0x353   :  { %v2422_v2 = vsel %vm5626_vm0, %v2228_v29, %v2421_v22  ;;  %v2485_v45 = vsel %vm5645_vm11, %v2229_v49, %v2358_v58 }
 0x354   :  { %v2550_v0 = vmul.f32 %v2422_v2, %v8639_v57  ;;  %v2613_v30 = vmul.f32 %v2485_v45, %v8640_v61 }
 0x356   :  { %v2614_v4 = vadd.f32 %v2550_v0, %v2486_v32  ;;  %v2677_v16 = vadd.f32 %v2613_v30, %v2549_v13 }
 0x358   :  { %2678 = vst [vmem:[%s7331_s5] sm:$0xff] %v2614_v4 }
 0x359   :  { %2741 = vst [vmem:[%s7331_s5 + $0x1f8] sm:$0xff] %v2677_v16 }

</bundles_post_ra>
